<compile_context>
chip_gen: v6e
topology: v6e:2x2x1
jax: 0.10.0
libtpu: 0.0.40
codegen_flags: <defaults>
</compile_context>

<pallas_src>
import functools
import math

import jax
import jax.numpy as jnp
from jax.experimental import pallas as pl
from jax.experimental.pallas import tpu as pltpu

BF16 = jnp.bfloat16
LN_EPS = 1e-5


# ------------------------------ tiling helpers ------------------------------

def _ce_row_tile(m):
    """Largest row tile <=256 that divides m (no artificial grid splitting)."""
    for tm in (256, 128, 64, 32, 16, 8):
        if m % tm == 0:
            return tm
    return m


def _ce_vocab_tile(vocab, max_vt=1024):
    """(vocab tile, padded vocab) — lane-aligned tile, padded cols are masked."""
    vt = min(max_vt, ((vocab + 127) // 128) * 128)
    v_pad = ((vocab + vt - 1) // vt) * vt
    return vt, v_pad


# ------------------------- fused per-layer kernel ---------------------------

def _gpt2_layer_kernel(h_ref, mask_ref, ln1g_ref, ln1b_ref, wqkv_ref, bqkv_ref,
                       wproj_ref, bproj_ref, ln2g_ref, ln2b_ref,
                       wfc_ref, bfc_ref, wfc2_ref, bfc2_ref, o_ref,
                       *, n_head, scale, eps):
    """One full GPT2 block for one batch element, entirely in VMEM/registers."""
    T, D = h_ref.shape
    Dh = D // n_head
    x = h_ref[...]                                            # (T, D) f32

    # ---- LN1 + fused QKV projection (one lane-dense MXU matmul) ----
    mu = jnp.mean(x, axis=-1, keepdims=True)
    var = jnp.mean(jnp.square(x - mu), axis=-1, keepdims=True)
    hn = (x - mu) * jax.lax.rsqrt(var + eps) * ln1g_ref[...] + ln1b_ref[...]
    qkv = jnp.dot(hn.astype(BF16), wqkv_ref[...],
                  preferred_element_type=jnp.float32) + bqkv_ref[...]  # (T, 3D)

    # ---- causal + padding bias, built in-kernel, shared by all heads ----
    row = jax.lax.broadcasted_iota(jnp.int32, (T, T), 0)
    col = jax.lax.broadcasted_iota(jnp.int32, (T, T), 1)
    ok = jnp.logical_and(col <= row, mask_ref[...] > 0.5)     # (T,T) & (1,T)
    bias = jnp.where(ok, 0.0, -1e9).astype(jnp.float32)

    # ---- multi-head attention (f32 scores/softmax, bf16 MXU operands) ----
    outs = []
    for h in range(n_head):
        q = qkv[:, h * Dh:(h + 1) * Dh].astype(BF16)
        k = qkv[:, D + h * Dh:D + (h + 1) * Dh].astype(BF16)
        v = qkv[:, 2 * D + h * Dh:2 * D + (h + 1) * Dh].astype(BF16)
        s = jax.lax.dot_general(q, k, (((1,), (1,)), ((), ())),
                                preferred_element_type=jnp.float32)
        s = s * scale + bias
        m = jnp.max(s, axis=-1, keepdims=True)
        p = jnp.exp(s - m)
        p = p * pl.reciprocal(jnp.sum(p, axis=-1, keepdims=True), approx=True)
        outs.append(jnp.dot(p.astype(BF16), v, preferred_element_type=jnp.float32))
    ctx = jnp.concatenate(outs, axis=-1)                      # (T, D) lane-dense

    # ---- attention output projection + residual (no HBM round trip) ----
    x = x + jnp.dot(ctx.astype(BF16), wproj_ref[...],
                    preferred_element_type=jnp.float32) + bproj_ref[...]

    # ---- LN2 + GELU(new) MLP + residual ----
    mu2 = jnp.mean(x, axis=-1, keepdims=True)
    var2 = jnp.mean(jnp.square(x - mu2), axis=-1, keepdims=True)
    hn2 = (x - mu2) * jax.lax.rsqrt(var2 + eps) * ln2g_ref[...] + ln2b_ref[...]
    hmid = jnp.dot(hn2.astype(BF16), wfc_ref[...],
                   preferred_element_type=jnp.float32) + bfc_ref[...]
    c = jnp.float32(math.sqrt(2.0 / math.pi))
    hmid = 0.5 * hmid * (1.0 + jnp.tanh(c * (hmid + 0.044715 * hmid * hmid * hmid)))
    x = x + jnp.dot(hmid.astype(BF16), wfc2_ref[...],
                    preferred_element_type=jnp.float32) + bfc2_ref[...]

    o_ref[...] = x


def fused_gpt2_layer(hidden, mask, lyr, *, n_head, scale, eps=LN_EPS):
    """hidden:(B,T,D) f32, mask:(B,1,T) f32 -> (B,T,D) f32 (aliased in place)."""
    B, T, D = hidden.shape
    F = lyr["fc_w"].shape[1]
    const = lambda b: (0, 0)
    # NOTE: at real distilgpt2 dims, set vmem_limit_bytes and single-buffer the
    # constant-index weight blocks; unnecessary at these sizes.
    return pl.pallas_call(
        functools.partial(_gpt2_layer_kernel, n_head=n_head, scale=scale, eps=eps),
        grid=(B,),
        in_specs=[pl.BlockSpec((None, T, D), lambda b: (b, 0, 0)),    # hidden
                  pl.BlockSpec((None, 1, T), lambda b: (b, 0, 0)),    # mask
                  pl.BlockSpec((1, D), const),                        # ln1_g
                  pl.BlockSpec((1, D), const),                        # ln1_b
                  pl.BlockSpec((D, 3 * D), const),                    # attn_w bf16
                  pl.BlockSpec((1, 3 * D), const),                    # attn_b
                  pl.BlockSpec((D, D), const),                        # proj_w bf16
                  pl.BlockSpec((1, D), const),                        # proj_b
                  pl.BlockSpec((1, D), const),                        # ln2_g
                  pl.BlockSpec((1, D), const),                        # ln2_b
                  pl.BlockSpec((D, F), const),                        # fc_w bf16
                  pl.BlockSpec((1, F), const),                        # fc_b
                  pl.BlockSpec((F, D), const),                        # fc2_w bf16
                  pl.BlockSpec((1, D), const)],                       # fc2_b
        out_specs=pl.BlockSpec((None, T, D), lambda b: (b, 0, 0)),
        out_shape=jax.ShapeDtypeStruct((B, T, D), jnp.float32),
        input_output_aliases={0: 0},
        compiler_params=pltpu.CompilerParams(dimension_semantics=("parallel",)),
    )(hidden, mask, lyr["ln1_g"], lyr["ln1_b"], lyr["attn_w"], lyr["attn_b"],
      lyr["proj_w"], lyr["proj_b"], lyr["ln2_g"], lyr["ln2_b"],
      lyr["fc_w"], lyr["fc_b"], lyr["fc2_w"], lyr["fc2_b"])


# ---------- fused final-LN + tied LM head + shifted CE + masked mean --------

def _lnf_lmhead_ce_kernel(h_ref, g_ref, b_ref, w_ref, lab_ref, loss_ref,
                          hn_s, m_s, s_s, t_s, accl_s, accc_s,
                          *, eps, vt, vocab):
    i = pl.program_id(0)
    v_idx = pl.program_id(1)
    ni = pl.num_programs(0)
    nv = pl.num_programs(1)

    @pl.when(jnp.logical_and(i == 0, v_idx == 0))
    def _():
        accl_s[...] = jnp.zeros_like(accl_s)
        accc_s[...] = jnp.zeros_like(accc_s)

    @pl.when(v_idx == 0)
    def _():
        x = h_ref[...]
        mu = jnp.mean(x, axis=-1, keepdims=True)
        var = jnp.mean(jnp.square(x - mu), axis=-1, keepdims=True)
        hn_s[...] = ((x - mu) * jax.lax.rsqrt(var + eps) * g_ref[...]
                     + b_ref[...]).astype(BF16)
        m_s[...] = jnp.full_like(m_s, -1e30)
        s_s[...] = jnp.zeros_like(s_s)
        t_s[...] = jnp.zeros_like(t_s)

    # logits tile: (tm, vt) = hn @ wte_tile^T  (contract last dims, no transpose)
    logits = jax.lax.dot_general(hn_s[...], w_ref[...], (((1,), (1,)), ((), ())),
                                 preferred_element_type=jnp.float32)
    labels = lab_ref[...]                                         # (tm, 1) int32
    vocab_ids = v_idx * vt + jax.lax.broadcasted_iota(jnp.int32, logits.shape, 1)
    logits = jnp.where(vocab_ids < vocab, logits, -1e30)          # mask padded cols

    t_s[...] = t_s[...] + jnp.sum(
        jnp.where(vocab_ids == labels, logits, 0.0), axis=-1, keepdims=True)
    m_new = jnp.maximum(m_s[...], jnp.max(logits, axis=-1, keepdims=True))
    s_s[...] = (s_s[...] * jnp.exp(m_s[...] - m_new) +
                jnp.sum(jnp.exp(logits - m_new), axis=-1, keepdims=True))
    m_s[...] = m_new

    @pl.when(v_idx == nv - 1)
    def _():
        lse = m_s[...] + jnp.log(s_s[...])
        valid = labels >= 0
        per_tok = jnp.where(valid, lse - t_s[...], 0.0)           # (tm, 1)
        accl_s[...] = accl_s[...] + jnp.sum(per_tok, axis=0, keepdims=True)
        accc_s[...] = accc_s[...] + jnp.sum(valid.astype(jnp.float32),
                                            axis=0, keepdims=True)

    @pl.when(jnp.logical_and(i == ni - 1, v_idx == nv - 1))
    def _():
        loss_ref[...] = accl_s[...] / jnp.maximum(accc_s[...], 1.0)


def fused_lnf_lmhead_ce(h, gamma, beta, wte_pad_bf16, labels, *, vocab, eps=LN_EPS):
    """h:(M,D) f32, wte_pad:(Vpad,D) bf16, labels:(M,1) int32 -> (1,1) mean loss."""
    M, D = h.shape
    vt, v_pad = _ce_vocab_tile(vocab)
    assert wte_pad_bf16.shape == (v_pad, D)
    tm = _ce_row_tile(M)
    return pl.pallas_call(
        functools.partial(_lnf_lmhead_ce_kernel, eps=eps, vt=vt, vocab=vocab),
        grid=(M // tm, v_pad // vt),
        in_specs=[pl.BlockSpec((tm, D), lambda i, v: (i, 0)),
                  pl.BlockSpec((1, D), lambda i, v: (0, 0)),
                  pl.BlockSpec((1, D), lambda i, v: (0, 0)),
                  pl.BlockSpec((vt, D), lambda i, v: (v, 0)),
                  pl.BlockSpec((tm, 1), lambda i, v: (i, 0))],
        out_specs=pl.BlockSpec((1, 1), lambda i, v: (0, 0)),
        out_shape=jax.ShapeDtypeStruct((1, 1), jnp.float32),
        scratch_shapes=[pltpu.VMEM((tm, D), BF16),          # normalized hidden
                        pltpu.VMEM((tm, 1), jnp.float32),   # running max
                        pltpu.VMEM((tm, 1), jnp.float32),   # running sum-exp
                        pltpu.VMEM((tm, 1), jnp.float32),   # target logit
                        pltpu.VMEM((1, 1), jnp.float32),    # loss sum
                        pltpu.VMEM((1, 1), jnp.float32)],   # valid count
        compiler_params=pltpu.CompilerParams(
            dimension_semantics=("arbitrary", "arbitrary")),
    )(h, gamma, beta, wte_pad_bf16, labels)


# ----------------------------- model glue (JAX) ----------------------------

def init_params(key, vocab, n_pos, n_embd, n_layer):
    # TODO(synk): pretrained distilgpt2 checkpoint cannot be loaded in-script;
    # a deterministic random GPT2-shaped init stands in (same forward math).
    def norm(k, shape, std=0.02):
        return std * jax.random.normal(k, shape, jnp.float32)
    keys = jax.random.split(key, 2 + n_layer)
    params = {
        "wte": norm(keys[0], (vocab, n_embd)),
        "wpe": norm(keys[1], (n_pos, n_embd)),
        "lnf_g": jnp.ones((n_embd,), jnp.float32),
        "lnf_b": jnp.zeros((n_embd,), jnp.float32),
        "layers": [],
    }
    for l in range(n_layer):
        lk = jax.random.split(keys[2 + l], 4)
        params["layers"].append({
            "ln1_g": jnp.ones((n_embd,), jnp.float32),
            "ln1_b": jnp.zeros((n_embd,), jnp.float32),
            "attn_w": norm(lk[0], (n_embd, 3 * n_embd)),
            "attn_b": jnp.zeros((3 * n_embd,), jnp.float32),
            "proj_w": norm(lk[1], (n_embd, n_embd)),
            "proj_b": jnp.zeros((n_embd,), jnp.float32),
            "ln2_g": jnp.ones((n_embd,), jnp.float32),
            "ln2_b": jnp.zeros((n_embd,), jnp.float32),
            "fc_w": norm(lk[2], (n_embd, 4 * n_embd)),
            "fc_b": jnp.zeros((4 * n_embd,), jnp.float32),
            "fc2_w": norm(lk[3], (4 * n_embd, n_embd)),
            "fc2_b": jnp.zeros((n_embd,), jnp.float32),
        })
    return params


def prepare_params(params):
    """One-time prep: bf16 weight copies, (1,N) biases, padded bf16 LM-head wte."""
    V, D = params["wte"].shape
    _, v_pad = _ce_vocab_tile(V)
    wte_head = jnp.pad(params["wte"].astype(BF16), ((0, v_pad - V), (0, 0)))
    prep = {
        "wte_f32": params["wte"],            # f32 table for embedding gathers
        "wte_head": wte_head,                # (Vpad, D) bf16 tied LM head
        "wpe": params["wpe"],
        "lnf_g": params["lnf_g"].reshape(1, D),
        "lnf_b": params["lnf_b"].reshape(1, D),
        "layers": [],
    }
    for lyr in params["layers"]:
        prep["layers"].append({
            "ln1_g": lyr["ln1_g"].reshape(1, D),
            "ln1_b": lyr["ln1_b"].reshape(1, D),
            "attn_w": lyr["attn_w"].astype(BF16),
            "attn_b": lyr["attn_b"].reshape(1, -1),
            "proj_w": lyr["proj_w"].astype(BF16),
            "proj_b": lyr["proj_b"].reshape(1, -1),
            "ln2_g": lyr["ln2_g"].reshape(1, D),
            "ln2_b": lyr["ln2_b"].reshape(1, D),
            "fc_w": lyr["fc_w"].astype(BF16),
            "fc_b": lyr["fc_b"].reshape(1, -1),
            "fc2_w": lyr["fc2_w"].astype(BF16),
            "fc2_b": lyr["fc2_b"].reshape(1, -1),
        })
    return prep


def caption_decoder_forward(prep, vision_embedding, tag_input_ids,
                            tag_attention_mask, input_ids, attention_mask,
                            labels, *, n_head, vocab):
    """Returns the scalar LM loss (same semantics as GPT2LMHeadModel loss)."""
    B, Sv, D = vision_embedding.shape
    St = tag_input_ids.shape[1]
    Sx = input_ids.shape[1]
    T = Sv + St + Sx
    Dh = D // n_head

    # embedding lookups (gather = glue, kept in JAX)
    wte = prep["wte_f32"]
    tag_emb = jnp.take(wte, tag_input_ids, axis=0)
    dec_emb = jnp.take(wte, input_ids, axis=0)
    combined = jnp.concatenate(
        [vision_embedding.astype(jnp.float32), tag_emb, dec_emb], axis=1)

    extended_labels = jnp.concatenate(
        [jnp.full((B, Sv + St), -100, jnp.int32), labels.astype(jnp.int32)],
        axis=1)                                                  # (B, T)
    ext_mask = jnp.concatenate(
        [jnp.ones((B, Sv), jnp.float32),
         tag_attention_mask.astype(jnp.float32),
         attention_mask.astype(jnp.float32)], axis=1).reshape(B, 1, T)

    hidden = combined + prep["wpe"][:T][None, :, :]              # (B, T, D)
    scale = 1.0 / math.sqrt(Dh)

    # one fused pallas_call per transformer block, residual aliased in place
    for lyr in prep["layers"]:
        hidden = fused_gpt2_layer(hidden, ext_mask, lyr, n_head=n_head, scale=scale)

    # shifted labels: row t predicts token t+1; last row ignored (-100)
    ce_labels = jnp.concatenate(
        [extended_labels[:, 1:], jnp.full((B, 1), -100, jnp.int32)],
        axis=1).reshape(B * T, 1)

    # final LN + tied LM head + CE + masked mean, all in one vocab-tiled kernel
    loss = fused_lnf_lmhead_ce(hidden.reshape(B * T, D), prep["lnf_g"],
                               prep["lnf_b"], prep["wte_head"], ce_labels,
                               vocab=vocab)
    return loss[0, 0]


# --------------------------------- main -------------------------------------

if __name__ == "__main__":
    # small GPT2-ish config with lane-dense hidden (128) and vocab (256)
    VOCAB, N_POS, N_EMBD, N_HEAD, N_LAYER = 256, 64, 128, 4, 2
    B, S_VIS, S_TAG, S_TXT = 2, 4, 4, 8

    root = jax.random.PRNGKey(0)
    k_par, k_vis, k_tag, k_ids, k_lab = jax.random.split(root, 5)

    params = init_params(k_par, VOCAB, N_POS, N_EMBD, N_LAYER)
    prep = prepare_params(params)     # bf16 weights / padded LM head, built once

    vision_embedding = jax.random.normal(k_vis, (B, S_VIS, N_EMBD), jnp.float32)

    # TODO(synk): HF tokenizer over tag_names strings has no Pallas equivalent;
    # deterministic synthetic token ids stand in for its output.
    tag_input_ids = jax.random.randint(k_tag, (B, S_TAG), 0, VOCAB, jnp.int32)
    tag_attention_mask = jnp.array([[1, 1, 1, 1],
                                    [1, 1, 1, 0]], jnp.int32)

    input_ids = jax.random.randint(k_ids, (B, S_TXT), 0, VOCAB, jnp.int32)
    attention_mask = jnp.array([[1] * S_TXT,
                                [1] * (S_TXT - 2) + [0, 0]], jnp.int32)
    labels = jax.random.randint(k_lab, (B, S_TXT), 0, VOCAB, jnp.int32)
    labels = jnp.where(attention_mask == 1, labels, -100)

    forward = jax.jit(functools.partial(caption_decoder_forward,
                                        n_head=N_HEAD, vocab=VOCAB))
    loss = forward(prep, vision_embedding, tag_input_ids, tag_attention_mask,
                   input_ids, attention_mask, labels)
    loss = jax.block_until_ready(loss)
    assert loss.shape == () and bool(jnp.isfinite(loss))
    print("KERNEL_OK")
</pallas_src>

<mosaic_0001>
module attributes {stable_mosaic.version = 11 : i64} {
  func.func @_gpt2_layer_kernel(%arg0: i32, %arg1: memref<1x16x128xf32, #tpu.memory_space<vmem>>, %arg2: memref<1x1x16xf32, #tpu.memory_space<vmem>>, %arg3: memref<1x128xf32, #tpu.memory_space<vmem>>, %arg4: memref<1x128xf32, #tpu.memory_space<vmem>>, %arg5: memref<128x384xbf16, #tpu.memory_space<vmem>>, %arg6: memref<1x384xf32, #tpu.memory_space<vmem>>, %arg7: memref<128x128xbf16, #tpu.memory_space<vmem>>, %arg8: memref<1x128xf32, #tpu.memory_space<vmem>>, %arg9: memref<1x128xf32, #tpu.memory_space<vmem>>, %arg10: memref<1x128xf32, #tpu.memory_space<vmem>>, %arg11: memref<128x512xbf16, #tpu.memory_space<vmem>>, %arg12: memref<1x512xf32, #tpu.memory_space<vmem>>, %arg13: memref<512x128xbf16, #tpu.memory_space<vmem>>, %arg14: memref<1x128xf32, #tpu.memory_space<vmem>>, %arg15: memref<1x16x128xf32, #tpu.memory_space<vmem>>) attributes {dimension_semantics = [#tpu.dimension_semantics<parallel>], iteration_bounds = array<i64: 2>, scalar_prefetch = 0 : i64, scratch_operands = 0 : i64, tpu.core_type = #tpu.core_type<tc>, window_params = [{transform_indices = @transform_0, window_bounds = array<i64: 1, 16, 128>}, {transform_indices = @transform_1, window_bounds = array<i64: 1, 1, 16>}, {pipeline_mode = #tpu.pipeline_mode<synchronous>, transform_indices = @transform_2, window_bounds = array<i64: 1, 128>}, {pipeline_mode = #tpu.pipeline_mode<synchronous>, transform_indices = @transform_3, window_bounds = array<i64: 1, 128>}, {pipeline_mode = #tpu.pipeline_mode<synchronous>, transform_indices = @transform_4, window_bounds = array<i64: 128, 384>}, {pipeline_mode = #tpu.pipeline_mode<synchronous>, transform_indices = @transform_5, window_bounds = array<i64: 1, 384>}, {pipeline_mode = #tpu.pipeline_mode<synchronous>, transform_indices = @transform_6, window_bounds = array<i64: 128, 128>}, {pipeline_mode = #tpu.pipeline_mode<synchronous>, transform_indices = @transform_7, window_bounds = array<i64: 1, 128>}, {pipeline_mode = #tpu.pipeline_mode<synchronous>, transform_indices = @transform_8, window_bounds = array<i64: 1, 128>}, {pipeline_mode = #tpu.pipeline_mode<synchronous>, transform_indices = @transform_9, window_bounds = array<i64: 1, 128>}, {pipeline_mode = #tpu.pipeline_mode<synchronous>, transform_indices = @transform_10, window_bounds = array<i64: 128, 512>}, {pipeline_mode = #tpu.pipeline_mode<synchronous>, transform_indices = @transform_11, window_bounds = array<i64: 1, 512>}, {pipeline_mode = #tpu.pipeline_mode<synchronous>, transform_indices = @transform_12, window_bounds = array<i64: 512, 128>}, {pipeline_mode = #tpu.pipeline_mode<synchronous>, transform_indices = @transform_13, window_bounds = array<i64: 1, 128>}, {transform_indices = @transform_14, window_bounds = array<i64: 1, 16, 128>}]} {
    %c0 = arith.constant 0 : index
    %c0_0 = arith.constant 0 : index
    %c0_1 = arith.constant 0 : index
    %0 = vector.load %arg1[%c0, %c0_0, %c0_1] : memref<1x16x128xf32, #tpu.memory_space<vmem>>, vector<1x16x128xf32>
    %1 = vector.shape_cast %0 : vector<1x16x128xf32> to vector<16x128xf32>
    %cst = arith.constant dense<0.000000e+00> : vector<16xf32>
    %2 = vector.multi_reduction <add>, %1, %cst [1] : vector<16x128xf32> to vector<16xf32>
    %3 = vector.shape_cast %2 : vector<16xf32> to vector<16x1xf32>
    %cst_2 = arith.constant 1.280000e+02 : f32
    %4 = vector.broadcast %cst_2 : f32 to vector<16x1xf32>
    %5 = arith.divf %3, %4 : vector<16x1xf32>
    %6 = vector.broadcast %5 : vector<16x1xf32> to vector<16x128xf32>
    %7 = arith.subf %1, %6 : vector<16x128xf32>
    %8 = arith.mulf %7, %7 : vector<16x128xf32>
    %cst_3 = arith.constant dense<0.000000e+00> : vector<16xf32>
    %9 = vector.multi_reduction <add>, %8, %cst_3 [1] : vector<16x128xf32> to vector<16xf32>
    %10 = vector.shape_cast %9 : vector<16xf32> to vector<16x1xf32>
    %cst_4 = arith.constant 1.280000e+02 : f32
    %11 = vector.broadcast %cst_4 : f32 to vector<16x1xf32>
    %12 = arith.divf %10, %11 : vector<16x1xf32>
    %13 = vector.broadcast %5 : vector<16x1xf32> to vector<16x128xf32>
    %14 = arith.subf %1, %13 : vector<16x128xf32>
    %cst_5 = arith.constant 9.99999974E-6 : f32
    %15 = vector.broadcast %cst_5 : f32 to vector<16x1xf32>
    %16 = arith.addf %12, %15 : vector<16x1xf32>
    %17 = math.rsqrt %16 : vector<16x1xf32>
    %18 = vector.broadcast %17 : vector<16x1xf32> to vector<16x128xf32>
    %19 = arith.mulf %14, %18 : vector<16x128xf32>
    %c0_6 = arith.constant 0 : index
    %c0_7 = arith.constant 0 : index
    %20 = vector.load %arg3[%c0_6, %c0_7] : memref<1x128xf32, #tpu.memory_space<vmem>>, vector<1x128xf32>
    %21 = vector.broadcast %20 : vector<1x128xf32> to vector<16x128xf32>
    %22 = arith.mulf %19, %21 : vector<16x128xf32>
    %c0_8 = arith.constant 0 : index
    %c0_9 = arith.constant 0 : index
    %23 = vector.load %arg4[%c0_8, %c0_9] : memref<1x128xf32, #tpu.memory_space<vmem>>, vector<1x128xf32>
    %24 = vector.broadcast %23 : vector<1x128xf32> to vector<16x128xf32>
    %25 = arith.addf %22, %24 : vector<16x128xf32>
    %26 = arith.truncf %25 : vector<16x128xf32> to vector<16x128xbf16>
    %c0_10 = arith.constant 0 : index
    %c0_11 = arith.constant 0 : index
    %27 = vector.load %arg5[%c0_10, %c0_11] : memref<128x384xbf16, #tpu.memory_space<vmem>>, vector<128x384xbf16>
    %cst_12 = arith.constant dense<0.000000e+00> : vector<16x384xf32>
    %28 = tpu.matmul %26, %27, %cst_12 {dimension_numbers = #tpu.dot_dimension_numbers<[1], [0], [0], [1], [0, 0, 1, 1], [], []>} : vector<16x128xbf16>, vector<128x384xbf16>, vector<16x384xf32> -> vector<16x384xf32>
    %c0_13 = arith.constant 0 : index
    %c0_14 = arith.constant 0 : index
    %29 = vector.load %arg6[%c0_13, %c0_14] : memref<1x384xf32, #tpu.memory_space<vmem>>, vector<1x384xf32>
    %30 = vector.broadcast %29 : vector<1x384xf32> to vector<16x384xf32>
    %31 = arith.addf %28, %30 : vector<16x384xf32>
    %32 = tpu.iota {dimensions = array<i32: 0>} : vector<16x16xi32>
    %33 = tpu.iota {dimensions = array<i32: 1>} : vector<16x16xi32>
    %34 = arith.cmpi sle, %33, %32 : vector<16x16xi32>
    %c0_15 = arith.constant 0 : index
    %c0_16 = arith.constant 0 : index
    %c0_17 = arith.constant 0 : index
    %35 = vector.load %arg2[%c0_15, %c0_16, %c0_17] : memref<1x1x16xf32, #tpu.memory_space<vmem>>, vector<1x1x16xf32>
    %36 = vector.shape_cast %35 : vector<1x1x16xf32> to vector<1x16xf32>
    %cst_18 = arith.constant 5.000000e-01 : f32
    %37 = vector.broadcast %cst_18 : f32 to vector<1x16xf32>
    %38 = arith.cmpf ogt, %36, %37 : vector<1x16xf32>
    %39 = vector.broadcast %38 : vector<1x16xi1> to vector<16x16xi1>
    %40 = arith.andi %34, %39 : vector<16x16xi1>
    %cst_19 = arith.constant 0.000000e+00 : f32
    %cst_20 = arith.constant -1.000000e+09 : f32
    %41 = vector.broadcast %cst_19 : f32 to vector<16x16xf32>
    %42 = vector.broadcast %cst_20 : f32 to vector<16x16xf32>
    %43 = arith.select %40, %41, %42 : vector<16x16xi1>, vector<16x16xf32>
    %44 = vector.extract_strided_slice %31 {offsets = [0, 0], sizes = [16, 32], strides = [1, 1]} : vector<16x384xf32> to vector<16x32xf32>
    %45 = arith.truncf %44 : vector<16x32xf32> to vector<16x32xbf16>
    %46 = vector.extract_strided_slice %31 {offsets = [0, 128], sizes = [16, 32], strides = [1, 1]} : vector<16x384xf32> to vector<16x32xf32>
    %47 = arith.truncf %46 : vector<16x32xf32> to vector<16x32xbf16>
    %48 = vector.extract_strided_slice %31 {offsets = [0, 256], sizes = [16, 32], strides = [1, 1]} : vector<16x384xf32> to vector<16x32xf32>
    %49 = arith.truncf %48 : vector<16x32xf32> to vector<16x32xbf16>
    %cst_21 = arith.constant dense<0.000000e+00> : vector<16x16xf32>
    %50 = tpu.matmul %45, %47, %cst_21 {dimension_numbers = #tpu.dot_dimension_numbers<[1], [1], [0], [0], [0, 0, 1, 0], [], []>} : vector<16x32xbf16>, vector<16x32xbf16>, vector<16x16xf32> -> vector<16x16xf32>
    %cst_22 = arith.constant 0.176776692 : f32
    %51 = vector.broadcast %cst_22 : f32 to vector<16x16xf32>
    %52 = arith.mulf %50, %51 : vector<16x16xf32>
    %53 = arith.addf %52, %43 : vector<16x16xf32>
    %cst_23 = arith.constant dense<0xFF800000> : vector<16xf32>
    %54 = vector.multi_reduction <maximumf>, %53, %cst_23 [1] : vector<16x16xf32> to vector<16xf32>
    %55 = vector.shape_cast %54 : vector<16xf32> to vector<16x1xf32>
    %56 = vector.broadcast %55 : vector<16x1xf32> to vector<16x16xf32>
    %57 = arith.subf %53, %56 : vector<16x16xf32>
    %58 = math.exp %57 : vector<16x16xf32>
    %cst_24 = arith.constant dense<0.000000e+00> : vector<16xf32>
    %59 = vector.multi_reduction <add>, %58, %cst_24 [1] : vector<16x16xf32> to vector<16xf32>
    %60 = vector.shape_cast %59 : vector<16xf32> to vector<16x1xf32>
    %61 = tpu.reciprocal %60 {approx = true} : vector<16x1xf32> -> vector<16x1xf32>
    %62 = vector.broadcast %61 : vector<16x1xf32> to vector<16x16xf32>
    %63 = arith.mulf %58, %62 : vector<16x16xf32>
    %64 = arith.truncf %63 : vector<16x16xf32> to vector<16x16xbf16>
    %cst_25 = arith.constant dense<0.000000e+00> : vector<16x32xf32>
    %65 = tpu.matmul %64, %49, %cst_25 {dimension_numbers = #tpu.dot_dimension_numbers<[1], [0], [0], [1], [0, 0, 1, 1], [], []>} : vector<16x16xbf16>, vector<16x32xbf16>, vector<16x32xf32> -> vector<16x32xf32>
    %66 = vector.extract_strided_slice %31 {offsets = [0, 32], sizes = [16, 32], strides = [1, 1]} : vector<16x384xf32> to vector<16x32xf32>
    %67 = arith.truncf %66 : vector<16x32xf32> to vector<16x32xbf16>
    %68 = vector.extract_strided_slice %31 {offsets = [0, 160], sizes = [16, 32], strides = [1, 1]} : vector<16x384xf32> to vector<16x32xf32>
    %69 = arith.truncf %68 : vector<16x32xf32> to vector<16x32xbf16>
    %70 = vector.extract_strided_slice %31 {offsets = [0, 288], sizes = [16, 32], strides = [1, 1]} : vector<16x384xf32> to vector<16x32xf32>
    %71 = arith.truncf %70 : vector<16x32xf32> to vector<16x32xbf16>
    %cst_26 = arith.constant dense<0.000000e+00> : vector<16x16xf32>
    %72 = tpu.matmul %67, %69, %cst_26 {dimension_numbers = #tpu.dot_dimension_numbers<[1], [1], [0], [0], [0, 0, 1, 0], [], []>} : vector<16x32xbf16>, vector<16x32xbf16>, vector<16x16xf32> -> vector<16x16xf32>
    %cst_27 = arith.constant 0.176776692 : f32
    %73 = vector.broadcast %cst_27 : f32 to vector<16x16xf32>
    %74 = arith.mulf %72, %73 : vector<16x16xf32>
    %75 = arith.addf %74, %43 : vector<16x16xf32>
    %cst_28 = arith.constant dense<0xFF800000> : vector<16xf32>
    %76 = vector.multi_reduction <maximumf>, %75, %cst_28 [1] : vector<16x16xf32> to vector<16xf32>
    %77 = vector.shape_cast %76 : vector<16xf32> to vector<16x1xf32>
    %78 = vector.broadcast %77 : vector<16x1xf32> to vector<16x16xf32>
    %79 = arith.subf %75, %78 : vector<16x16xf32>
    %80 = math.exp %79 : vector<16x16xf32>
    %cst_29 = arith.constant dense<0.000000e+00> : vector<16xf32>
    %81 = vector.multi_reduction <add>, %80, %cst_29 [1] : vector<16x16xf32> to vector<16xf32>
    %82 = vector.shape_cast %81 : vector<16xf32> to vector<16x1xf32>
    %83 = tpu.reciprocal %82 {approx = true} : vector<16x1xf32> -> vector<16x1xf32>
    %84 = vector.broadcast %83 : vector<16x1xf32> to vector<16x16xf32>
    %85 = arith.mulf %80, %84 : vector<16x16xf32>
    %86 = arith.truncf %85 : vector<16x16xf32> to vector<16x16xbf16>
    %cst_30 = arith.constant dense<0.000000e+00> : vector<16x32xf32>
    %87 = tpu.matmul %86, %71, %cst_30 {dimension_numbers = #tpu.dot_dimension_numbers<[1], [0], [0], [1], [0, 0, 1, 1], [], []>} : vector<16x16xbf16>, vector<16x32xbf16>, vector<16x32xf32> -> vector<16x32xf32>
    %88 = vector.extract_strided_slice %31 {offsets = [0, 64], sizes = [16, 32], strides = [1, 1]} : vector<16x384xf32> to vector<16x32xf32>
    %89 = arith.truncf %88 : vector<16x32xf32> to vector<16x32xbf16>
    %90 = vector.extract_strided_slice %31 {offsets = [0, 192], sizes = [16, 32], strides = [1, 1]} : vector<16x384xf32> to vector<16x32xf32>
    %91 = arith.truncf %90 : vector<16x32xf32> to vector<16x32xbf16>
    %92 = vector.extract_strided_slice %31 {offsets = [0, 320], sizes = [16, 32], strides = [1, 1]} : vector<16x384xf32> to vector<16x32xf32>
    %93 = arith.truncf %92 : vector<16x32xf32> to vector<16x32xbf16>
    %cst_31 = arith.constant dense<0.000000e+00> : vector<16x16xf32>
    %94 = tpu.matmul %89, %91, %cst_31 {dimension_numbers = #tpu.dot_dimension_numbers<[1], [1], [0], [0], [0, 0, 1, 0], [], []>} : vector<16x32xbf16>, vector<16x32xbf16>, vector<16x16xf32> -> vector<16x16xf32>
    %cst_32 = arith.constant 0.176776692 : f32
    %95 = vector.broadcast %cst_32 : f32 to vector<16x16xf32>
    %96 = arith.mulf %94, %95 : vector<16x16xf32>
    %97 = arith.addf %96, %43 : vector<16x16xf32>
    %cst_33 = arith.constant dense<0xFF800000> : vector<16xf32>
    %98 = vector.multi_reduction <maximumf>, %97, %cst_33 [1] : vector<16x16xf32> to vector<16xf32>
    %99 = vector.shape_cast %98 : vector<16xf32> to vector<16x1xf32>
    %100 = vector.broadcast %99 : vector<16x1xf32> to vector<16x16xf32>
    %101 = arith.subf %97, %100 : vector<16x16xf32>
    %102 = math.exp %101 : vector<16x16xf32>
    %cst_34 = arith.constant dense<0.000000e+00> : vector<16xf32>
    %103 = vector.multi_reduction <add>, %102, %cst_34 [1] : vector<16x16xf32> to vector<16xf32>
    %104 = vector.shape_cast %103 : vector<16xf32> to vector<16x1xf32>
    %105 = tpu.reciprocal %104 {approx = true} : vector<16x1xf32> -> vector<16x1xf32>
    %106 = vector.broadcast %105 : vector<16x1xf32> to vector<16x16xf32>
    %107 = arith.mulf %102, %106 : vector<16x16xf32>
    %108 = arith.truncf %107 : vector<16x16xf32> to vector<16x16xbf16>
    %cst_35 = arith.constant dense<0.000000e+00> : vector<16x32xf32>
    %109 = tpu.matmul %108, %93, %cst_35 {dimension_numbers = #tpu.dot_dimension_numbers<[1], [0], [0], [1], [0, 0, 1, 1], [], []>} : vector<16x16xbf16>, vector<16x32xbf16>, vector<16x32xf32> -> vector<16x32xf32>
    %110 = vector.extract_strided_slice %31 {offsets = [0, 96], sizes = [16, 32], strides = [1, 1]} : vector<16x384xf32> to vector<16x32xf32>
    %111 = arith.truncf %110 : vector<16x32xf32> to vector<16x32xbf16>
    %112 = vector.extract_strided_slice %31 {offsets = [0, 224], sizes = [16, 32], strides = [1, 1]} : vector<16x384xf32> to vector<16x32xf32>
    %113 = arith.truncf %112 : vector<16x32xf32> to vector<16x32xbf16>
    %114 = vector.extract_strided_slice %31 {offsets = [0, 352], sizes = [16, 32], strides = [1, 1]} : vector<16x384xf32> to vector<16x32xf32>
    %115 = arith.truncf %114 : vector<16x32xf32> to vector<16x32xbf16>
    %cst_36 = arith.constant dense<0.000000e+00> : vector<16x16xf32>
    %116 = tpu.matmul %111, %113, %cst_36 {dimension_numbers = #tpu.dot_dimension_numbers<[1], [1], [0], [0], [0, 0, 1, 0], [], []>} : vector<16x32xbf16>, vector<16x32xbf16>, vector<16x16xf32> -> vector<16x16xf32>
    %cst_37 = arith.constant 0.176776692 : f32
    %117 = vector.broadcast %cst_37 : f32 to vector<16x16xf32>
    %118 = arith.mulf %116, %117 : vector<16x16xf32>
    %119 = arith.addf %118, %43 : vector<16x16xf32>
    %cst_38 = arith.constant dense<0xFF800000> : vector<16xf32>
    %120 = vector.multi_reduction <maximumf>, %119, %cst_38 [1] : vector<16x16xf32> to vector<16xf32>
    %121 = vector.shape_cast %120 : vector<16xf32> to vector<16x1xf32>
    %122 = vector.broadcast %121 : vector<16x1xf32> to vector<16x16xf32>
    %123 = arith.subf %119, %122 : vector<16x16xf32>
    %124 = math.exp %123 : vector<16x16xf32>
    %cst_39 = arith.constant dense<0.000000e+00> : vector<16xf32>
    %125 = vector.multi_reduction <add>, %124, %cst_39 [1] : vector<16x16xf32> to vector<16xf32>
    %126 = vector.shape_cast %125 : vector<16xf32> to vector<16x1xf32>
    %127 = tpu.reciprocal %126 {approx = true} : vector<16x1xf32> -> vector<16x1xf32>
    %128 = vector.broadcast %127 : vector<16x1xf32> to vector<16x16xf32>
    %129 = arith.mulf %124, %128 : vector<16x16xf32>
    %130 = arith.truncf %129 : vector<16x16xf32> to vector<16x16xbf16>
    %cst_40 = arith.constant dense<0.000000e+00> : vector<16x32xf32>
    %131 = tpu.matmul %130, %115, %cst_40 {dimension_numbers = #tpu.dot_dimension_numbers<[1], [0], [0], [1], [0, 0, 1, 1], [], []>} : vector<16x16xbf16>, vector<16x32xbf16>, vector<16x32xf32> -> vector<16x32xf32>
    %132 = tpu.concatenate %65, %87, %109, %131 in 1 : vector<16x32xf32>, vector<16x32xf32>, vector<16x32xf32>, vector<16x32xf32> -> vector<16x128xf32>
    %133 = arith.truncf %132 : vector<16x128xf32> to vector<16x128xbf16>
    %c0_41 = arith.constant 0 : index
    %c0_42 = arith.constant 0 : index
    %134 = vector.load %arg7[%c0_41, %c0_42] : memref<128x128xbf16, #tpu.memory_space<vmem>>, vector<128x128xbf16>
    %cst_43 = arith.constant dense<0.000000e+00> : vector<16x128xf32>
    %135 = tpu.matmul %133, %134, %cst_43 {dimension_numbers = #tpu.dot_dimension_numbers<[1], [0], [0], [1], [0, 0, 1, 1], [], []>} : vector<16x128xbf16>, vector<128x128xbf16>, vector<16x128xf32> -> vector<16x128xf32>
    %136 = arith.addf %1, %135 : vector<16x128xf32>
    %c0_44 = arith.constant 0 : index
    %c0_45 = arith.constant 0 : index
    %137 = vector.load %arg8[%c0_44, %c0_45] : memref<1x128xf32, #tpu.memory_space<vmem>>, vector<1x128xf32>
    %138 = vector.broadcast %137 : vector<1x128xf32> to vector<16x128xf32>
    %139 = arith.addf %136, %138 : vector<16x128xf32>
    %cst_46 = arith.constant dense<0.000000e+00> : vector<16xf32>
    %140 = vector.multi_reduction <add>, %139, %cst_46 [1] : vector<16x128xf32> to vector<16xf32>
    %141 = vector.shape_cast %140 : vector<16xf32> to vector<16x1xf32>
    %cst_47 = arith.constant 1.280000e+02 : f32
    %142 = vector.broadcast %cst_47 : f32 to vector<16x1xf32>
    %143 = arith.divf %141, %142 : vector<16x1xf32>
    %144 = vector.broadcast %143 : vector<16x1xf32> to vector<16x128xf32>
    %145 = arith.subf %139, %144 : vector<16x128xf32>
    %146 = arith.mulf %145, %145 : vector<16x128xf32>
    %cst_48 = arith.constant dense<0.000000e+00> : vector<16xf32>
    %147 = vector.multi_reduction <add>, %146, %cst_48 [1] : vector<16x128xf32> to vector<16xf32>
    %148 = vector.shape_cast %147 : vector<16xf32> to vector<16x1xf32>
    %cst_49 = arith.constant 1.280000e+02 : f32
    %149 = vector.broadcast %cst_49 : f32 to vector<16x1xf32>
    %150 = arith.divf %148, %149 : vector<16x1xf32>
    %151 = vector.broadcast %143 : vector<16x1xf32> to vector<16x128xf32>
    %152 = arith.subf %139, %151 : vector<16x128xf32>
    %cst_50 = arith.constant 9.99999974E-6 : f32
    %153 = vector.broadcast %cst_50 : f32 to vector<16x1xf32>
    %154 = arith.addf %150, %153 : vector<16x1xf32>
    %155 = math.rsqrt %154 : vector<16x1xf32>
    %156 = vector.broadcast %155 : vector<16x1xf32> to vector<16x128xf32>
    %157 = arith.mulf %152, %156 : vector<16x128xf32>
    %c0_51 = arith.constant 0 : index
    %c0_52 = arith.constant 0 : index
    %158 = vector.load %arg9[%c0_51, %c0_52] : memref<1x128xf32, #tpu.memory_space<vmem>>, vector<1x128xf32>
    %159 = vector.broadcast %158 : vector<1x128xf32> to vector<16x128xf32>
    %160 = arith.mulf %157, %159 : vector<16x128xf32>
    %c0_53 = arith.constant 0 : index
    %c0_54 = arith.constant 0 : index
    %161 = vector.load %arg10[%c0_53, %c0_54] : memref<1x128xf32, #tpu.memory_space<vmem>>, vector<1x128xf32>
    %162 = vector.broadcast %161 : vector<1x128xf32> to vector<16x128xf32>
    %163 = arith.addf %160, %162 : vector<16x128xf32>
    %164 = arith.truncf %163 : vector<16x128xf32> to vector<16x128xbf16>
    %c0_55 = arith.constant 0 : index
    %c0_56 = arith.constant 0 : index
    %165 = vector.load %arg11[%c0_55, %c0_56] : memref<128x512xbf16, #tpu.memory_space<vmem>>, vector<128x512xbf16>
    %cst_57 = arith.constant dense<0.000000e+00> : vector<16x512xf32>
    %166 = tpu.matmul %164, %165, %cst_57 {dimension_numbers = #tpu.dot_dimension_numbers<[1], [0], [0], [1], [0, 0, 1, 1], [], []>} : vector<16x128xbf16>, vector<128x512xbf16>, vector<16x512xf32> -> vector<16x512xf32>
    %c0_58 = arith.constant 0 : index
    %c0_59 = arith.constant 0 : index
    %167 = vector.load %arg12[%c0_58, %c0_59] : memref<1x512xf32, #tpu.memory_space<vmem>>, vector<1x512xf32>
    %168 = vector.broadcast %167 : vector<1x512xf32> to vector<16x512xf32>
    %169 = arith.addf %166, %168 : vector<16x512xf32>
    %cst_60 = arith.constant 5.000000e-01 : f32
    %170 = vector.broadcast %cst_60 : f32 to vector<16x512xf32>
    %171 = arith.mulf %170, %169 : vector<16x512xf32>
    %cst_61 = arith.constant 4.471500e-02 : f32
    %172 = vector.broadcast %cst_61 : f32 to vector<16x512xf32>
    %173 = arith.mulf %172, %169 : vector<16x512xf32>
    %174 = arith.mulf %173, %169 : vector<16x512xf32>
    %175 = arith.mulf %174, %169 : vector<16x512xf32>
    %176 = arith.addf %169, %175 : vector<16x512xf32>
    %cst_62 = arith.constant 0.797884583 : f32
    %177 = vector.broadcast %cst_62 : f32 to vector<16x512xf32>
    %178 = arith.mulf %177, %176 : vector<16x512xf32>
    %179 = math.tanh %178 : vector<16x512xf32>
    %cst_63 = arith.constant 1.000000e+00 : f32
    %180 = vector.broadcast %cst_63 : f32 to vector<16x512xf32>
    %181 = arith.addf %180, %179 : vector<16x512xf32>
    %182 = arith.mulf %171, %181 : vector<16x512xf32>
    %183 = arith.truncf %182 : vector<16x512xf32> to vector<16x512xbf16>
    %c0_64 = arith.constant 0 : index
    %c0_65 = arith.constant 0 : index
    %184 = vector.load %arg13[%c0_64, %c0_65] : memref<512x128xbf16, #tpu.memory_space<vmem>>, vector<512x128xbf16>
    %cst_66 = arith.constant dense<0.000000e+00> : vector<16x128xf32>
    %185 = tpu.matmul %183, %184, %cst_66 {dimension_numbers = #tpu.dot_dimension_numbers<[1], [0], [0], [1], [0, 0, 1, 1], [], []>} : vector<16x512xbf16>, vector<512x128xbf16>, vector<16x128xf32> -> vector<16x128xf32>
    %186 = arith.addf %139, %185 : vector<16x128xf32>
    %c0_67 = arith.constant 0 : index
    %c0_68 = arith.constant 0 : index
    %187 = vector.load %arg14[%c0_67, %c0_68] : memref<1x128xf32, #tpu.memory_space<vmem>>, vector<1x128xf32>
    %188 = vector.broadcast %187 : vector<1x128xf32> to vector<16x128xf32>
    %189 = arith.addf %186, %188 : vector<16x128xf32>
    %c0_69 = arith.constant 0 : index
    %c0_70 = arith.constant 0 : index
    %c0_71 = arith.constant 0 : index
    %190 = vector.load %arg15[%c0_69, %c0_70, %c0_71] : memref<1x16x128xf32, #tpu.memory_space<vmem>>, vector<1x16x128xf32>
    %191 = vector.shape_cast %190 : vector<1x16x128xf32> to vector<16x128xf32>
    %192 = vector.shape_cast %189 : vector<16x128xf32> to vector<1x16x128xf32>
    tpu.vector_store %arg15[%c0_69, %c0_70, %c0_71], %192 {strides = array<i32>} : memref<1x16x128xf32, #tpu.memory_space<vmem>>, vector<1x16x128xf32>,
    return
  }
  func.func @transform_0(%arg0: i32) -> (i32, i32, i32) {
    %c0_i32 = arith.constant 0 : i32
    %c0_i32_0 = arith.constant 0 : i32
    %c0_i32_1 = arith.constant 0 : i32
    return %arg0, %c0_i32, %c0_i32_0 : i32, i32, i32
  }
  func.func @transform_1(%arg0: i32) -> (i32, i32, i32) {
    %c0_i32 = arith.constant 0 : i32
    %c0_i32_0 = arith.constant 0 : i32
    %c0_i32_1 = arith.constant 0 : i32
    return %arg0, %c0_i32, %c0_i32_0 : i32, i32, i32
  }
  func.func @transform_2(%arg0: i32) -> (i32, i32) {
    %c0_i32 = arith.constant 0 : i32
    %c0_i32_0 = arith.constant 0 : i32
    %c0_i32_1 = arith.constant 0 : i32
    return %c0_i32, %c0_i32_0 : i32, i32
  }
  func.func @transform_3(%arg0: i32) -> (i32, i32) {
    %c0_i32 = arith.constant 0 : i32
    %c0_i32_0 = arith.constant 0 : i32
    %c0_i32_1 = arith.constant 0 : i32
    return %c0_i32, %c0_i32_0 : i32, i32
  }
  func.func @transform_4(%arg0: i32) -> (i32, i32) {
    %c0_i32 = arith.constant 0 : i32
    %c0_i32_0 = arith.constant 0 : i32
    %c0_i32_1 = arith.constant 0 : i32
    return %c0_i32, %c0_i32_0 : i32, i32
  }
  func.func @transform_5(%arg0: i32) -> (i32, i32) {
    %c0_i32 = arith.constant 0 : i32
    %c0_i32_0 = arith.constant 0 : i32
    %c0_i32_1 = arith.constant 0 : i32
    return %c0_i32, %c0_i32_0 : i32, i32
  }
  func.func @transform_6(%arg0: i32) -> (i32, i32) {
    %c0_i32 = arith.constant 0 : i32
    %c0_i32_0 = arith.constant 0 : i32
    %c0_i32_1 = arith.constant 0 : i32
    return %c0_i32, %c0_i32_0 : i32, i32
  }
  func.func @transform_7(%arg0: i32) -> (i32, i32) {
    %c0_i32 = arith.constant 0 : i32
    %c0_i32_0 = arith.constant 0 : i32
    %c0_i32_1 = arith.constant 0 : i32
    return %c0_i32, %c0_i32_0 : i32, i32
  }
  func.func @transform_8(%arg0: i32) -> (i32, i32) {
    %c0_i32 = arith.constant 0 : i32
    %c0_i32_0 = arith.constant 0 : i32
    %c0_i32_1 = arith.constant 0 : i32
    return %c0_i32, %c0_i32_0 : i32, i32
  }
  func.func @transform_9(%arg0: i32) -> (i32, i32) {
    %c0_i32 = arith.constant 0 : i32
    %c0_i32_0 = arith.constant 0 : i32
    %c0_i32_1 = arith.constant 0 : i32
    return %c0_i32, %c0_i32_0 : i32, i32
  }
  func.func @transform_10(%arg0: i32) -> (i32, i32) {
    %c0_i32 = arith.constant 0 : i32
    %c0_i32_0 = arith.constant 0 : i32
    %c0_i32_1 = arith.constant 0 : i32
    return %c0_i32, %c0_i32_0 : i32, i32
  }
  func.func @transform_11(%arg0: i32) -> (i32, i32) {
    %c0_i32 = arith.constant 0 : i32
    %c0_i32_0 = arith.constant 0 : i32
    %c0_i32_1 = arith.constant 0 : i32
    return %c0_i32, %c0_i32_0 : i32, i32
  }
  func.func @transform_12(%arg0: i32) -> (i32, i32) {
    %c0_i32 = arith.constant 0 : i32
    %c0_i32_0 = arith.constant 0 : i32
    %c0_i32_1 = arith.constant 0 : i32
    return %c0_i32, %c0_i32_0 : i32, i32
  }
  func.func @transform_13(%arg0: i32) -> (i32, i32) {
    %c0_i32 = arith.constant 0 : i32
    %c0_i32_0 = arith.constant 0 : i32
    %c0_i32_1 = arith.constant 0 : i32
    return %c0_i32, %c0_i32_0 : i32, i32
  }
  func.func @transform_14(%arg0: i32) -> (i32, i32, i32) {
    %c0_i32 = arith.constant 0 : i32
    %c0_i32_0 = arith.constant 0 : i32
    %c0_i32_1 = arith.constant 0 : i32
    return %arg0, %c0_i32, %c0_i32_0 : i32, i32, i32
  }
}

module attributes {stable_mosaic.version = 11 : i64} {
  func.func @_gpt2_layer_kernel(%arg0: i32, %arg1: memref<1x16x128xf32, #tpu.memory_space<vmem>>, %arg2: memref<1x1x16xf32, #tpu.memory_space<vmem>>, %arg3: memref<1x128xf32, #tpu.memory_space<vmem>>, %arg4: memref<1x128xf32, #tpu.memory_space<vmem>>, %arg5: memref<128x384xbf16, #tpu.memory_space<vmem>>, %arg6: memref<1x384xf32, #tpu.memory_space<vmem>>, %arg7: memref<128x128xbf16, #tpu.memory_space<vmem>>, %arg8: memref<1x128xf32, #tpu.memory_space<vmem>>, %arg9: memref<1x128xf32, #tpu.memory_space<vmem>>, %arg10: memref<1x128xf32, #tpu.memory_space<vmem>>, %arg11: memref<128x512xbf16, #tpu.memory_space<vmem>>, %arg12: memref<1x512xf32, #tpu.memory_space<vmem>>, %arg13: memref<512x128xbf16, #tpu.memory_space<vmem>>, %arg14: memref<1x128xf32, #tpu.memory_space<vmem>>, %arg15: memref<1x16x128xf32, #tpu.memory_space<vmem>>) attributes {dimension_semantics = [#tpu.dimension_semantics<parallel>], iteration_bounds = array<i64: 2>, scalar_prefetch = 0 : i64, scratch_operands = 0 : i64, tpu.core_type = #tpu.core_type<tc>, window_params = [{transform_indices = @transform_0, window_bounds = array<i64: 1, 16, 128>}, {transform_indices = @transform_1, window_bounds = array<i64: 1, 1, 16>}, {pipeline_mode = #tpu.pipeline_mode<synchronous>, transform_indices = @transform_2, window_bounds = array<i64: 1, 128>}, {pipeline_mode = #tpu.pipeline_mode<synchronous>, transform_indices = @transform_3, window_bounds = array<i64: 1, 128>}, {pipeline_mode = #tpu.pipeline_mode<synchronous>, transform_indices = @transform_4, window_bounds = array<i64: 128, 384>}, {pipeline_mode = #tpu.pipeline_mode<synchronous>, transform_indices = @transform_5, window_bounds = array<i64: 1, 384>}, {pipeline_mode = #tpu.pipeline_mode<synchronous>, transform_indices = @transform_6, window_bounds = array<i64: 128, 128>}, {pipeline_mode = #tpu.pipeline_mode<synchronous>, transform_indices = @transform_7, window_bounds = array<i64: 1, 128>}, {pipeline_mode = #tpu.pipeline_mode<synchronous>, transform_indices = @transform_8, window_bounds = array<i64: 1, 128>}, {pipeline_mode = #tpu.pipeline_mode<synchronous>, transform_indices = @transform_9, window_bounds = array<i64: 1, 128>}, {pipeline_mode = #tpu.pipeline_mode<synchronous>, transform_indices = @transform_10, window_bounds = array<i64: 128, 512>}, {pipeline_mode = #tpu.pipeline_mode<synchronous>, transform_indices = @transform_11, window_bounds = array<i64: 1, 512>}, {pipeline_mode = #tpu.pipeline_mode<synchronous>, transform_indices = @transform_12, window_bounds = array<i64: 512, 128>}, {pipeline_mode = #tpu.pipeline_mode<synchronous>, transform_indices = @transform_13, window_bounds = array<i64: 1, 128>}, {transform_indices = @transform_14, window_bounds = array<i64: 1, 16, 128>}]} {
    %c0 = arith.constant 0 : index
    %c0_0 = arith.constant 0 : index
    %c0_1 = arith.constant 0 : index
    %0 = vector.load %arg1[%c0, %c0_0, %c0_1] : memref<1x16x128xf32, #tpu.memory_space<vmem>>, vector<1x16x128xf32>
    %1 = vector.shape_cast %0 : vector<1x16x128xf32> to vector<16x128xf32>
    %cst = arith.constant dense<0.000000e+00> : vector<16xf32>
    %2 = vector.multi_reduction <add>, %1, %cst [1] : vector<16x128xf32> to vector<16xf32>
    %3 = vector.shape_cast %2 : vector<16xf32> to vector<16x1xf32>
    %cst_2 = arith.constant 1.280000e+02 : f32
    %4 = vector.broadcast %cst_2 : f32 to vector<16x1xf32>
    %5 = arith.divf %3, %4 : vector<16x1xf32>
    %6 = vector.broadcast %5 : vector<16x1xf32> to vector<16x128xf32>
    %7 = arith.subf %1, %6 : vector<16x128xf32>
    %8 = arith.mulf %7, %7 : vector<16x128xf32>
    %cst_3 = arith.constant dense<0.000000e+00> : vector<16xf32>
    %9 = vector.multi_reduction <add>, %8, %cst_3 [1] : vector<16x128xf32> to vector<16xf32>
    %10 = vector.shape_cast %9 : vector<16xf32> to vector<16x1xf32>
    %cst_4 = arith.constant 1.280000e+02 : f32
    %11 = vector.broadcast %cst_4 : f32 to vector<16x1xf32>
    %12 = arith.divf %10, %11 : vector<16x1xf32>
    %13 = vector.broadcast %5 : vector<16x1xf32> to vector<16x128xf32>
    %14 = arith.subf %1, %13 : vector<16x128xf32>
    %cst_5 = arith.constant 9.99999974E-6 : f32
    %15 = vector.broadcast %cst_5 : f32 to vector<16x1xf32>
    %16 = arith.addf %12, %15 : vector<16x1xf32>
    %17 = math.rsqrt %16 : vector<16x1xf32>
    %18 = vector.broadcast %17 : vector<16x1xf32> to vector<16x128xf32>
    %19 = arith.mulf %14, %18 : vector<16x128xf32>
    %c0_6 = arith.constant 0 : index
    %c0_7 = arith.constant 0 : index
    %20 = vector.load %arg3[%c0_6, %c0_7] : memref<1x128xf32, #tpu.memory_space<vmem>>, vector<1x128xf32>
    %21 = vector.broadcast %20 : vector<1x128xf32> to vector<16x128xf32>
    %22 = arith.mulf %19, %21 : vector<16x128xf32>
    %c0_8 = arith.constant 0 : index
    %c0_9 = arith.constant 0 : index
    %23 = vector.load %arg4[%c0_8, %c0_9] : memref<1x128xf32, #tpu.memory_space<vmem>>, vector<1x128xf32>
    %24 = vector.broadcast %23 : vector<1x128xf32> to vector<16x128xf32>
    %25 = arith.addf %22, %24 : vector<16x128xf32>
    %26 = arith.truncf %25 : vector<16x128xf32> to vector<16x128xbf16>
    %c0_10 = arith.constant 0 : index
    %c0_11 = arith.constant 0 : index
    %27 = vector.load %arg5[%c0_10, %c0_11] : memref<128x384xbf16, #tpu.memory_space<vmem>>, vector<128x384xbf16>
    %cst_12 = arith.constant dense<0.000000e+00> : vector<16x384xf32>
    %28 = tpu.matmul %26, %27, %cst_12 {dimension_numbers = #tpu.dot_dimension_numbers<[1], [0], [0], [1], [0, 0, 1, 1], [], []>} : vector<16x128xbf16>, vector<128x384xbf16>, vector<16x384xf32> -> vector<16x384xf32>
    %c0_13 = arith.constant 0 : index
    %c0_14 = arith.constant 0 : index
    %29 = vector.load %arg6[%c0_13, %c0_14] : memref<1x384xf32, #tpu.memory_space<vmem>>, vector<1x384xf32>
    %30 = vector.broadcast %29 : vector<1x384xf32> to vector<16x384xf32>
    %31 = arith.addf %28, %30 : vector<16x384xf32>
    %32 = tpu.iota {dimensions = array<i32: 0>} : vector<16x16xi32>
    %33 = tpu.iota {dimensions = array<i32: 1>} : vector<16x16xi32>
    %34 = arith.cmpi sle, %33, %32 : vector<16x16xi32>
    %c0_15 = arith.constant 0 : index
    %c0_16 = arith.constant 0 : index
    %c0_17 = arith.constant 0 : index
    %35 = vector.load %arg2[%c0_15, %c0_16, %c0_17] : memref<1x1x16xf32, #tpu.memory_space<vmem>>, vector<1x1x16xf32>
    %36 = vector.shape_cast %35 : vector<1x1x16xf32> to vector<1x16xf32>
    %cst_18 = arith.constant 5.000000e-01 : f32
    %37 = vector.broadcast %cst_18 : f32 to vector<1x16xf32>
    %38 = arith.cmpf ogt, %36, %37 : vector<1x16xf32>
    %39 = vector.broadcast %38 : vector<1x16xi1> to vector<16x16xi1>
    %40 = arith.andi %34, %39 : vector<16x16xi1>
    %cst_19 = arith.constant 0.000000e+00 : f32
    %cst_20 = arith.constant -1.000000e+09 : f32
    %41 = vector.broadcast %cst_19 : f32 to vector<16x16xf32>
    %42 = vector.broadcast %cst_20 : f32 to vector<16x16xf32>
    %43 = arith.select %40, %41, %42 : vector<16x16xi1>, vector<16x16xf32>
    %44 = vector.extract_strided_slice %31 {offsets = [0, 0], sizes = [16, 32], strides = [1, 1]} : vector<16x384xf32> to vector<16x32xf32>
    %45 = arith.truncf %44 : vector<16x32xf32> to vector<16x32xbf16>
    %46 = vector.extract_strided_slice %31 {offsets = [0, 128], sizes = [16, 32], strides = [1, 1]} : vector<16x384xf32> to vector<16x32xf32>
    %47 = arith.truncf %46 : vector<16x32xf32> to vector<16x32xbf16>
    %48 = vector.extract_strided_slice %31 {offsets = [0, 256], sizes = [16, 32], strides = [1, 1]} : vector<16x384xf32> to vector<16x32xf32>
    %49 = arith.truncf %48 : vector<16x32xf32> to vector<16x32xbf16>
    %cst_21 = arith.constant dense<0.000000e+00> : vector<16x16xf32>
    %50 = tpu.matmul %45, %47, %cst_21 {dimension_numbers = #tpu.dot_dimension_numbers<[1], [1], [0], [0], [0, 0, 1, 0], [], []>} : vector<16x32xbf16>, vector<16x32xbf16>, vector<16x16xf32> -> vector<16x16xf32>
    %cst_22 = arith.constant 0.176776692 : f32
    %51 = vector.broadcast %cst_22 : f32 to vector<16x16xf32>
    %52 = arith.mulf %50, %51 : vector<16x16xf32>
    %53 = arith.addf %52, %43 : vector<16x16xf32>
    %cst_23 = arith.constant dense<0xFF800000> : vector<16xf32>
    %54 = vector.multi_reduction <maximumf>, %53, %cst_23 [1] : vector<16x16xf32> to vector<16xf32>
    %55 = vector.shape_cast %54 : vector<16xf32> to vector<16x1xf32>
    %56 = vector.broadcast %55 : vector<16x1xf32> to vector<16x16xf32>
    %57 = arith.subf %53, %56 : vector<16x16xf32>
    %58 = math.exp %57 : vector<16x16xf32>
    %cst_24 = arith.constant dense<0.000000e+00> : vector<16xf32>
    %59 = vector.multi_reduction <add>, %58, %cst_24 [1] : vector<16x16xf32> to vector<16xf32>
    %60 = vector.shape_cast %59 : vector<16xf32> to vector<16x1xf32>
    %61 = tpu.reciprocal %60 {approx = true} : vector<16x1xf32> -> vector<16x1xf32>
    %62 = vector.broadcast %61 : vector<16x1xf32> to vector<16x16xf32>
    %63 = arith.mulf %58, %62 : vector<16x16xf32>
    %64 = arith.truncf %63 : vector<16x16xf32> to vector<16x16xbf16>
    %cst_25 = arith.constant dense<0.000000e+00> : vector<16x32xf32>
    %65 = tpu.matmul %64, %49, %cst_25 {dimension_numbers = #tpu.dot_dimension_numbers<[1], [0], [0], [1], [0, 0, 1, 1], [], []>} : vector<16x16xbf16>, vector<16x32xbf16>, vector<16x32xf32> -> vector<16x32xf32>
    %66 = vector.extract_strided_slice %31 {offsets = [0, 32], sizes = [16, 32], strides = [1, 1]} : vector<16x384xf32> to vector<16x32xf32>
    %67 = arith.truncf %66 : vector<16x32xf32> to vector<16x32xbf16>
    %68 = vector.extract_strided_slice %31 {offsets = [0, 160], sizes = [16, 32], strides = [1, 1]} : vector<16x384xf32> to vector<16x32xf32>
    %69 = arith.truncf %68 : vector<16x32xf32> to vector<16x32xbf16>
    %70 = vector.extract_strided_slice %31 {offsets = [0, 288], sizes = [16, 32], strides = [1, 1]} : vector<16x384xf32> to vector<16x32xf32>
    %71 = arith.truncf %70 : vector<16x32xf32> to vector<16x32xbf16>
    %cst_26 = arith.constant dense<0.000000e+00> : vector<16x16xf32>
    %72 = tpu.matmul %67, %69, %cst_26 {dimension_numbers = #tpu.dot_dimension_numbers<[1], [1], [0], [0], [0, 0, 1, 0], [], []>} : vector<16x32xbf16>, vector<16x32xbf16>, vector<16x16xf32> -> vector<16x16xf32>
    %cst_27 = arith.constant 0.176776692 : f32
    %73 = vector.broadcast %cst_27 : f32 to vector<16x16xf32>
    %74 = arith.mulf %72, %73 : vector<16x16xf32>
    %75 = arith.addf %74, %43 : vector<16x16xf32>
    %cst_28 = arith.constant dense<0xFF800000> : vector<16xf32>
    %76 = vector.multi_reduction <maximumf>, %75, %cst_28 [1] : vector<16x16xf32> to vector<16xf32>
    %77 = vector.shape_cast %76 : vector<16xf32> to vector<16x1xf32>
    %78 = vector.broadcast %77 : vector<16x1xf32> to vector<16x16xf32>
    %79 = arith.subf %75, %78 : vector<16x16xf32>
    %80 = math.exp %79 : vector<16x16xf32>
    %cst_29 = arith.constant dense<0.000000e+00> : vector<16xf32>
    %81 = vector.multi_reduction <add>, %80, %cst_29 [1] : vector<16x16xf32> to vector<16xf32>
    %82 = vector.shape_cast %81 : vector<16xf32> to vector<16x1xf32>
    %83 = tpu.reciprocal %82 {approx = true} : vector<16x1xf32> -> vector<16x1xf32>
    %84 = vector.broadcast %83 : vector<16x1xf32> to vector<16x16xf32>
    %85 = arith.mulf %80, %84 : vector<16x16xf32>
    %86 = arith.truncf %85 : vector<16x16xf32> to vector<16x16xbf16>
    %cst_30 = arith.constant dense<0.000000e+00> : vector<16x32xf32>
    %87 = tpu.matmul %86, %71, %cst_30 {dimension_numbers = #tpu.dot_dimension_numbers<[1], [0], [0], [1], [0, 0, 1, 1], [], []>} : vector<16x16xbf16>, vector<16x32xbf16>, vector<16x32xf32> -> vector<16x32xf32>
    %88 = vector.extract_strided_slice %31 {offsets = [0, 64], sizes = [16, 32], strides = [1, 1]} : vector<16x384xf32> to vector<16x32xf32>
    %89 = arith.truncf %88 : vector<16x32xf32> to vector<16x32xbf16>
    %90 = vector.extract_strided_slice %31 {offsets = [0, 192], sizes = [16, 32], strides = [1, 1]} : vector<16x384xf32> to vector<16x32xf32>
    %91 = arith.truncf %90 : vector<16x32xf32> to vector<16x32xbf16>
    %92 = vector.extract_strided_slice %31 {offsets = [0, 320], sizes = [16, 32], strides = [1, 1]} : vector<16x384xf32> to vector<16x32xf32>
    %93 = arith.truncf %92 : vector<16x32xf32> to vector<16x32xbf16>
    %cst_31 = arith.constant dense<0.000000e+00> : vector<16x16xf32>
    %94 = tpu.matmul %89, %91, %cst_31 {dimension_numbers = #tpu.dot_dimension_numbers<[1], [1], [0], [0], [0, 0, 1, 0], [], []>} : vector<16x32xbf16>, vector<16x32xbf16>, vector<16x16xf32> -> vector<16x16xf32>
    %cst_32 = arith.constant 0.176776692 : f32
    %95 = vector.broadcast %cst_32 : f32 to vector<16x16xf32>
    %96 = arith.mulf %94, %95 : vector<16x16xf32>
    %97 = arith.addf %96, %43 : vector<16x16xf32>
    %cst_33 = arith.constant dense<0xFF800000> : vector<16xf32>
    %98 = vector.multi_reduction <maximumf>, %97, %cst_33 [1] : vector<16x16xf32> to vector<16xf32>
    %99 = vector.shape_cast %98 : vector<16xf32> to vector<16x1xf32>
    %100 = vector.broadcast %99 : vector<16x1xf32> to vector<16x16xf32>
    %101 = arith.subf %97, %100 : vector<16x16xf32>
    %102 = math.exp %101 : vector<16x16xf32>
    %cst_34 = arith.constant dense<0.000000e+00> : vector<16xf32>
    %103 = vector.multi_reduction <add>, %102, %cst_34 [1] : vector<16x16xf32> to vector<16xf32>
    %104 = vector.shape_cast %103 : vector<16xf32> to vector<16x1xf32>
    %105 = tpu.reciprocal %104 {approx = true} : vector<16x1xf32> -> vector<16x1xf32>
    %106 = vector.broadcast %105 : vector<16x1xf32> to vector<16x16xf32>
    %107 = arith.mulf %102, %106 : vector<16x16xf32>
    %108 = arith.truncf %107 : vector<16x16xf32> to vector<16x16xbf16>
    %cst_35 = arith.constant dense<0.000000e+00> : vector<16x32xf32>
    %109 = tpu.matmul %108, %93, %cst_35 {dimension_numbers = #tpu.dot_dimension_numbers<[1], [0], [0], [1], [0, 0, 1, 1], [], []>} : vector<16x16xbf16>, vector<16x32xbf16>, vector<16x32xf32> -> vector<16x32xf32>
    %110 = vector.extract_strided_slice %31 {offsets = [0, 96], sizes = [16, 32], strides = [1, 1]} : vector<16x384xf32> to vector<16x32xf32>
    %111 = arith.truncf %110 : vector<16x32xf32> to vector<16x32xbf16>
    %112 = vector.extract_strided_slice %31 {offsets = [0, 224], sizes = [16, 32], strides = [1, 1]} : vector<16x384xf32> to vector<16x32xf32>
    %113 = arith.truncf %112 : vector<16x32xf32> to vector<16x32xbf16>
    %114 = vector.extract_strided_slice %31 {offsets = [0, 352], sizes = [16, 32], strides = [1, 1]} : vector<16x384xf32> to vector<16x32xf32>
    %115 = arith.truncf %114 : vector<16x32xf32> to vector<16x32xbf16>
    %cst_36 = arith.constant dense<0.000000e+00> : vector<16x16xf32>
    %116 = tpu.matmul %111, %113, %cst_36 {dimension_numbers = #tpu.dot_dimension_numbers<[1], [1], [0], [0], [0, 0, 1, 0], [], []>} : vector<16x32xbf16>, vector<16x32xbf16>, vector<16x16xf32> -> vector<16x16xf32>
    %cst_37 = arith.constant 0.176776692 : f32
    %117 = vector.broadcast %cst_37 : f32 to vector<16x16xf32>
    %118 = arith.mulf %116, %117 : vector<16x16xf32>
    %119 = arith.addf %118, %43 : vector<16x16xf32>
    %cst_38 = arith.constant dense<0xFF800000> : vector<16xf32>
    %120 = vector.multi_reduction <maximumf>, %119, %cst_38 [1] : vector<16x16xf32> to vector<16xf32>
    %121 = vector.shape_cast %120 : vector<16xf32> to vector<16x1xf32>
    %122 = vector.broadcast %121 : vector<16x1xf32> to vector<16x16xf32>
    %123 = arith.subf %119, %122 : vector<16x16xf32>
    %124 = math.exp %123 : vector<16x16xf32>
    %cst_39 = arith.constant dense<0.000000e+00> : vector<16xf32>
    %125 = vector.multi_reduction <add>, %124, %cst_39 [1] : vector<16x16xf32> to vector<16xf32>
    %126 = vector.shape_cast %125 : vector<16xf32> to vector<16x1xf32>
    %127 = tpu.reciprocal %126 {approx = true} : vector<16x1xf32> -> vector<16x1xf32>
    %128 = vector.broadcast %127 : vector<16x1xf32> to vector<16x16xf32>
    %129 = arith.mulf %124, %128 : vector<16x16xf32>
    %130 = arith.truncf %129 : vector<16x16xf32> to vector<16x16xbf16>
    %cst_40 = arith.constant dense<0.000000e+00> : vector<16x32xf32>
    %131 = tpu.matmul %130, %115, %cst_40 {dimension_numbers = #tpu.dot_dimension_numbers<[1], [0], [0], [1], [0, 0, 1, 1], [], []>} : vector<16x16xbf16>, vector<16x32xbf16>, vector<16x32xf32> -> vector<16x32xf32>
    %132 = tpu.concatenate %65, %87, %109, %131 in 1 : vector<16x32xf32>, vector<16x32xf32>, vector<16x32xf32>, vector<16x32xf32> -> vector<16x128xf32>
    %133 = arith.truncf %132 : vector<16x128xf32> to vector<16x128xbf16>
    %c0_41 = arith.constant 0 : index
    %c0_42 = arith.constant 0 : index
    %134 = vector.load %arg7[%c0_41, %c0_42] : memref<128x128xbf16, #tpu.memory_space<vmem>>, vector<128x128xbf16>
    %cst_43 = arith.constant dense<0.000000e+00> : vector<16x128xf32>
    %135 = tpu.matmul %133, %134, %cst_43 {dimension_numbers = #tpu.dot_dimension_numbers<[1], [0], [0], [1], [0, 0, 1, 1], [], []>} : vector<16x128xbf16>, vector<128x128xbf16>, vector<16x128xf32> -> vector<16x128xf32>
    %136 = arith.addf %1, %135 : vector<16x128xf32>
    %c0_44 = arith.constant 0 : index
    %c0_45 = arith.constant 0 : index
    %137 = vector.load %arg8[%c0_44, %c0_45] : memref<1x128xf32, #tpu.memory_space<vmem>>, vector<1x128xf32>
    %138 = vector.broadcast %137 : vector<1x128xf32> to vector<16x128xf32>
    %139 = arith.addf %136, %138 : vector<16x128xf32>
    %cst_46 = arith.constant dense<0.000000e+00> : vector<16xf32>
    %140 = vector.multi_reduction <add>, %139, %cst_46 [1] : vector<16x128xf32> to vector<16xf32>
    %141 = vector.shape_cast %140 : vector<16xf32> to vector<16x1xf32>
    %cst_47 = arith.constant 1.280000e+02 : f32
    %142 = vector.broadcast %cst_47 : f32 to vector<16x1xf32>
    %143 = arith.divf %141, %142 : vector<16x1xf32>
    %144 = vector.broadcast %143 : vector<16x1xf32> to vector<16x128xf32>
    %145 = arith.subf %139, %144 : vector<16x128xf32>
    %146 = arith.mulf %145, %145 : vector<16x128xf32>
    %cst_48 = arith.constant dense<0.000000e+00> : vector<16xf32>
    %147 = vector.multi_reduction <add>, %146, %cst_48 [1] : vector<16x128xf32> to vector<16xf32>
    %148 = vector.shape_cast %147 : vector<16xf32> to vector<16x1xf32>
    %cst_49 = arith.constant 1.280000e+02 : f32
    %149 = vector.broadcast %cst_49 : f32 to vector<16x1xf32>
    %150 = arith.divf %148, %149 : vector<16x1xf32>
    %151 = vector.broadcast %143 : vector<16x1xf32> to vector<16x128xf32>
    %152 = arith.subf %139, %151 : vector<16x128xf32>
    %cst_50 = arith.constant 9.99999974E-6 : f32
    %153 = vector.broadcast %cst_50 : f32 to vector<16x1xf32>
    %154 = arith.addf %150, %153 : vector<16x1xf32>
    %155 = math.rsqrt %154 : vector<16x1xf32>
    %156 = vector.broadcast %155 : vector<16x1xf32> to vector<16x128xf32>
    %157 = arith.mulf %152, %156 : vector<16x128xf32>
    %c0_51 = arith.constant 0 : index
    %c0_52 = arith.constant 0 : index
    %158 = vector.load %arg9[%c0_51, %c0_52] : memref<1x128xf32, #tpu.memory_space<vmem>>, vector<1x128xf32>
    %159 = vector.broadcast %158 : vector<1x128xf32> to vector<16x128xf32>
    %160 = arith.mulf %157, %159 : vector<16x128xf32>
    %c0_53 = arith.constant 0 : index
    %c0_54 = arith.constant 0 : index
    %161 = vector.load %arg10[%c0_53, %c0_54] : memref<1x128xf32, #tpu.memory_space<vmem>>, vector<1x128xf32>
    %162 = vector.broadcast %161 : vector<1x128xf32> to vector<16x128xf32>
    %163 = arith.addf %160, %162 : vector<16x128xf32>
    %164 = arith.truncf %163 : vector<16x128xf32> to vector<16x128xbf16>
    %c0_55 = arith.constant 0 : index
    %c0_56 = arith.constant 0 : index
    %165 = vector.load %arg11[%c0_55, %c0_56] : memref<128x512xbf16, #tpu.memory_space<vmem>>, vector<128x512xbf16>
    %cst_57 = arith.constant dense<0.000000e+00> : vector<16x512xf32>
    %166 = tpu.matmul %164, %165, %cst_57 {dimension_numbers = #tpu.dot_dimension_numbers<[1], [0], [0], [1], [0, 0, 1, 1], [], []>} : vector<16x128xbf16>, vector<128x512xbf16>, vector<16x512xf32> -> vector<16x512xf32>
    %c0_58 = arith.constant 0 : index
    %c0_59 = arith.constant 0 : index
    %167 = vector.load %arg12[%c0_58, %c0_59] : memref<1x512xf32, #tpu.memory_space<vmem>>, vector<1x512xf32>
    %168 = vector.broadcast %167 : vector<1x512xf32> to vector<16x512xf32>
    %169 = arith.addf %166, %168 : vector<16x512xf32>
    %cst_60 = arith.constant 5.000000e-01 : f32
    %170 = vector.broadcast %cst_60 : f32 to vector<16x512xf32>
    %171 = arith.mulf %170, %169 : vector<16x512xf32>
    %cst_61 = arith.constant 4.471500e-02 : f32
    %172 = vector.broadcast %cst_61 : f32 to vector<16x512xf32>
    %173 = arith.mulf %172, %169 : vector<16x512xf32>
    %174 = arith.mulf %173, %169 : vector<16x512xf32>
    %175 = arith.mulf %174, %169 : vector<16x512xf32>
    %176 = arith.addf %169, %175 : vector<16x512xf32>
    %cst_62 = arith.constant 0.797884583 : f32
    %177 = vector.broadcast %cst_62 : f32 to vector<16x512xf32>
    %178 = arith.mulf %177, %176 : vector<16x512xf32>
    %179 = math.tanh %178 : vector<16x512xf32>
    %cst_63 = arith.constant 1.000000e+00 : f32
    %180 = vector.broadcast %cst_63 : f32 to vector<16x512xf32>
    %181 = arith.addf %180, %179 : vector<16x512xf32>
    %182 = arith.mulf %171, %181 : vector<16x512xf32>
    %183 = arith.truncf %182 : vector<16x512xf32> to vector<16x512xbf16>
    %c0_64 = arith.constant 0 : index
    %c0_65 = arith.constant 0 : index
    %184 = vector.load %arg13[%c0_64, %c0_65] : memref<512x128xbf16, #tpu.memory_space<vmem>>, vector<512x128xbf16>
    %cst_66 = arith.constant dense<0.000000e+00> : vector<16x128xf32>
    %185 = tpu.matmul %183, %184, %cst_66 {dimension_numbers = #tpu.dot_dimension_numbers<[1], [0], [0], [1], [0, 0, 1, 1], [], []>} : vector<16x512xbf16>, vector<512x128xbf16>, vector<16x128xf32> -> vector<16x128xf32>
    %186 = arith.addf %139, %185 : vector<16x128xf32>
    %c0_67 = arith.constant 0 : index
    %c0_68 = arith.constant 0 : index
    %187 = vector.load %arg14[%c0_67, %c0_68] : memref<1x128xf32, #tpu.memory_space<vmem>>, vector<1x128xf32>
    %188 = vector.broadcast %187 : vector<1x128xf32> to vector<16x128xf32>
    %189 = arith.addf %186, %188 : vector<16x128xf32>
    %c0_69 = arith.constant 0 : index
    %c0_70 = arith.constant 0 : index
    %c0_71 = arith.constant 0 : index
    %190 = vector.load %arg15[%c0_69, %c0_70, %c0_71] : memref<1x16x128xf32, #tpu.memory_space<vmem>>, vector<1x16x128xf32>
    %191 = vector.shape_cast %190 : vector<1x16x128xf32> to vector<16x128xf32>
    %192 = vector.shape_cast %189 : vector<16x128xf32> to vector<1x16x128xf32>
    tpu.vector_store %arg15[%c0_69, %c0_70, %c0_71], %192 {strides = array<i32>} : memref<1x16x128xf32, #tpu.memory_space<vmem>>, vector<1x16x128xf32>,
    return
  }
  func.func @transform_0(%arg0: i32) -> (i32, i32, i32) {
    %c0_i32 = arith.constant 0 : i32
    %c0_i32_0 = arith.constant 0 : i32
    %c0_i32_1 = arith.constant 0 : i32
    return %arg0, %c0_i32, %c0_i32_0 : i32, i32, i32
  }
  func.func @transform_1(%arg0: i32) -> (i32, i32, i32) {
    %c0_i32 = arith.constant 0 : i32
    %c0_i32_0 = arith.constant 0 : i32
    %c0_i32_1 = arith.constant 0 : i32
    return %arg0, %c0_i32, %c0_i32_0 : i32, i32, i32
  }
  func.func @transform_2(%arg0: i32) -> (i32, i32) {
    %c0_i32 = arith.constant 0 : i32
    %c0_i32_0 = arith.constant 0 : i32
    %c0_i32_1 = arith.constant 0 : i32
    return %c0_i32, %c0_i32_0 : i32, i32
  }
  func.func @transform_3(%arg0: i32) -> (i32, i32) {
    %c0_i32 = arith.constant 0 : i32
    %c0_i32_0 = arith.constant 0 : i32
    %c0_i32_1 = arith.constant 0 : i32
    return %c0_i32, %c0_i32_0 : i32, i32
  }
  func.func @transform_4(%arg0: i32) -> (i32, i32) {
    %c0_i32 = arith.constant 0 : i32
    %c0_i32_0 = arith.constant 0 : i32
    %c0_i32_1 = arith.constant 0 : i32
    return %c0_i32, %c0_i32_0 : i32, i32
  }
  func.func @transform_5(%arg0: i32) -> (i32, i32) {
    %c0_i32 = arith.constant 0 : i32
    %c0_i32_0 = arith.constant 0 : i32
    %c0_i32_1 = arith.constant 0 : i32
    return %c0_i32, %c0_i32_0 : i32, i32
  }
  func.func @transform_6(%arg0: i32) -> (i32, i32) {
    %c0_i32 = arith.constant 0 : i32
    %c0_i32_0 = arith.constant 0 : i32
    %c0_i32_1 = arith.constant 0 : i32
    return %c0_i32, %c0_i32_0 : i32, i32
  }
  func.func @transform_7(%arg0: i32) -> (i32, i32) {
    %c0_i32 = arith.constant 0 : i32
    %c0_i32_0 = arith.constant 0 : i32
    %c0_i32_1 = arith.constant 0 : i32
    return %c0_i32, %c0_i32_0 : i32, i32
  }
  func.func @transform_8(%arg0: i32) -> (i32, i32) {
    %c0_i32 = arith.constant 0 : i32
    %c0_i32_0 = arith.constant 0 : i32
    %c0_i32_1 = arith.constant 0 : i32
    return %c0_i32, %c0_i32_0 : i32, i32
  }
  func.func @transform_9(%arg0: i32) -> (i32, i32) {
    %c0_i32 = arith.constant 0 : i32
    %c0_i32_0 = arith.constant 0 : i32
    %c0_i32_1 = arith.constant 0 : i32
    return %c0_i32, %c0_i32_0 : i32, i32
  }
  func.func @transform_10(%arg0: i32) -> (i32, i32) {
    %c0_i32 = arith.constant 0 : i32
    %c0_i32_0 = arith.constant 0 : i32
    %c0_i32_1 = arith.constant 0 : i32
    return %c0_i32, %c0_i32_0 : i32, i32
  }
  func.func @transform_11(%arg0: i32) -> (i32, i32) {
    %c0_i32 = arith.constant 0 : i32
    %c0_i32_0 = arith.constant 0 : i32
    %c0_i32_1 = arith.constant 0 : i32
    return %c0_i32, %c0_i32_0 : i32, i32
  }
  func.func @transform_12(%arg0: i32) -> (i32, i32) {
    %c0_i32 = arith.constant 0 : i32
    %c0_i32_0 = arith.constant 0 : i32
    %c0_i32_1 = arith.constant 0 : i32
    return %c0_i32, %c0_i32_0 : i32, i32
  }
  func.func @transform_13(%arg0: i32) -> (i32, i32) {
    %c0_i32 = arith.constant 0 : i32
    %c0_i32_0 = arith.constant 0 : i32
    %c0_i32_1 = arith.constant 0 : i32
    return %c0_i32, %c0_i32_0 : i32, i32
  }
  func.func @transform_14(%arg0: i32) -> (i32, i32, i32) {
    %c0_i32 = arith.constant 0 : i32
    %c0_i32_0 = arith.constant 0 : i32
    %c0_i32_1 = arith.constant 0 : i32
    return %arg0, %c0_i32, %c0_i32_0 : i32, i32, i32
  }
}

module attributes {stable_mosaic.version = 11 : i64} {
  func.func @_lnf_lmhead_ce_kernel(%arg0: i32, %arg1: i32, %arg2: memref<32x128xf32, #tpu.memory_space<vmem>>, %arg3: memref<1x128xf32, #tpu.memory_space<vmem>>, %arg4: memref<1x128xf32, #tpu.memory_space<vmem>>, %arg5: memref<256x128xbf16, #tpu.memory_space<vmem>>, %arg6: memref<32x1xi32, #tpu.memory_space<vmem>>, %arg7: memref<1x1xf32, #tpu.memory_space<vmem>>, %arg8: memref<32x128xbf16, #tpu.memory_space<vmem>>, %arg9: memref<32x1xf32, #tpu.memory_space<vmem>>, %arg10: memref<32x1xf32, #tpu.memory_space<vmem>>, %arg11: memref<32x1xf32, #tpu.memory_space<vmem>>, %arg12: memref<1x1xf32, #tpu.memory_space<vmem>>, %arg13: memref<1x1xf32, #tpu.memory_space<vmem>>) attributes {dimension_semantics = [#tpu.dimension_semantics<arbitrary>, #tpu.dimension_semantics<arbitrary>], iteration_bounds = array<i64: 1, 1>, scalar_prefetch = 0 : i64, scratch_operands = 6 : i64, tpu.core_type = #tpu.core_type<tc>, window_params = [{transform_indices = @transform_0, window_bounds = array<i64: 32, 128>}, {pipeline_mode = #tpu.pipeline_mode<synchronous>, transform_indices = @transform_1, window_bounds = array<i64: 1, 128>}, {pipeline_mode = #tpu.pipeline_mode<synchronous>, transform_indices = @transform_2, window_bounds = array<i64: 1, 128>}, {transform_indices = @transform_3, window_bounds = array<i64: 256, 128>}, {transform_indices = @transform_4, window_bounds = array<i64: 32, 1>}, {pipeline_mode = #tpu.pipeline_mode<synchronous>, transform_indices = @transform_5, window_bounds = array<i64: 1, 1>}]} {
    %c0_i32 = arith.constant 0 : i32
    %0 = arith.cmpi eq, %arg0, %c0_i32 : i32
    %c0_i32_0 = arith.constant 0 : i32
    %1 = arith.cmpi eq, %arg1, %c0_i32_0 : i32
    %2 = arith.andi %0, %1 : i1
    %3 = arith.extui %2 : i1 to i32
    %c0_i32_1 = arith.constant 0 : i32
    %4 = arith.cmpi ne, %3, %c0_i32_1 : i32
    scf.if %4 {
      %cst_34 = arith.constant 0.000000e+00 : f32
      %54 = vector.broadcast %cst_34 : f32 to vector<1x1xf32>
      %c0_35 = arith.constant 0 : index
      %c0_36 = arith.constant 0 : index
      %55 = vector.load %arg12[%c0_35, %c0_36] : memref<1x1xf32, #tpu.memory_space<vmem>>, vector<1x1xf32>
      tpu.vector_store %arg12[%c0_35, %c0_36], %54 {strides = array<i32>} : memref<1x1xf32, #tpu.memory_space<vmem>>, vector<1x1xf32>,
      %cst_37 = arith.constant 0.000000e+00 : f32
      %56 = vector.broadcast %cst_37 : f32 to vector<1x1xf32>
      %c0_38 = arith.constant 0 : index
      %c0_39 = arith.constant 0 : index
      %57 = vector.load %arg13[%c0_38, %c0_39] : memref<1x1xf32, #tpu.memory_space<vmem>>, vector<1x1xf32>
      tpu.vector_store %arg13[%c0_38, %c0_39], %56 {strides = array<i32>} : memref<1x1xf32, #tpu.memory_space<vmem>>, vector<1x1xf32>,
    } else {
    }
    %c0_i32_2 = arith.constant 0 : i32
    %5 = arith.cmpi eq, %arg1, %c0_i32_2 : i32
    %6 = arith.extui %5 : i1 to i32
    %c0_i32_3 = arith.constant 0 : i32
    %7 = arith.cmpi ne, %6, %c0_i32_3 : i32
    scf.if %7 {
      %c0_34 = arith.constant 0 : index
      %c0_35 = arith.constant 0 : index
      %54 = vector.load %arg2[%c0_34, %c0_35] : memref<32x128xf32, #tpu.memory_space<vmem>>, vector<32x128xf32>
      %cst_36 = arith.constant dense<0.000000e+00> : vector<32xf32>
      %55 = vector.multi_reduction <add>, %54, %cst_36 [1] : vector<32x128xf32> to vector<32xf32>
      %56 = vector.shape_cast %55 : vector<32xf32> to vector<32x1xf32>
      %cst_37 = arith.constant 1.280000e+02 : f32
      %57 = vector.broadcast %cst_37 : f32 to vector<32x1xf32>
      %58 = arith.divf %56, %57 : vector<32x1xf32>
      %59 = vector.broadcast %58 : vector<32x1xf32> to vector<32x128xf32>
      %60 = arith.subf %54, %59 : vector<32x128xf32>
      %61 = arith.mulf %60, %60 : vector<32x128xf32>
      %cst_38 = arith.constant dense<0.000000e+00> : vector<32xf32>
      %62 = vector.multi_reduction <add>, %61, %cst_38 [1] : vector<32x128xf32> to vector<32xf32>
      %63 = vector.shape_cast %62 : vector<32xf32> to vector<32x1xf32>
      %cst_39 = arith.constant 1.280000e+02 : f32
      %64 = vector.broadcast %cst_39 : f32 to vector<32x1xf32>
      %65 = arith.divf %63, %64 : vector<32x1xf32>
      %66 = vector.broadcast %58 : vector<32x1xf32> to vector<32x128xf32>
      %67 = arith.subf %54, %66 : vector<32x128xf32>
      %cst_40 = arith.constant 9.99999974E-6 : f32
      %68 = vector.broadcast %cst_40 : f32 to vector<32x1xf32>
      %69 = arith.addf %65, %68 : vector<32x1xf32>
      %70 = math.rsqrt %69 : vector<32x1xf32>
      %71 = vector.broadcast %70 : vector<32x1xf32> to vector<32x128xf32>
      %72 = arith.mulf %67, %71 : vector<32x128xf32>
      %c0_41 = arith.constant 0 : index
      %c0_42 = arith.constant 0 : index
      %73 = vector.load %arg3[%c0_41, %c0_42] : memref<1x128xf32, #tpu.memory_space<vmem>>, vector<1x128xf32>
      %74 = vector.broadcast %73 : vector<1x128xf32> to vector<32x128xf32>
      %75 = arith.mulf %72, %74 : vector<32x128xf32>
      %c0_43 = arith.constant 0 : index
      %c0_44 = arith.constant 0 : index
      %76 = vector.load %arg4[%c0_43, %c0_44] : memref<1x128xf32, #tpu.memory_space<vmem>>, vector<1x128xf32>
      %77 = vector.broadcast %76 : vector<1x128xf32> to vector<32x128xf32>
      %78 = arith.addf %75, %77 : vector<32x128xf32>
      %79 = arith.truncf %78 : vector<32x128xf32> to vector<32x128xbf16>
      %c0_45 = arith.constant 0 : index
      %c0_46 = arith.constant 0 : index
      %80 = vector.load %arg8[%c0_45, %c0_46] : memref<32x128xbf16, #tpu.memory_space<vmem>>, vector<32x128xbf16>
      tpu.vector_store %arg8[%c0_45, %c0_46], %79 {strides = array<i32>} : memref<32x128xbf16, #tpu.memory_space<vmem>>, vector<32x128xbf16>,
      %cst_47 = arith.constant -1.000000e+30 : f32
      %81 = vector.broadcast %cst_47 : f32 to vector<32x1xf32>
      %c0_48 = arith.constant 0 : index
      %c0_49 = arith.constant 0 : index
      %82 = vector.load %arg9[%c0_48, %c0_49] : memref<32x1xf32, #tpu.memory_space<vmem>>, vector<32x1xf32>
      tpu.vector_store %arg9[%c0_48, %c0_49], %81 {strides = array<i32>} : memref<32x1xf32, #tpu.memory_space<vmem>>, vector<32x1xf32>,
      %cst_50 = arith.constant 0.000000e+00 : f32
      %83 = vector.broadcast %cst_50 : f32 to vector<32x1xf32>
      %c0_51 = arith.constant 0 : index
      %c0_52 = arith.constant 0 : index
      %84 = vector.load %arg10[%c0_51, %c0_52] : memref<32x1xf32, #tpu.memory_space<vmem>>, vector<32x1xf32>
      tpu.vector_store %arg10[%c0_51, %c0_52], %83 {strides = array<i32>} : memref<32x1xf32, #tpu.memory_space<vmem>>, vector<32x1xf32>,
      %cst_53 = arith.constant 0.000000e+00 : f32
      %85 = vector.broadcast %cst_53 : f32 to vector<32x1xf32>
      %c0_54 = arith.constant 0 : index
      %c0_55 = arith.constant 0 : index
      %86 = vector.load %arg11[%c0_54, %c0_55] : memref<32x1xf32, #tpu.memory_space<vmem>>, vector<32x1xf32>
      tpu.vector_store %arg11[%c0_54, %c0_55], %85 {strides = array<i32>} : memref<32x1xf32, #tpu.memory_space<vmem>>, vector<32x1xf32>,
    } else {
    }
    %c0 = arith.constant 0 : index
    %c0_4 = arith.constant 0 : index
    %8 = vector.load %arg8[%c0, %c0_4] : memref<32x128xbf16, #tpu.memory_space<vmem>>, vector<32x128xbf16>
    %c0_5 = arith.constant 0 : index
    %c0_6 = arith.constant 0 : index
    %9 = vector.load %arg5[%c0_5, %c0_6] : memref<256x128xbf16, #tpu.memory_space<vmem>>, vector<256x128xbf16>
    %cst = arith.constant dense<0.000000e+00> : vector<32x256xf32>
    %10 = tpu.matmul %8, %9, %cst {dimension_numbers = #tpu.dot_dimension_numbers<[1], [1], [0], [0], [0, 0, 1, 0], [], []>} : vector<32x128xbf16>, vector<256x128xbf16>, vector<32x256xf32> -> vector<32x256xf32>
    %c0_7 = arith.constant 0 : index
    %c0_8 = arith.constant 0 : index
    %11 = vector.load %arg6[%c0_7, %c0_8] : memref<32x1xi32, #tpu.memory_space<vmem>>, vector<32x1xi32>
    %c256_i32 = arith.constant 256 : i32
    %12 = arith.muli %arg1, %c256_i32 : i32
    %13 = tpu.iota {dimensions = array<i32: 1>} : vector<32x256xi32>
    %14 = vector.broadcast %12 : i32 to vector<32x256xi32>
    %15 = arith.addi %14, %13 : vector<32x256xi32>
    %c256_i32_9 = arith.constant 256 : i32
    %16 = vector.broadcast %c256_i32_9 : i32 to vector<32x256xi32>
    %17 = arith.cmpi slt, %15, %16 : vector<32x256xi32>
    %cst_10 = arith.constant -1.000000e+30 : f32
    %18 = vector.broadcast %cst_10 : f32 to vector<32x256xf32>
    %19 = arith.select %17, %10, %18 : vector<32x256xi1>, vector<32x256xf32>
    %c0_11 = arith.constant 0 : index
    %c0_12 = arith.constant 0 : index
    %20 = vector.load %arg11[%c0_11, %c0_12] : memref<32x1xf32, #tpu.memory_space<vmem>>, vector<32x1xf32>
    %21 = vector.broadcast %11 : vector<32x1xi32> to vector<32x256xi32>
    %22 = arith.cmpi eq, %15, %21 : vector<32x256xi32>
    %cst_13 = arith.constant 0.000000e+00 : f32
    %23 = vector.broadcast %cst_13 : f32 to vector<32x256xf32>
    %24 = arith.select %22, %19, %23 : vector<32x256xi1>, vector<32x256xf32>
    %cst_14 = arith.constant dense<0.000000e+00> : vector<32xf32>
    %25 = vector.multi_reduction <add>, %24, %cst_14 [1] : vector<32x256xf32> to vector<32xf32>
    %26 = vector.shape_cast %25 : vector<32xf32> to vector<32x1xf32>
    %27 = arith.addf %20, %26 : vector<32x1xf32>
    %c0_15 = arith.constant 0 : index
    %c0_16 = arith.constant 0 : index
    %28 = vector.load %arg11[%c0_15, %c0_16] : memref<32x1xf32, #tpu.memory_space<vmem>>, vector<32x1xf32>
    tpu.vector_store %arg11[%c0_15, %c0_16], %27 {strides = array<i32>} : memref<32x1xf32, #tpu.memory_space<vmem>>, vector<32x1xf32>,
    %c0_17 = arith.constant 0 : index
    %c0_18 = arith.constant 0 : index
    %29 = vector.load %arg9[%c0_17, %c0_18] : memref<32x1xf32, #tpu.memory_space<vmem>>, vector<32x1xf32>
    %cst_19 = arith.constant dense<0xFF800000> : vector<32xf32>
    %30 = vector.multi_reduction <maximumf>, %19, %cst_19 [1] : vector<32x256xf32> to vector<32xf32>
    %31 = vector.shape_cast %30 : vector<32xf32> to vector<32x1xf32>
    %32 = arith.maximumf %29, %31 : vector<32x1xf32>
    %c0_20 = arith.constant 0 : index
    %c0_21 = arith.constant 0 : index
    %33 = vector.load %arg10[%c0_20, %c0_21] : memref<32x1xf32, #tpu.memory_space<vmem>>, vector<32x1xf32>
    %c0_22 = arith.constant 0 : index
    %c0_23 = arith.constant 0 : index
    %34 = vector.load %arg9[%c0_22, %c0_23] : memref<32x1xf32, #tpu.memory_space<vmem>>, vector<32x1xf32>
    %35 = arith.subf %34, %32 : vector<32x1xf32>
    %36 = math.exp %35 : vector<32x1xf32>
    %37 = arith.mulf %33, %36 : vector<32x1xf32>
    %38 = vector.broadcast %32 : vector<32x1xf32> to vector<32x256xf32>
    %39 = arith.subf %19, %38 : vector<32x256xf32>
    %40 = math.exp %39 : vector<32x256xf32>
    %cst_24 = arith.constant dense<0.000000e+00> : vector<32xf32>
    %41 = vector.multi_reduction <add>, %40, %cst_24 [1] : vector<32x256xf32> to vector<32xf32>
    %42 = vector.shape_cast %41 : vector<32xf32> to vector<32x1xf32>
    %43 = arith.addf %37, %42 : vector<32x1xf32>
    %c0_25 = arith.constant 0 : index
    %c0_26 = arith.constant 0 : index
    %44 = vector.load %arg10[%c0_25, %c0_26] : memref<32x1xf32, #tpu.memory_space<vmem>>, vector<32x1xf32>
    tpu.vector_store %arg10[%c0_25, %c0_26], %43 {strides = array<i32>} : memref<32x1xf32, #tpu.memory_space<vmem>>, vector<32x1xf32>,
    %c0_27 = arith.constant 0 : index
    %c0_28 = arith.constant 0 : index
    %45 = vector.load %arg9[%c0_27, %c0_28] : memref<32x1xf32, #tpu.memory_space<vmem>>, vector<32x1xf32>
    tpu.vector_store %arg9[%c0_27, %c0_28], %32 {strides = array<i32>} : memref<32x1xf32, #tpu.memory_space<vmem>>, vector<32x1xf32>,
    %c0_i32_29 = arith.constant 0 : i32
    %46 = arith.cmpi eq, %arg1, %c0_i32_29 : i32
    %47 = arith.extui %46 : i1 to i32
    %c0_i32_30 = arith.constant 0 : i32
    %48 = arith.cmpi ne, %47, %c0_i32_30 : i32
    scf.if %48 {
      %c0_34 = arith.constant 0 : index
      %c0_35 = arith.constant 0 : index
      %54 = vector.load %arg9[%c0_34, %c0_35] : memref<32x1xf32, #tpu.memory_space<vmem>>, vector<32x1xf32>
      %c0_36 = arith.constant 0 : index
      %c0_37 = arith.constant 0 : index
      %55 = vector.load %arg10[%c0_36, %c0_37] : memref<32x1xf32, #tpu.memory_space<vmem>>, vector<32x1xf32>
      %56 = math.log %55 : vector<32x1xf32>
      %57 = arith.addf %54, %56 : vector<32x1xf32>
      %c0_i32_38 = arith.constant 0 : i32
      %58 = vector.broadcast %c0_i32_38 : i32 to vector<32x1xi32>
      %59 = arith.cmpi sge, %11, %58 : vector<32x1xi32>
      %c0_39 = arith.constant 0 : index
      %c0_40 = arith.constant 0 : index
      %60 = vector.load %arg11[%c0_39, %c0_40] : memref<32x1xf32, #tpu.memory_space<vmem>>, vector<32x1xf32>
      %61 = arith.subf %57, %60 : vector<32x1xf32>
      %cst_41 = arith.constant 0.000000e+00 : f32
      %62 = vector.broadcast %cst_41 : f32 to vector<32x1xf32>
      %63 = arith.select %59, %61, %62 : vector<32x1xi1>, vector<32x1xf32>
      %c0_42 = arith.constant 0 : index
      %c0_43 = arith.constant 0 : index
      %64 = vector.load %arg12[%c0_42, %c0_43] : memref<1x1xf32, #tpu.memory_space<vmem>>, vector<1x1xf32>
      %cst_44 = arith.constant dense<0.000000e+00> : vector<1xf32>
      %65 = vector.multi_reduction <add>, %63, %cst_44 [0] : vector<32x1xf32> to vector<1xf32>
      %66 = vector.shape_cast %65 : vector<1xf32> to vector<1x1xf32>
      %67 = arith.addf %64, %66 : vector<1x1xf32>
      %c0_45 = arith.constant 0 : index
      %c0_46 = arith.constant 0 : index
      %68 = vector.load %arg12[%c0_45, %c0_46] : memref<1x1xf32, #tpu.memory_space<vmem>>, vector<1x1xf32>
      tpu.vector_store %arg12[%c0_45, %c0_46], %67 {strides = array<i32>} : memref<1x1xf32, #tpu.memory_space<vmem>>, vector<1x1xf32>,
      %c0_47 = arith.constant 0 : index
      %c0_48 = arith.constant 0 : index
      %69 = vector.load %arg13[%c0_47, %c0_48] : memref<1x1xf32, #tpu.memory_space<vmem>>, vector<1x1xf32>
      %70 = arith.extui %59 : vector<32x1xi1> to vector<32x1xi32>
      %71 = arith.sitofp %70 : vector<32x1xi32> to vector<32x1xf32>
      %cst_49 = arith.constant dense<0.000000e+00> : vector<1xf32>
      %72 = vector.multi_reduction <add>, %71, %cst_49 [0] : vector<32x1xf32> to vector<1xf32>
      %73 = vector.shape_cast %72 : vector<1xf32> to vector<1x1xf32>
      %74 = arith.addf %69, %73 : vector<1x1xf32>
      %c0_50 = arith.constant 0 : index
      %c0_51 = arith.constant 0 : index
      %75 = vector.load %arg13[%c0_50, %c0_51] : memref<1x1xf32, #tpu.memory_space<vmem>>, vector<1x1xf32>
      tpu.vector_store %arg13[%c0_50, %c0_51], %74 {strides = array<i32>} : memref<1x1xf32, #tpu.memory_space<vmem>>, vector<1x1xf32>,
    } else {
    }
    %c0_i32_31 = arith.constant 0 : i32
    %49 = arith.cmpi eq, %arg0, %c0_i32_31 : i32
    %c0_i32_32 = arith.constant 0 : i32
    %50 = arith.cmpi eq, %arg1, %c0_i32_32 : i32
    %51 = arith.andi %49, %50 : i1
    %52 = arith.extui %51 : i1 to i32
    %c0_i32_33 = arith.constant 0 : i32
    %53 = arith.cmpi ne, %52, %c0_i32_33 : i32
    scf.if %53 {
      %c0_34 = arith.constant 0 : index
      %c0_35 = arith.constant 0 : index
      %54 = vector.load %arg12[%c0_34, %c0_35] : memref<1x1xf32, #tpu.memory_space<vmem>>, vector<1x1xf32>
      %c0_36 = arith.constant 0 : index
      %c0_37 = arith.constant 0 : index
      %55 = vector.load %arg13[%c0_36, %c0_37] : memref<1x1xf32, #tpu.memory_space<vmem>>, vector<1x1xf32>
      %cst_38 = arith.constant 1.000000e+00 : f32
      %56 = vector.broadcast %cst_38 : f32 to vector<1x1xf32>
      %57 = arith.maximumf %55, %56 : vector<1x1xf32>
      %58 = arith.divf %54, %57 : vector<1x1xf32>
      %c0_39 = arith.constant 0 : index
      %c0_40 = arith.constant 0 : index
      %59 = vector.load %arg7[%c0_39, %c0_40] : memref<1x1xf32, #tpu.memory_space<vmem>>, vector<1x1xf32>
      tpu.vector_store %arg7[%c0_39, %c0_40], %58 {strides = array<i32>} : memref<1x1xf32, #tpu.memory_space<vmem>>, vector<1x1xf32>,
    } else {
    }
    return
  }
  func.func @transform_0(%arg0: i32, %arg1: i32) -> (i32, i32) {
    %c0_i32 = arith.constant 0 : i32
    %c0_i32_0 = arith.constant 0 : i32
    return %arg0, %c0_i32 : i32, i32
  }
  func.func @transform_1(%arg0: i32, %arg1: i32) -> (i32, i32) {
    %c0_i32 = arith.constant 0 : i32
    %c0_i32_0 = arith.constant 0 : i32
    %c0_i32_1 = arith.constant 0 : i32
    return %c0_i32, %c0_i32_0 : i32, i32
  }
  func.func @transform_2(%arg0: i32, %arg1: i32) -> (i32, i32) {
    %c0_i32 = arith.constant 0 : i32
    %c0_i32_0 = arith.constant 0 : i32
    %c0_i32_1 = arith.constant 0 : i32
    return %c0_i32, %c0_i32_0 : i32, i32
  }
  func.func @transform_3(%arg0: i32, %arg1: i32) -> (i32, i32) {
    %c0_i32 = arith.constant 0 : i32
    %c0_i32_0 = arith.constant 0 : i32
    return %arg1, %c0_i32 : i32, i32
  }
  func.func @transform_4(%arg0: i32, %arg1: i32) -> (i32, i32) {
    %c0_i32 = arith.constant 0 : i32
    %c0_i32_0 = arith.constant 0 : i32
    return %arg0, %c0_i32 : i32, i32
  }
  func.func @transform_5(%arg0: i32, %arg1: i32) -> (i32, i32) {
    %c0_i32 = arith.constant 0 : i32
    %c0_i32_0 = arith.constant 0 : i32
    %c0_i32_1 = arith.constant 0 : i32
    return %c0_i32, %c0_i32_0 : i32, i32
  }
}

</mosaic_0001>

<bundles_post_ra>
// kernel: caption_decoder_forward.5
= control target key start
LH: loop header
LB: loop body
LE: loop exit
PB: predicated region body
PF: predicated region fallthrough
CT: control target
= control target key end

     0   :  { %s1088_s0 = inlined_call_operand.vmem [shape: f32[32,128], index: 0, kind: input, shape index: {}]   ;;  %s1089_s1 = inlined_call_operand.vmem [shape: f32[1,128], index: 1, kind: input, shape index: {}]   ;;  %s1090_s2 = inlined_call_operand.vmem [shape: f32[1,128], index: 2, kind: input, shape index: {}]   ;;  %s1091_s3 = inlined_call_operand.vmem [shape: bf16[256,128], index: 3, kind: input, shape index: {}]   ;;  %s1092_s4 = inlined_call_operand.vmem [shape: s32[32,1], index: 4, kind: input, shape index: {}]   ;;  %s1093_s5 = inlined_call_operand.hbm [shape: f32[1,1], index: 5, kind: output, shape index: {}]  }
   0x1   :  { %v34_v0 = vld [vmem:[%s1088_s0] sm:$0xff]  ;;  %v36_v1 = vld [vmem:[%s1088_s0 + $0x10] sm:$0xff]  ;;  %v35_v2 = vld [vmem:[%s1088_s0 + $0x8] sm:$0xff] }
   0x2   :  { %38 = vadd.xlane.f32.xlu0 %v34_v0  ;;  %42 = vadd.xlane.f32.xlu1 %v36_v1  ;;  %v37_v3 = vld [vmem:[%s1088_s0 + $0x18] sm:$0xff] }
   0x6   :  { %40 = vadd.xlane.f32.xlu0 %v35_v2  ;;  %44 = vadd.xlane.f32.xlu1 %v37_v3 }
   0x7   :  { %10 = vsyncpa [#allocation9], 0  ;;  %v705_v4 = vld [vmem:[%s1091_s3 + $0x78] sm:$0xff]   ;;  %v707_v6 = vld [vmem:[%s1091_s3 + $0x70] sm:$0xff]   ;;  %vm125_vm0 = vcmask 7168   ;;  %vm28_vm13 = vcmask 0  }
   0x8   :  { %v706_v5 = vld [vmem:[%s1091_s3 + $0x38] sm:$0xff]   ;;  %663 = vmatprep.subr.bf16.mxu0 %v705_v4  ;;  %683 = vmatprep.subr.bf16.mxu1 %v705_v4  ;;  %v708_v7 = vld [vmem:[%s1091_s3 + $0x30] sm:$0xff]   ;;  %v709_v8 = vld [vmem:[%s1091_s3 + $0x68] sm:$0xff]  }
   0x9   :  { %664 = vmatpush3.bf16.xpose.msra.mxu0 %v706_v5  ;;  %691 = vmatpush3.bf16.xpose.msra.mxu1 %v706_v5  ;;  %v710_v9 = vld [vmem:[%s1091_s3 + $0x28] sm:$0xff]   ;;  %v711_v26 = vld [vmem:[%s1091_s3 + $0x60] sm:$0xff]   ;;  %v713_v28 = vld [vmem:[%s1091_s3 + $0x58] sm:$0xff]  }
   0xa   :  { %665 = vmatprep.subr.bf16.mxu0 %v707_v6  ;;  %684 = vmatprep.subr.bf16.mxu1 %v707_v6  ;;  %v712_v27 = vld [vmem:[%s1091_s3 + $0x20] sm:$0xff]   ;;  %v714_v29 = vld [vmem:[%s1091_s3 + $0x18] sm:$0xff]   ;;  %v715_v30 = vld [vmem:[%s1091_s3 + $0x50] sm:$0xff]   ;;  %v787_v6 = vmov -1e+30  }
   0xb   :  { %v716_v31 = vld [vmem:[%s1091_s3 + $0x10] sm:$0xff]   ;;  %v717_v32 = vld [vmem:[%s1091_s3 + $0x48] sm:$0xff]   ;;  %v719_v34 = vld [vmem:[%s1091_s3 + $0x40] sm:$0xff]   ;;  %126 = vst.msk [vmem:[#allocation3] sm:$0xff] %vm125_vm0, %v787_v6 }
   0xc   :  { %v718_v33 = vld [vmem:[%s1091_s3 + $0x8] sm:$0xff]   ;;  %v720_v35 = vld [vmem:[%s1091_s3] sm:$0xff]   ;;  %127 = vst.msk [vmem:[#allocation3 + $0x8] sm:$0xff] %vm125_vm0, %v787_v6  ;;  %128 = vst.msk [vmem:[#allocation3 + $0x10] sm:$0xff] %vm125_vm0, %v787_v6 }
   0xd   :  { %v620_v50 = vld [vmem:[%s1089_s1] ss:$0 sm:$0xff]  ;;  %129 = vst.msk [vmem:[#allocation3 + $0x18] sm:$0xff] %vm125_vm0, %v787_v6 }
   0xe   :  { %v621_v55 = vld [vmem:[%s1090_s2] ss:$0 sm:$0xff] }
  0x11   :  { %666 = vmatpush3.bf16.xpose.msra.mxu0 %v708_v7  ;;  %692 = vmatpush3.bf16.xpose.msra.mxu1 %v708_v7 }
  0x12   :  { %667 = vmatprep.subr.bf16.mxu0 %v709_v8  ;;  %685 = vmatprep.subr.bf16.mxu1 %v709_v8 }
  0x19   :  { %668 = vmatpush3.bf16.xpose.msra.mxu0 %v710_v9  ;;  %693 = vmatpush3.bf16.xpose.msra.mxu1 %v710_v9 }
  0x1a   :  { %669 = vmatprep.subr.bf16.mxu0 %v711_v26  ;;  %686 = vmatprep.subr.bf16.mxu1 %v711_v26 }
  0x21   :  { %670 = vmatpush3.bf16.xpose.msra.mxu0 %v712_v27  ;;  %694 = vmatpush3.bf16.xpose.msra.mxu1 %v712_v27 }
  0x22   :  { %671 = vmatprep.subr.bf16.mxu0 %v713_v28  ;;  %687 = vmatprep.subr.bf16.mxu1 %v713_v28 }
  0x29   :  { %672 = vmatpush3.bf16.xpose.msra.mxu0 %v714_v29  ;;  %695 = vmatpush3.bf16.xpose.msra.mxu1 %v714_v29 }
  0x2a   :  { %673 = vmatprep.subr.bf16.mxu0 %v715_v30  ;;  %688 = vmatprep.subr.bf16.mxu1 %v715_v30 }
  0x31   :  { %674 = vmatpush3.bf16.xpose.msra.mxu0 %v716_v31  ;;  %696 = vmatpush3.bf16.xpose.msra.mxu1 %v716_v31  ;;  %v966_v31 = vld [vmem:[#allocation3 + $0x18] sm:$0xff] }
  0x32   :  { %675 = vmatprep.subr.bf16.mxu0 %v717_v32  ;;  %689 = vmatprep.subr.bf16.mxu1 %v717_v32 }
  0x39   :  { %676 = vmatpush3.bf16.xpose.msra.mxu0 %v718_v33  ;;  %697 = vmatpush3.bf16.xpose.msra.mxu1 %v718_v33 }
  0x3a   :  { %677 = vmatprep.subr.bf16.mxu0 %v719_v34  ;;  %690 = vmatprep.subr.bf16.mxu1 %v719_v34 }
  0x41   :  { %678 = vmatpush3.bf16.xpose.msra.mxu0 %v720_v35  ;;  %698 = vmatpush3.bf16.xpose.msra.mxu1 %v720_v35 }
  0x8b   :  { %v39_v10 = vpop.xlane.xlu0 %38  ;;  %v43_v11 = vpop.xlane.xlu1 %42 }
  0x8c   :  { %v47_v12 = vmul.f32 0.0078125, %v39_v10  ;;  %v49_v13 = vmul.f32 0.0078125, %v43_v11 }
  0x8e   :  { %v851_v14 = vsub.f32 %v34_v0, %v47_v12  ;;  %v853_v15 = vsub.f32 %v36_v1, %v49_v13 }
  0x8f   :  { %v41_v16 = vpop.xlane.xlu0 %40  ;;  %v45_v17 = vpop.xlane.xlu1 %44 }
  0x90   :  { %v48_v18 = vmul.f32 0.0078125, %v41_v16  ;;  %v55_v19 = vmul.f32 %v851_v14, %v851_v14  ;;  %v50_v20 = vmul.f32 0.0078125, %v45_v17  ;;  %v57_v23 = vmul.f32 %v853_v15, %v853_v15 }
  0x92   :  { %v52_v21 = vsub.f32 %v35_v2, %v48_v18  ;;  %59 = vadd.xlane.f32.xlu0 %v55_v19  ;;  %v857_v22 = vsub.f32 %v37_v3, %v50_v20  ;;  %v788_v19 = vmov 0   ;;  %v789_v20 = vmov 0.0  }
  0x93   :  { %703 = vset.pattern.permute.xlu0 %v788_v19  ;;  %704 = vset.pattern.permute.xlu1 %v788_v19  ;;  %130 = vst.msk [vmem:[#allocation4] sm:$0xff] %vm125_vm0, %v789_v20  ;;  %131 = vst.msk [vmem:[#allocation4 + $0x8] sm:$0xff] %vm125_vm0, %v789_v20 }
  0x94   :  { %v56_v24 = vmul.f32 %v52_v21, %v52_v21  ;;  %v58_v25 = vmul.f32 %v857_v22, %v857_v22  ;;  %132 = vst.msk [vmem:[#allocation4 + $0x10] sm:$0xff] %vm125_vm0, %v789_v20  ;;  %133 = vst.msk [vmem:[#allocation4 + $0x18] sm:$0xff] %vm125_vm0, %v789_v20 }
  0x95   :  { %134 = vst.msk [vmem:[#allocation5] sm:$0xff] %vm125_vm0, %v789_v20  ;;  %135 = vst.msk [vmem:[#allocation5 + $0x8] sm:$0xff] %vm125_vm0, %v789_v20 }
  0x96   :  { %63 = vadd.xlane.f32.xlu0 %v57_v23  ;;  %61 = vadd.xlane.f32.xlu1 %v56_v24  ;;  %136 = vst.msk [vmem:[#allocation5 + $0x10] sm:$0xff] %vm125_vm0, %v789_v20  ;;  %137 = vst.msk [vmem:[#allocation5 + $0x18] sm:$0xff] %vm125_vm0, %v789_v20  ;;  %v951_v24 = vld [vmem:[#allocation3 + $0x8] sm:$0xff] }
  0x97   :  { %29 = vst.msk [vmem:[#allocation6] sm:$0x1] %vm28_vm13, %v789_v20  ;;  %30 = vst.msk [vmem:[#allocation7] sm:$0x1] %vm28_vm13, %v789_v20 }
  0x9a   :  { %65 = vadd.xlane.f32.xlu1 %v58_v25  ;;  %v953_v25 = vld [vmem:[#allocation3 + $0x10] sm:$0xff] }
 0x11b   :  { %v60_v36 = vpop.xlane.xlu0 %59 }
 0x11c   :  { %v67_v37 = vmul.f32 0.0078125, %v60_v36 }
 0x11e   :  { %v71_v38 = vadd.f32 1e-05, %v67_v37  ;;  %v989_v37 = vld [vmem:[%s1092_s4] sm:$0xff] }
 0x11f   :  { %v62_v39 = vpop.xlane.xlu1 %61  ;;  %v64_v40 = vpop.xlane.xlu0 %63  ;;  %vm540_vm5 = vcmp.ge.s32.totalorder %v989_v37, 0 }
 0x120   :  { %723 = vrsqrt.f32 %v71_v38  ;;  %v68_v41 = vmul.f32 0.0078125, %v62_v39  ;;  %v69_v42 = vmul.f32 0.0078125, %v64_v40  ;;  %v995_v38 = vld [vmem:[%s1092_s4 + $0x8] sm:$0xff]  ;;  %v1001_v39 = vld [vmem:[%s1092_s4 + $0x10] sm:$0xff]  ;;  %v1007_v40 = vld [vmem:[%s1092_s4 + $0x18] sm:$0xff]  ;;  %s790_s4 = smov [#allocation8]  }
 0x121   :  { %vm541_vm6 = vcmp.ge.s32.totalorder %v995_v38, 0  ;;  %vm542_vm11 = vcmp.ge.s32.totalorder %v1001_v39, 0  ;;  %vm543_vm12 = vcmp.ge.s32.totalorder %v1007_v40, 0  ;;  %s612_s15 = sshll.u32 %s790_s4, 4  ;;  %s613_s15 = int_to_ptr.vmem [resolvable:$true] %s612_s15 }
 0x122   :  { %v72_v43 = vadd.f32 1e-05, %v68_v41  ;;  %v73_v44 = vadd.f32 1e-05, %v69_v42  ;;  %s765_s16 = scalar_lea.vmem %s613_s15, 16  ;;  %s769_s17 = scalar_lea.vmem %s613_s15, 32 }
 0x123   :  { %v66_v45 = vpop.xlane.xlu1 %65  ;;  %p766_p0 = scmp.ne.s32.totalorder %s613_s15, %s765_s16  ;;  %p770_p1 = scmp.lt.s32.totalorder %s613_s15, %s613_s15 }
 0x124   :  { %725 = vrsqrt.f32 %v72_v43  ;;  %v70_v46 = vmul.f32 0.0078125, %v66_v45  ;;  %p771_p2 = scmp.lt.s32.totalorder %s769_s17, %s765_s16 }
 0x125   :  { %727 = vrsqrt.f32 %v73_v44 }
 0x126   :  { %v74_v47 = vadd.f32 1e-05, %v70_v46  ;;  %p772_p3 = por %p771_p2, %p770_p1 }
 0x128   :  { %729 = vrsqrt.f32 %v74_v47  ;;  %p773_p4 = pnand %p772_p3, %p766_p0 }
 0x12d   :  { %v724_v48 = vpop.eup %723 }
 0x12e   :  { %v79_v49 = vmul.f32 %v724_v48, %v851_v14 }
 0x130   :  { %v90_v53 = vmul.f32 %v620_v50, %v79_v49 }
 0x131   :  { %v726_v51 = vpop.eup %725 }
 0x132   :  { %v728_v52 = vpop.eup %727  ;;  %v80_v54 = vmul.f32 %v726_v51, %v52_v21  ;;  %v101_v59 = vadd.f32 %v621_v55, %v90_v53  ;;  %v946_v21 = vld [vmem:[#allocation3] sm:$0xff] }
 0x133   :  { %v81_v56 = vmul.f32 %v728_v52, %v853_v15 }
 0x134   :  { %v91_v57 = vmul.f32 %v620_v50, %v80_v54 }
 0x135   :  { %v730_v58 = vpop.eup %729  ;;  %v92_v61 = vmul.f32 %v620_v50, %v81_v56 }
 0x136   :  { %v102_v60 = vadd.f32 %v621_v55, %v91_v57  ;;  %v82_v62 = vmul.f32 %v730_v58, %v857_v22 }
 0x137   :  { %v103_v1 = vadd.f32 %v621_v55, %v92_v61 }
 0x138   :  { %v655_v63 = vpack.c.bf16 %v102_v60, %v101_v59  ;;  %v93_v0 = vmul.f32 %v620_v50, %v82_v62 }
 0x13a   :  { %656 = vst [vmem:[#allocation2] sm:$0xff] %v655_v63   ;;  %v104_v2 = vadd.f32 %v621_v55, %v93_v0  ;;  %v340_v63 = vlaneseq }
 0x13c   :  { %v660_v3 = vpack.c.bf16 %v104_v2, %v103_v1 }
 0x13e   :  { %662 = vst [vmem:[#allocation2 + $0x8] sm:$0xff] %v660_v3   ;;  %v341_v3 = vand.u32 127, %v340_v63 }
 0x140   :  { %v342_v6 = vadd.s32 128, %v341_v3 }
 0x141   :  { %v721_v4 = vld [vmem:[#allocation2] sm:$0xff]  }
 0x142   :  { %679 = vmatprep.mubr.bf16.mxu0 %v721_v4 }
 0x143   :  { %680 = vmatmul.mubr.bf16.vlgmr.msra.gmra.mxu0 %v721_v4 }
 0x145   :  { %v722_v5 = vld [vmem:[#allocation2 + $0x8] sm:$0xff]  }
 0x146   :  { %681 = vmatprep.mubr.bf16.mxu1 %v722_v5 }
 0x147   :  { %682 = vmatmul.mubr.bf16.vlgmr.msra.gmra.mxu1 %v722_v5 }
 0x203   :  { %v906_v7 = vpop.f32.mrf.mxu0 }
 0x205   :  { %v908_v8 = vpop.f32.mrf.mxu0 }
 0x206   :  { %v413_v9 = vmax.f32 %v906_v7, %v908_v8 }
 0x207   :  { %v912_v10 = vpop.f32.mrf.mxu0  ;;  %v914_v11 = vpop.f32.mrf.mxu1 }
 0x208   :  { %414 = vmax.xlane.f32.xlu0 %v413_v9 }
 0x209   :  { %v916_v12 = vpop.f32.mrf.mxu0  ;;  %v918_v13 = vpop.f32.mrf.mxu1 }
 0x20a   :  { %v416_v14 = vmax.f32 %v912_v10, %v916_v12  ;;  %v419_v15 = vmax.f32 %v914_v11, %v918_v13 }
 0x20b   :  { %v924_v16 = vpop.f32.mrf.mxu1 }
 0x20c   :  { %417 = vmax.xlane.f32.xlu1 %v416_v14  ;;  %420 = vmax.xlane.f32.xlu0 %v419_v15 }
 0x20d   :  { %v926_v17 = vpop.f32.mrf.mxu1 }
 0x20e   :  { %v422_v18 = vmax.f32 %v924_v16, %v926_v17 }
 0x210   :  { %423 = vmax.xlane.f32.xlu1 %v422_v18 }
 0x291   :  { %v415_v22 = vpop.xlane.xlu0 %414 }
 0x292   :  { %v949_v23 = vmax.f32 %v946_v21, %v415_v22 }
 0x294   :  { %v433_v26 = vsub.f32 %v946_v21, %v949_v23  ;;  %513 = vst.msk [vmem:[#allocation3] sm:$0xff] %vm125_vm0, %v949_v23  ;;  %451 = vperm.xlu0 %703, %v949_v23  }
 0x295   :  { %v418_v27 = vpop.xlane.xlu1 %417  ;;  %v421_v28 = vpop.xlane.xlu0 %420 }
 0x296   :  { %v961_v29 = vmax.f32 %v951_v24, %v418_v27  ;;  %v964_v30 = vmax.f32 %v953_v25, %v421_v28 }
 0x298   :  { %v434_v32 = vsub.f32 %v951_v24, %v961_v29  ;;  %514 = vst.msk [vmem:[#allocation3 + $0x8] sm:$0xff] %vm125_vm0, %v961_v29  ;;  %v435_v33 = vsub.f32 %v953_v25, %v964_v30  ;;  %515 = vst.msk [vmem:[#allocation3 + $0x10] sm:$0xff] %vm125_vm0, %v964_v30  ;;  %461 = vperm.xlu1 %704, %v964_v30  }
 0x299   :  { %v424_v34 = vpop.xlane.xlu1 %423 }
 0x29a   :  { %v978_v35 = vmax.f32 %v966_v31, %v424_v34 }
 0x29c   :  { %v436_v36 = vsub.f32 %v966_v31, %v978_v35  ;;  %516 = vst.msk [vmem:[#allocation3 + $0x18] sm:$0xff] %vm125_vm0, %v978_v35  ;;  %456 = vperm.xlu1 %704, %v961_v29   ;;  %v430_v29 = vld [vmem:[#allocation4 + $0x8] sm:$0xff] }
 0x2a0   :  { %466 = vperm.xlu1 %704, %v978_v35  }
 0x2a4   :  { %361 = vperm.xlu1 %704, %v989_v37  }
 0x2a8   :  { %364 = vperm.xlu1 %704, %v995_v38  }
 0x2ac   :  { %367 = vperm.xlu1 %704, %v1001_v39   ;;  %v556_v39 = vld [vmem:[#allocation6] sm:$0x1] }
 0x2b0   :  { %370 = vperm.xlu1 %704, %v1007_v40  }
 0x30f   :  { %v452_v41 = vpop.permute.xlu0 %451 }
 0x310   :  { %v469_v42 = vsub.f32 %v906_v7, %v452_v41  ;;  %v470_v43 = vsub.f32 %v908_v8, %v452_v41 }
 0x312   :  { %v477_v44 = vmul.f32 1.442695, %v469_v42  ;;  %v479_v45 = vmul.f32 1.442695, %v470_v43 }
 0x313   :  { %v462_v46 = vpop.permute.xlu1 %461 }
 0x314   :  { %731 = vpow2.f32 %v477_v44  ;;  %v473_v47 = vsub.f32 %v914_v11, %v462_v46  ;;  %v474_v48 = vsub.f32 %v918_v13, %v462_v46 }
 0x315   :  { %733 = vpow2.f32 %v479_v45  ;;  %v644_v45 = vsel %vm540_vm5, 1.0, %v789_v20 }
 0x316   :  { %v485_v52 = vmul.f32 1.442695, %v473_v47  ;;  %v487_v55 = vmul.f32 1.442695, %v474_v48 }
 0x317   :  { %v457_v49 = vpop.permute.xlu1 %456 }
 0x318   :  { %v471_v50 = vsub.f32 %v912_v10, %v457_v49  ;;  %v472_v51 = vsub.f32 %v916_v12, %v457_v49  ;;  %v582_v49 = vsel %vm125_vm0, %v644_v45, 0.0  ;;  %v358_v45 = vld [vmem:[#allocation5 + $0x10] sm:$0xff] }
 0x31a   :  { %v481_v53 = vmul.f32 1.442695, %v471_v50  ;;  %v483_v54 = vmul.f32 1.442695, %v472_v51  ;;  %v646_v51 = vsel %vm542_vm11, 1.0, %v789_v20 }
 0x31b   :  { %v467_v56 = vpop.permute.xlu1 %466 }
 0x31c   :  { %735 = vpow2.f32 %v481_v53  ;;  %v475_v57 = vsub.f32 %v924_v16, %v467_v56  ;;  %v476_v58 = vsub.f32 %v926_v17, %v467_v56 }
 0x31d   :  { %737 = vpow2.f32 %v483_v54 }
 0x31e   :  { %739 = vpow2.f32 %v485_v52  ;;  %v489_v59 = vmul.f32 1.442695, %v475_v57  ;;  %v491_v60 = vmul.f32 1.442695, %v476_v58 }
 0x31f   :  { %741 = vpow2.f32 %v487_v55  ;;  %v362_v61 = vpop.permute.xlu1 %361 }
 0x320   :  { %743 = vpow2.f32 %v489_v59  ;;  %vm372_vm1 = vcmp.eq.s32.totalorder %v341_v3, %v362_v61  ;;  %vm373_vm2 = vcmp.eq.s32.totalorder %v342_v6, %v362_v61 }
 0x321   :  { %v732_v62 = vpop.eup %731  ;;  %745 = vpow2.f32 %v491_v60  ;;  %v380_v41 = vsel %vm372_vm1, %v906_v7, 0.0  ;;  %v381_v42 = vsel %vm373_vm2, %v908_v8, 0.0  ;;  %v645_v7 = vsel %vm541_vm6, 1.0, %v789_v20 }
 0x322   :  { %v734_v0 = vpop.eup %733  ;;  %v388_v8 = vadd.f32 %v381_v42, %v380_v41  ;;  %v583_v50 = vsel %vm125_vm0, %v645_v7, 0.0 }
 0x323   :  { %v365_v1 = vpop.permute.xlu1 %364  ;;  %v493_v2 = vadd.f32 %v734_v0, %v732_v62  ;;  %v584_v53 = vadd.f32 %v583_v50, %v582_v49  ;;  %v573_v62 = vld [vmem:[#allocation7] sm:$0x1]  ;;  %v437_v0 = vmul.f32 1.442695, %v433_v26 }
 0x324   :  { %vm374_vm3 = vcmp.eq.s32.totalorder %v341_v3, %v365_v1  ;;  %vm375_vm4 = vcmp.eq.s32.totalorder %v342_v6, %v365_v1  ;;  %v439_v1 = vmul.f32 1.442695, %v434_v32  ;;  %v520_v50 = vld [vmem:[#allocation3] sm:$0xff] }
 0x325   :  { %494 = vadd.xlane.f32.xlu1 %v493_v2  ;;  %v382_v43 = vsel %vm374_vm3, %v912_v10, 0.0  ;;  %v383_v44 = vsel %vm375_vm4, %v916_v12, 0.0  ;;  %747 = vpow2.f32 %v437_v0  ;;  %v443_v2 = vmul.f32 1.442695, %v436_v36 }
 0x326   :  { %v391_v46 = vadd.f32 %v383_v44, %v382_v43  ;;  %749 = vpow2.f32 %v439_v1  ;;  %v359_v44 = vld [vmem:[#allocation5 + $0x18] sm:$0xff] }
 0x327   :  { %v368_v4 = vpop.permute.xlu1 %367 }
 0x328   :  { %vm376_vm7 = vcmp.eq.s32.totalorder %v341_v3, %v368_v4  ;;  %vm377_vm8 = vcmp.eq.s32.totalorder %v342_v6, %v368_v4  ;;  %v429_v4 = vld [vmem:[#allocation4] sm:$0xff] }
 0x329   :  { %v736_v5 = vpop.eup %735  ;;  %v384_v10 = vsel %vm376_vm7, %v914_v11, 0.0  ;;  %v385_v12 = vsel %vm377_vm8, %v918_v13, 0.0  ;;  %v585_v13 = vsel %vm125_vm0, %v646_v51, 0.0 }
 0x32a   :  { %v738_v9 = vpop.eup %737  ;;  %v394_v52 = vadd.f32 %v385_v12, %v384_v10 }
 0x32b   :  { %v740_v14 = vpop.eup %739  ;;  %v496_v15 = vadd.f32 %v738_v9, %v736_v5  ;;  %v371_v27 = vpop.permute.xlu1 %370 }
 0x32c   :  { %v742_v18 = vpop.eup %741  ;;  %vm378_vm9 = vcmp.eq.s32.totalorder %v341_v3, %v371_v27  ;;  %vm379_vm10 = vcmp.eq.s32.totalorder %v342_v6, %v371_v27  ;;  %v431_v6 = vld [vmem:[#allocation4 + $0x10] sm:$0xff]  ;;  %v356_v27 = vld [vmem:[#allocation5] sm:$0xff] }
 0x32d   :  { %v744_v19 = vpop.eup %743  ;;  %497 = vadd.xlane.f32.xlu0 %v496_v15  ;;  %v499_v28 = vadd.f32 %v742_v18, %v740_v14  ;;  %v386_v47 = vsel %vm378_vm9, %v924_v16, 0.0  ;;  %v387_v48 = vsel %vm379_vm10, %v926_v17, 0.0  ;;  %v647_v16 = vsel %vm543_vm12, 1.0, %v789_v20 }
 0x32e   :  { %v746_v22 = vpop.eup %745  ;;  %v397_v11 = vadd.f32 %v387_v48, %v386_v47  ;;  %v586_v17 = vadd.f32 %v585_v13, %v584_v53  ;;  %v587_v54 = vsel %vm125_vm0, %v647_v16, 0.0  ;;  %v441_v20 = vmul.f32 1.442695, %v435_v33  ;;  %v432_v33 = vld [vmem:[#allocation4 + $0x18] sm:$0xff]  ;;  %v521_v53 = vld [vmem:[#allocation3 + $0x8] sm:$0xff] }
 0x32f   :  { %v502_v34 = vadd.f32 %v746_v22, %v744_v19  ;;  %v357_v22 = vld [vmem:[#allocation5 + $0x8] sm:$0xff] }
 0x330   :  { %v588_v55 = vadd.f32 %v587_v54, %v586_v17  ;;  %751 = vpow2.f32 %v441_v20 }
 0x331   :  { %500 = vadd.xlane.f32.xlu0 %v499_v28  ;;  %503 = vadd.xlane.f32.xlu1 %v502_v34  ;;  %753 = vpow2.f32 %v443_v2 }
 0x332   :  { %v589_v56 = vrot.slane %v588_v55, 4  ;;  %v748_v3 = vpop.eup %747 }
 0x333   :  { %v445_v21 = vmul.f32 %v748_v3, %v429_v4  ;;  %v750_v24 = vpop.eup %749 }
 0x334   :  { %v590_v57 = vadd.f32 %v589_v56, %v588_v55  ;;  %v446_v5 = vmul.f32 %v750_v24, %v430_v29 }
 0x335   :  { %389 = vadd.xlane.f32.xlu0 %v388_v8  ;;  %392 = vadd.xlane.f32.xlu1 %v391_v46 }
 0x336   :  { %v591_v58 = vrot.slane %v590_v57, 2 }
 0x338   :  { %v592_v59 = vadd.f32 %v591_v58, %v590_v57 }
 0x339   :  { %395 = vadd.xlane.f32.xlu0 %v394_v52  ;;  %398 = vadd.xlane.f32.xlu1 %v397_v11 }
 0x33a   :  { %v593_v60 = vrot.slane %v592_v59, 1 }
 0x33c   :  { %v594_v61 = vadd.f32 %v593_v60, %v592_v59  ;;  %v522_v59 = vld [vmem:[#allocation3 + $0x10] sm:$0xff] }
 0x33d   :  { %v752_v32 = vpop.eup %751 }
 0x33e   :  { %v595_v63 = vadd.f32 %v594_v61, %v573_v62  ;;  %v754_v25 = vpop.eup %753  ;;  %v447_v36 = vmul.f32 %v752_v32, %v431_v6  ;;  %v523_v61 = vld [vmem:[#allocation3 + $0x18] sm:$0xff] }
 0x33f   :  { %v448_v35 = vmul.f32 %v754_v25, %v432_v33 }
 0x340   :  { %596 = vst.msk [vmem:[#allocation7] sm:$0x1] %vm28_vm13, %v595_v63 }
 0x347   :  { %v600_v25 = vld [vmem:[#allocation7] sm:$0x1] }
 0x348   :  { %v601_v6 = vmax.f32 %v600_v25, 1.0 }
 0x3ae   :  { %v495_v23 = vpop.xlane.xlu1 %494 }
 0x3af   :  { %v505_v26 = vadd.f32 %v495_v23, %v445_v21 }
 0x3b1   :  { %509 = vst.msk [vmem:[#allocation4] sm:$0xff] %vm125_vm0, %v505_v26 }
 0x3b6   :  { %v498_v30 = vpop.xlane.xlu0 %497 }
 0x3b7   :  { %v506_v9 = vadd.f32 %v498_v30, %v446_v5 }
 0x3b8   :  { %v524_v31 = vld [vmem:[#allocation4] sm:$0xff] }
 0x3b9   :  { %755 = vlog2.f32 %v524_v31  ;;  %510 = vst.msk [vmem:[#allocation4 + $0x8] sm:$0xff] %vm125_vm0, %v506_v9 }
 0x3ba   :  { %v504_v14 = vpop.xlane.xlu1 %503  ;;  %v501_v15 = vpop.xlane.xlu0 %500 }
 0x3bb   :  { %v508_v18 = vadd.f32 %v504_v14, %v448_v35  ;;  %v507_v19 = vadd.f32 %v501_v15, %v447_v36 }
 0x3bd   :  { %512 = vst.msk [vmem:[#allocation4 + $0x18] sm:$0xff] %vm125_vm0, %v508_v18  ;;  %511 = vst.msk [vmem:[#allocation4 + $0x10] sm:$0xff] %vm125_vm0, %v507_v19 }
 0x3be   :  { %v393_v28 = vpop.xlane.xlu1 %392  ;;  %v390_v34 = vpop.xlane.xlu0 %389 }
 0x3bf   :  { %v401_v41 = vadd.f32 %v393_v28, %v357_v22  ;;  %v400_v42 = vadd.f32 %v390_v34, %v356_v27 }
 0x3c0   :  { %v525_v43 = vld [vmem:[#allocation4 + $0x8] sm:$0xff] }
 0x3c1   :  { %757 = vlog2.f32 %v525_v43  ;;  %406 = vst.msk [vmem:[#allocation5 + $0x8] sm:$0xff] %vm125_vm0, %v401_v41  ;;  %405 = vst.msk [vmem:[#allocation5] sm:$0xff] %vm125_vm0, %v400_v42 }
 0x3c2   :  { %v399_v7 = vpop.xlane.xlu1 %398  ;;  %v396_v8 = vpop.xlane.xlu0 %395 }
 0x3c3   :  { %v403_v46 = vadd.f32 %v399_v7, %v359_v44  ;;  %v402_v10 = vadd.f32 %v396_v8, %v358_v45 }
 0x3c4   :  { %v526_v12 = vld [vmem:[#allocation4 + $0x10] sm:$0xff]  ;;  %v527_v47 = vld [vmem:[#allocation4 + $0x18] sm:$0xff] }
 0x3c5   :  { %759 = vlog2.f32 %v526_v12  ;;  %408 = vst.msk [vmem:[#allocation5 + $0x18] sm:$0xff] %vm125_vm0, %v403_v46  ;;  %407 = vst.msk [vmem:[#allocation5 + $0x10] sm:$0xff] %vm125_vm0, %v402_v10 }
 0x3c6   :  { %v756_v48 = vpop.eup %755  ;;  %761 = vlog2.f32 %v527_v47 }
 0x3c7   :  { %v529_v49 = vmul.f32 0.6931472, %v756_v48  ;;  %763 = vrcp.f32 %v601_v6 }
 0x3c8   :  { %v544_v13 = vld [vmem:[#allocation5] sm:$0xff]  ;;  %v545_v55 = vld [vmem:[#allocation5 + $0x8] sm:$0xff] }
 0x3c9   :  { %v536_v51 = vadd.f32 %v529_v49, %v520_v50 }
 0x3cb   :  { %v548_v17 = vsub.f32 %v536_v51, %v544_v13 }
 0x3cc   :  { %v546_v20 = vld [vmem:[#allocation5 + $0x10] sm:$0xff]  ;;  %v547_v3 = vld [vmem:[#allocation5 + $0x18] sm:$0xff] }
 0x3cd   :  { %v552_v63 = vsel %vm540_vm5, %v548_v17, 0.0 }
 0x3ce   :  { %v758_v52 = vpop.eup %757  ;;  %v557_v23 = vsel %vm125_vm0, %v552_v63, 0.0 }
 0x3cf   :  { %v531_v11 = vmul.f32 0.6931472, %v758_v52 }
 0x3d1   :  { %v537_v16 = vadd.f32 %v531_v11, %v521_v53 }
 0x3d2   :  { %v760_v54 = vpop.eup %759 }
 0x3d3   :  { %v762_v56 = vpop.eup %761  ;;  %v533_v57 = vmul.f32 0.6931472, %v760_v54  ;;  %v549_v58 = vsub.f32 %v537_v16, %v545_v55 }
 0x3d4   :  { %v535_v60 = vmul.f32 0.6931472, %v762_v56  ;;  %v764_v40 = vpop.eup %763 }
 0x3d5   :  { %v538_v62 = vadd.f32 %v533_v57, %v522_v59  ;;  %v553_v0 = vsel %vm541_vm6, %v549_v58, 0.0 }
 0x3d6   :  { %v539_v1 = vadd.f32 %v535_v60, %v523_v61  ;;  %v558_v2 = vsel %vm125_vm0, %v553_v0, 0.0 }
 0x3d7   :  { %v550_v4 = vsub.f32 %v538_v62, %v546_v20  ;;  %v559_v24 = vadd.f32 %v558_v2, %v557_v23 }
 0x3d8   :  { %v551_v21 = vsub.f32 %v539_v1, %v547_v3 }
 0x3d9   :  { %v554_v26 = vsel %vm542_vm11, %v550_v4, 0.0 }
 0x3da   :  { %v555_v37 = vsel %vm543_vm12, %v551_v21, 0.0  ;;  %v560_v29 = vsel %vm125_vm0, %v554_v26, 0.0 }
 0x3db   :  { %v561_v38 = vadd.f32 %v560_v29, %v559_v24  ;;  %v562_v32 = vsel %vm125_vm0, %v555_v37, 0.0 }
 0x3dd   :  { %v563_v5 = vadd.f32 %v562_v32, %v561_v38 }
 0x3df   :  { %v564_v30 = vrot.slane %v563_v5, 4 }
 0x3e1   :  { %v565_v33 = vadd.f32 %v564_v30, %v563_v5 }
 0x3e3   :  { %v566_v9 = vrot.slane %v565_v33, 2 }
 0x3e5   :  { %v567_v31 = vadd.f32 %v566_v9, %v565_v33 }
 0x3e7   :  { %v568_v35 = vrot.slane %v567_v31, 1 }
 0x3e9   :  { %v569_v36 = vadd.f32 %v568_v35, %v567_v31 }
 0x3eb   :  { %v570_v14 = vadd.f32 %v569_v36, %v556_v39 }
 0x3ed   :  { %572 = vst.msk [vmem:[#allocation6] sm:$0x1] %vm28_vm13, %v570_v14 }
 0x3f4   :  { %v599_v15 = vld [vmem:[#allocation6] sm:$0x1] }
 0x3f5   :  { %v603_v18 = vmul.f32 %v764_v40, %v599_v15 }
 0x3f7   :  { %605 = vst.msk [vmem:[#allocation8] sm:$0x1] %vm28_vm13, %v603_v18 }
 0x3f8   :  { %776 = shalt.err (!%p773_p4)
}
 0x3f9   :  { %615 = dma.vmem_to_hbm [thread:$0]  %s613_s15, 16, %s1093_s5, [#allocation9]  }
 0x3fa   :  { %785 = dma.done.wait [#allocation9], 16  }
 0x3fb   :  { %786 = vsyncadd [#allocation9], 4294967280 }
 0x3fc   :  { %619 = vsyncpa [#allocation9], 1 }

// kernel: caption_decoder_forward.3
= control target key start
LH: loop header
LB: loop body
LE: loop exit
PB: predicated region body
PF: predicated region fallthrough
CT: control target
= control target key end

     0   :  { %19 = vsyncpa [#allocation3], 0  ;;  %s3849_s0 = inlined_call_operand.vmem [shape: f32[2,16,128], index: 0, kind: input, shape index: {}, may-alias: {0,14}]   ;;  %s3850_s1 = inlined_call_operand.vmem [shape: f32[2,1,16], index: 1, kind: input, shape index: {}]   ;;  %s3851_s2 = inlined_call_operand.vmem [shape: f32[1,128], index: 2, kind: input, shape index: {}]   ;;  %s3852_s3 = inlined_call_operand.hbm [shape: f32[1,128], index: 3, kind: input, shape index: {}]   ;;  %s3853_s4 = inlined_call_operand.vmem [shape: bf16[128,384], index: 4, kind: input, shape index: {}]   ;;  %s3854_s5 = inlined_call_operand.vmem [shape: f32[1,384], index: 5, kind: input, shape index: {}]   ;;  %s3855_s6 = inlined_call_operand.hbm [shape: bf16[128,128], index: 6, kind: input, shape index: {}]   ;;  %s3856_s7 = inlined_call_operand.hbm [shape: f32[1,128], index: 7, kind: input, shape index: {}]   ;;  %s3857_s8 = inlined_call_operand.hbm [shape: f32[1,128], index: 8, kind: input, shape index: {}]   ;;  %s3858_s9 = inlined_call_operand.hbm [shape: f32[1,128], index: 9, kind: input, shape index: {}]   ;;  %s3859_s10 = inlined_call_operand.vmem [shape: bf16[128,512], index: 10, kind: input, shape index: {}]   ;;  %s3860_s11 = inlined_call_operand.vmem [shape: f32[1,512], index: 11, kind: input, shape index: {}]   ;;  %s3861_s12 = inlined_call_operand.hbm [shape: bf16[512,128], index: 12, kind: input, shape index: {}]   ;;  %s3862_s13 = inlined_call_operand.hbm [shape: f32[1,128], index: 13, kind: input, shape index: {}]   ;;  %s3863_s14 = inlined_call_operand.vmem [shape: f32[2,16,128], index: 14, kind: output, shape index: {}, may-alias: {0,14}]  }
   0x1   :  { %20 = vsyncpa [#allocation5], 0 }
   0x2   :  { %21 = vsyncpa [#allocation8], 0 }
   0x3   :  { %22 = vsyncpa [#allocation11], 0  ;;  %s3331_s29 = smov 0  }
   0x4 LB: > { %3866 = sst [smem:[#allocation17_spill]] %s3238_s29  ;;  %s3240_s30 = smov [#allocation4]   ;;  %s3238_s29 = sphi %s3331_s29, %s28_s29  }
   0x5   : > { %s395_s15 = sshll.u32 %s3240_s30, 4  ;;  %s3337_s16 = sadd.s32 4294967295, %s3238_s29   ;;  %s396_s15 = int_to_ptr.vmem [resolvable:$true] %s395_s15 }
   0x6   : > { %p2452_p0 = scmp.ge.s32.totalorder %s3238_s29, 1  ;;  %p363_p1 = scmp.lt.s32.totalorder %s3238_s29, 3 }
   0x7   : > { %p3865_p2 = scmp.eq.s32.totalorder %s3337_s16, 0  ;;  %s3241_s18 = smov [#allocation7]  }
   0x8   : > { %p3342_p3 = pnand %p2452_p0, %p363_p1  ;;  %s420_s19 = sshll.u32 %s3241_s18, 4  ;;  %s3348_s19 = int_to_ptr.vmem [resolvable:$true] %s420_s19 }
   0x9   : > { %s3242_s21 = smov [#allocation10]   ;;  %s3243_s23 = smov [#allocation2]  }
   0xa   : > { %p2781_p4 = pneg %p3342_p3  ;;  %s447_s22 = sshll.u32 %s3242_s21, 4  ;;  %s3356_s22 = int_to_ptr.vmem [resolvable:$true] %s447_s22 }
   0xb   : > { %s3358_s24 = sshll.u32 %s3243_s23, 4  ;;  %s3045_s26 = scalar_lea.vmem %s396_s15, 1024  ;;  %s380_s24 = int_to_ptr.vmem [resolvable:$true] %s3358_s24 }
   0xc   : > { %p3352_p5 = pnand %p3865_p2, %p2781_p4  ;;  %p3046_p7 = scmp.ne.s32.totalorder %s396_s15, %s3045_s26 }
   0xd   : > { %p3053_p10 = scmp.lt.s32.totalorder %s396_s15, %s396_s15  ;;  %p3054_p11 = scmp.lt.s32.totalorder %s3045_s26, %s3045_s26 }
   0xe   : > { %p3362_p6 = pneg %p3352_p5 }
   0xf   : > { %p3055_p12 = por %p3054_p11, %p3053_p10 }
  0x10   : > { %p3048_p8 = pnand %p3046_p7, %p3362_p6 }
  0x12   : > { %p3049_p9 = pneg %p3048_p8 }
  0x14   : > { %p3056_p13 = pnand %p3055_p12, %p3049_p9 }
  0x16   : > { %3059 = shalt.err (!%p3056_p13)
}
  0x17   : > { %s3244_s27 = smov 64   ;;  %s3245_s28 = smov 4  }
  0x18   : > { %2787 = dma.hbm_to_vmem [thread:$0]  (!%p3352_p5), %s3855_s6, 1024, %s396_s15, [#allocation5], %s3244_s27, %s3244_s27, %s3245_s28  }
  0x19   : > { %s3071_s21 = scalar_lea.vmem %s3348_s19, 16  ;;  %s3078_s23 = scalar_lea.vmem %s3348_s19, 32 }
  0x1a   : > { %p3072_p0 = scmp.ne.s32.totalorder %s3348_s19, %s3071_s21  ;;  %p3079_p7 = scmp.lt.s32.totalorder %s3348_s19, %s3348_s19 }
  0x1b   : > { %p3080_p8 = scmp.lt.s32.totalorder %s3078_s23, %s3071_s21 }
  0x1c   : > { %p3074_p1 = pnand %p3072_p0, %p3362_p6 }
  0x1d   : > { %p3081_p9 = por %p3080_p8, %p3079_p7 }
  0x1e   : > { %p3075_p4 = pneg %p3074_p1 }
  0x20   : > { %p3082_p10 = pnand %p3081_p9, %p3075_p4 }
  0x22   : > { %3085 = shalt.err (!%p3082_p10)
}
  0x23   : > { %2793 = dma.hbm_to_vmem [thread:$0]  (!%p3352_p5), %s3857_s8, 16, %s3348_s19, [#allocation8]  }
  0x24   : > { %s3097_s15 = scalar_lea.vmem %s3356_s22, 4096  ;;  %p3105_p0 = scmp.lt.s32.totalorder %s3356_s22, %s3356_s22 }
  0x25   : > { %p3098_p11 = scmp.ne.s32.totalorder %s3356_s22, %s3097_s15  ;;  %p3106_p1 = scmp.lt.s32.totalorder %s3097_s15, %s3097_s15 }
  0x27   : > { %p3100_p12 = pnand %p3098_p11, %p3362_p6  ;;  %p3107_p4 = por %p3106_p1, %p3105_p0 }
  0x29   : > { %p3101_p13 = pneg %p3100_p12 }
  0x2b   : > { %p3108_p7 = pnand %p3107_p4, %p3101_p13 }
  0x2d   : > { %3111 = shalt.err (!%p3108_p7)
}
  0x2e   : > { %2799 = dma.hbm_to_vmem [thread:$0]  (!%p3352_p5), %s3861_s12, 4096, %s3356_s22, [#allocation11], %s3244_s27, %s3244_s27, %s3245_s28  }
  0x2f   : > { %s3123_s19 = scalar_lea.vmem %s380_s24, 16  ;;  %s3130_s18 = scalar_lea.vmem %s380_s24, 32 }
  0x30   : > { %p3124_p8 = scmp.ne.s32.totalorder %s380_s24, %s3123_s19  ;;  %p3131_p11 = scmp.lt.s32.totalorder %s380_s24, %s380_s24 }
  0x31   : > { %p3132_p12 = scmp.lt.s32.totalorder %s3130_s18, %s3123_s19 }
  0x32   : > { %p3126_p9 = pnand %p3124_p8, %p3362_p6 }
  0x33   : > { %p3133_p13 = por %p3132_p12, %p3131_p11 }
  0x34   : > { %p3127_p10 = pneg %p3126_p9 }
  0x36   : > { %p3134_p0 = pnand %p3133_p13, %p3127_p10 }
  0x38   : > { %3137 = shalt.err (!%p3134_p0)
}
  0x39   : > { %2784 = dma.hbm_to_vmem [thread:$0]  (!%p3352_p5), %s3852_s3, 16, %s380_s24, [#allocation3]  }
  0x3a   : > { %s3246_s22 = smov [#allocation6]   ;;  %s3247_s28 = smov [#allocation9]  }
  0x3b   : > { %s409_s27 = sshll.u32 %s3246_s22, 4  ;;  %s431_s26 = sshll.u32 %s3247_s28, 4  ;;  %s410_s27 = int_to_ptr.vmem [resolvable:$true] %s409_s27  ;;  %s432_s26 = int_to_ptr.vmem [resolvable:$true] %s431_s26 }
  0x3c   : > { %s3149_s15 = scalar_lea.vmem %s410_s27, 16  ;;  %s3156_s29 = scalar_lea.vmem %s410_s27, 32 }
  0x3d   : > { %p3150_p1 = scmp.ne.s32.totalorder %s410_s27, %s3149_s15  ;;  %p3157_p8 = scmp.lt.s32.totalorder %s410_s27, %s410_s27 }
  0x3e   : > { %p3158_p9 = scmp.lt.s32.totalorder %s3156_s29, %s3149_s15 }
  0x3f   : > { %p3152_p4 = pnand %p3150_p1, %p3362_p6 }
  0x40   : > { %p3159_p10 = por %p3158_p9, %p3157_p8 }
  0x41   : > { %p3153_p7 = pneg %p3152_p4 }
  0x43   : > { %p3160_p11 = pnand %p3159_p10, %p3153_p7 }
  0x45   : > { %3163 = shalt.err (!%p3160_p11)
}
  0x46   : > { %2790 = dma.hbm_to_vmem [thread:$0]  (!%p3352_p5), %s3856_s7, 16, %s410_s27, [#allocation5]  }
  0x47   : > { %s3175_s19 = scalar_lea.vmem %s432_s26, 16  ;;  %s3182_s18 = scalar_lea.vmem %s432_s26, 32 }
  0x48   : > { %p3176_p12 = scmp.ne.s32.totalorder %s432_s26, %s3175_s19  ;;  %p3183_p1 = scmp.lt.s32.totalorder %s432_s26, %s432_s26 }
  0x49   : > { %p3184_p4 = scmp.lt.s32.totalorder %s3182_s18, %s3175_s19 }
  0x4a   : > { %p3178_p13 = pnand %p3176_p12, %p3362_p6 }
  0x4b   : > { %p3185_p2 = por %p3184_p4, %p3183_p1 }
  0x4c   : > { %p3179_p0 = pneg %p3178_p13 }
  0x4e   : > { %p3186_p8 = pnand %p3185_p2, %p3179_p0 }
  0x50   : > { %3189 = shalt.err (!%p3186_p8)
}
  0x51   : > { %2796 = dma.hbm_to_vmem [thread:$0]  (!%p3352_p5), %s3858_s9, 16, %s432_s26, [#allocation8]  }
  0x52   : > { %s3248_s22 = smov [#allocation12]  }
  0x53   : > { %s461_s27 = sshll.u32 %s3248_s22, 4  ;;  %s462_s27 = int_to_ptr.vmem [resolvable:$true] %s461_s27 }
  0x54   : > { %s3201_s28 = scalar_lea.vmem %s462_s27, 16  ;;  %s3208_s15 = scalar_lea.vmem %s462_s27, 32 }
  0x55   : > { %p3202_p7 = scmp.ne.s32.totalorder %s462_s27, %s3201_s28  ;;  %p3209_p11 = scmp.lt.s32.totalorder %s462_s27, %s462_s27 }
  0x56   : > { %p3210_p12 = scmp.lt.s32.totalorder %s3208_s15, %s3201_s28 }
  0x57   : > { %p3204_p9 = pnand %p3202_p7, %p3362_p6 }
  0x58   : > { %p3211_p2 = por %p3210_p12, %p3209_p11 }
  0x59   : > { %p3205_p10 = pneg %p3204_p9 }
  0x5b   : > { %p3212_p13 = pnand %p3211_p2, %p3205_p10 }
  0x5d   : > { %3215 = shalt.err (!%p3212_p13)
}
  0x5e   : > { %2802 = dma.hbm_to_vmem [thread:$0]  (!%p3352_p5), %s3862_s13, 16, %s462_s27, [#allocation11]  }
  0x5f   : > { %488 = sbr.rel (%p3342_p3) target bundleno = 2976 (0xba0), region = 76  ;;  %p3870_p0 = scmp.eq.s32.totalorder (!%p3342_p3), %s3337_s16, 0 }
  0x64   : > { %3221 = dma.done.wait (%p3870_p0), [#allocation3], 16   ;;  %p3871_p6 = pmov %p3870_p0 }
  0x65   : > { %p3872_p1 = pmov %p3870_p0 }
  0x66   : > { %3223 = vsyncadd (%p3871_p6), [#allocation3], 4294967280 }
  0x67   : > { %3225 = dma.done.wait (%p3872_p1), [#allocation5], 1040   ;;  %p3873_p4 = pmov %p3870_p0 }
  0x68   : > { %p3874_p8 = pmov %p3870_p0 }
  0x69   : > { %3227 = vsyncadd (%p3873_p4), [#allocation5], 4294966256 }
  0x6a   : > { %3229 = dma.done.wait (%p3874_p8), [#allocation8], 32   ;;  %p3875_p5 = pmov %p3870_p0 }
  0x6b   : > { %p3876_p3 = pmov %p3870_p0 }
  0x6c   : > { %3231 = vsyncadd (%p3875_p5), [#allocation8], 4294967264 }
  0x6d   : > { %3233 = dma.done.wait (%p3876_p3), [#allocation11], 4112   ;;  %p3877_p7 = pmov %p3870_p0 }
  0x6e   : > { %p561_p9 = scmp.lt.s32.totalorder %s3337_s16, 1  ;;  %v2856_v2 = vld [vmem:[%s3853_s4 + $0xac] ss:$12 sps:$4 sm:$0xff]   ;;  %v2858_v3 = vld [vmem:[%s3853_s4 + $0xa8] ss:$12 sps:$4 sm:$0xff]   ;;  %v3249_v4 = vmov 0.0   ;;  %v653_v53 = vlaneseq }
  0x6f   : > { %3235 = vsyncadd (%p3877_p7), [#allocation11], 4294963184  ;;  %2665 = vmatprep.subr.bf16.mxu1 %v3249_v4  ;;  %v2859_v5 = vld [vmem:[%s3853_s4 + $0xb0] ss:$12 sps:$4 sm:$0xff]   ;;  %796 = vmatprep.subr.bf16.mxu0 %v2856_v2  ;;  %v2860_v14 = vld [vmem:[%s3853_s4 + $0x94] ss:$12 sps:$4 sm:$0xff]  }
  0x70   : > { %s3880_s16 = smov (!%p561_p9, %s3337_s16), 1  ;;  %797 = vmatpush1.bf16.msra.mxu0 %v2858_v3  ;;  %2666 = vmatpush3.bf16.msra.mxu1 %v2859_v5  ;;  %v2862_v15 = vld [vmem:[%s3853_s4 + $0x90] ss:$12 sps:$4 sm:$0xff]   ;;  %v2863_v16 = vld [vmem:[%s3853_s4 + $0x98] ss:$12 sps:$4 sm:$0xff]   ;;  %v3250_v27 = vmov 0  }
  0x71   : > { %s2585_s17 = sshll.u32 %s3880_s16, 4  ;;  %2667 = vmatprep.subr.bf16.mxu1 %v3249_v4  ;;  %798 = vmatprep.subr.bf16.mxu0 %v2860_v14  ;;  %v2864_v17 = vld [vmem:[%s3853_s4 + $0x7c] ss:$12 sps:$4 sm:$0xff]   ;;  %v2866_v18 = vld [vmem:[%s3853_s4 + $0x78] ss:$12 sps:$4 sm:$0xff]   ;;  %vm3251_vm0 = vmmov 0   ;;  %s568_s18 = scalar_lea.vmem %s3850_s1, %s3880_s16 }
  0x72   : > { %s3455_s26 = scalar_lea.vmem %s3849_s0, %s2585_s17  ;;  %v2867_v19 = vld [vmem:[%s3853_s4 + $0x80] ss:$12 sps:$4 sm:$0xff]   ;;  %v2868_v20 = vld [vmem:[%s3853_s4 + $0x64] ss:$12 sps:$4 sm:$0xff]   ;;  %v2871_v22 = vld [vmem:[%s3853_s4 + $0x68] ss:$12 sps:$4 sm:$0xff]   ;;  %828 = vmatprep.mubr.bf16.mxu0 %v3250_v27  ;;  %2681 = vmatprep.mubr.msk.bf16.mxu1 %vm3251_vm0, %v3249_v4 }
  0x73   : > { %v575_v0 = vld [vmem:[%s3455_s26] sm:$0xff]  ;;  %v576_v1 = vld [vmem:[%s3455_s26 + $0x8] sm:$0xff]  ;;  %v2875_v25 = vld [vmem:[%s3853_s4 + $0x50] ss:$12 sps:$4 sm:$0xff]   ;;  %v3561_v54 = vshrl.u32 %v653_v53, 7  ;;  %vm902_vm1 = vcmask 261120  }
  0x74   : > { %577 = vadd.xlane.f32.xlu0 %v575_v0  ;;  %799 = vmatpush1.bf16.msra.mxu0 %v2862_v15  ;;  %v2870_v21 = vld [vmem:[%s3853_s4 + $0x60] ss:$12 sps:$4 sm:$0xff]   ;;  %v2874_v24 = vld [vmem:[%s3853_s4 + $0x48] ss:$12 sps:$4 sm:$0xff]   ;;  %v2878_v28 = vld [vmem:[%s3853_s4 + $0x30] ss:$12 sps:$4 sm:$0xff]  }
  0x75   : > { %2668 = vmatpush3.bf16.msra.mxu1 %v2863_v16  ;;  %800 = vmatprep.subr.bf16.mxu0 %v2864_v17  ;;  %v2872_v23 = vld [vmem:[%s3853_s4 + $0x4c] ss:$12 sps:$4 sm:$0xff]   ;;  %v2876_v26 = vld [vmem:[%s3853_s4 + $0x34] ss:$12 sps:$4 sm:$0xff]   ;;  %v2880_v30 = vld [vmem:[%s3853_s4 + $0x1c] ss:$12 sps:$4 sm:$0xff]  }
  0x76   : > { %2669 = vmatprep.subr.bf16.mxu1 %v3249_v4  ;;  %v2879_v29 = vld [vmem:[%s3853_s4 + $0x38] ss:$12 sps:$4 sm:$0xff]   ;;  %v2883_v32 = vld [vmem:[%s3853_s4 + $0x20] ss:$12 sps:$4 sm:$0xff]   ;;  %v2887_v35 = vld [vmem:[%s3853_s4 + $0x8] ss:$12 sps:$4 sm:$0xff]  }
  0x77   : > { %v2882_v31 = vld [vmem:[%s3853_s4 + $0x18] ss:$12 sps:$4 sm:$0xff]   ;;  %v2886_v34 = vld [vmem:[%s3853_s4] ss:$12 sps:$4 sm:$0xff]   ;;  %v659_v55 = vsub.s32 1, %v3561_v54  ;;  %v3570_v2 = vsub.s32 0, %v3561_v54 }
  0x78   : > { %579 = vadd.xlane.f32.xlu0 %v576_v1  ;;  %801 = vmatpush1.bf16.msra.mxu0 %v2866_v18  ;;  %v2884_v33 = vld [vmem:[%s3853_s4 + $0x4] ss:$12 sps:$4 sm:$0xff]   ;;  %v2473_v44 = vld [vmem:[%s3851_s2] ss:$0 sm:$0xff]  ;;  %vm954_vm8 = vcmask 130048   ;;  %s3253_s21 = smov 96  }
  0x79   : > { %2670 = vmatpush3.bf16.msra.mxu1 %v2867_v19  ;;  %802 = vmatprep.subr.bf16.mxu0 %v2868_v20  ;;  %v2474_v48 = vld [vmem:[#allocation2] ss:$0 sm:$0xff]  ;;  %v884_v19 = vand.u32 127, %v653_v53  ;;  %s3254_s23 = smov 64   ;;  %s3255_s22 = smov 32   ;;  %vm1426_vm9 = vcmask 523264  }
  0x7a   : > { %2671 = vmatprep.subr.bf16.mxu1 %v3249_v4  ;;  %v651_v58 = vld [vmem:[%s3854_s5] sm:$0x7]  ;;  %vm1429_vm10 = vcmask 785408  }
  0x7b   : > { %v660_v61 = vrot.slane %v651_v58, %v659_v55  ;;  %v887_v17 = vld [vmem:[%s568_s18] sm:$0x1]  ;;  %vm885_vm3 = vcmp.le.s32.totalorder %v884_v19, %v3561_v54 }
  0x7c   : > { %803 = vmatpush1.bf16.msra.mxu0 %v2870_v21  ;;  %vm888_vm2 = vcmp.gt.f32.partialorder %v887_v17, 0.5  ;;  %v882_v21 = vadd.s32 8, %v3561_v54 }
  0x7d   : > { %2672 = vmatpush3.bf16.msra.mxu1 %v2871_v22  ;;  %804 = vmatprep.subr.bf16.mxu0 %v2872_v23  ;;  %v889_v18 = vsel %vm888_vm2, 1, %v3250_v27  ;;  %v3252_v23 = vmov -1e+09  }
  0x7e   : > { %2673 = vmatprep.subr.bf16.mxu1 %v3249_v4  ;;  %v893_v20 = vrot.slane %v889_v18, %v3570_v2  ;;  %vm886_vm6 = vcmp.le.s32.totalorder %v884_v19, %v882_v21 }
  0x80   : > { %805 = vmatpush1.bf16.msra.mxu0 %v2874_v24  ;;  %vm894_vm4 = vcmp.eq.s32.totalorder %v893_v20, 1 }
  0x81   : > { %2674 = vmatpush3.bf16.msra.mxu1 %v2875_v25  ;;  %806 = vmatprep.subr.bf16.mxu0 %v2876_v26  ;;  %vm895_vm5 = vmand %vm885_vm3, %vm894_vm4 }
  0x82   : > { %2675 = vmatprep.subr.bf16.mxu1 %v3249_v4  ;;  %v3596_v24 = vsel %vm895_vm5, 0.0, %v3252_v23  ;;  %vm896_vm7 = vmand %vm886_vm6, %vm894_vm4 }
  0x84   : > { %807 = vmatpush1.bf16.msra.mxu0 %v2878_v28 }
  0x85   : > { %2676 = vmatpush3.bf16.msra.mxu1 %v2879_v29  ;;  %808 = vmatprep.subr.bf16.mxu0 %v2880_v30  ;;  %v3599_v30 = vsel %vm896_vm7, 0.0, %v3252_v23 }
  0x86   : > { %2677 = vmatprep.subr.bf16.mxu1 %v3249_v4 }
  0x88   : > { %809 = vmatpush1.bf16.msra.mxu0 %v2882_v31 }
  0x89   : > { %2678 = vmatpush3.bf16.msra.mxu1 %v2883_v32  ;;  %810 = vmatprep.subr.bf16.mxu0 %v2884_v33 }
  0x8a   : > { %2679 = vmatprep.subr.bf16.mxu1 %v3249_v4 }
  0x8c   : > { %811 = vmatpush1.bf16.msra.mxu0 %v2886_v34 }
  0x8d   : > { %2680 = vmatpush3.bf16.msra.mxu1 %v2887_v35  ;;  %2709 = vmatprep.subr.bf16.mxu0 %v3249_v4 }
  0x8e   : > { %2685 = vmatprep.subr.bf16.mxu1 %v3249_v4 }
  0xfd   : > { %v578_v6 = vpop.xlane.xlu0 %577 }
  0xfe   : > { %v582_v7 = vmul.f32 0.0078125, %v578_v6  ;;  %v663_v6 = vsub.s32 2, %v3561_v54 }
 0x100   : > { %v3470_v8 = vsub.f32 %v575_v0, %v582_v7 }
 0x101   : > { %v580_v9 = vpop.xlane.xlu0 %579 }
 0x102   : > { %v583_v10 = vmul.f32 0.0078125, %v580_v9  ;;  %v586_v11 = vmul.f32 %v3470_v8, %v3470_v8 }
 0x104   : > { %v3474_v12 = vsub.f32 %v576_v1, %v583_v10  ;;  %588 = vadd.xlane.f32.xlu1 %v586_v11  ;;  %v664_v10 = vrot.slane %v651_v58, %v663_v6 }
 0x106   : > { %v587_v13 = vmul.f32 %v3474_v12, %v3474_v12 }
 0x108   : > { %590 = vadd.xlane.f32.xlu1 %v587_v13 }
 0x18d   : > { %v589_v36 = vpop.xlane.xlu1 %588 }
 0x18e   : > { %v592_v37 = vmul.f32 0.0078125, %v589_v36 }
 0x190   : > { %v594_v38 = vadd.f32 1e-05, %v592_v37 }
 0x191   : > { %v591_v39 = vpop.xlane.xlu1 %590 }
 0x192   : > { %2976 = vrsqrt.f32 %v594_v38  ;;  %v593_v40 = vmul.f32 0.0078125, %v591_v39 }
 0x194   : > { %v595_v41 = vadd.f32 1e-05, %v593_v40 }
 0x196   : > { %2978 = vrsqrt.f32 %v595_v41 }
 0x19f   : > { %v2977_v42 = vpop.eup %2976 }
 0x1a0   : > { %v598_v43 = vmul.f32 %v2977_v42, %v3470_v8  ;;  %v656_v8 = vrot.slane %v651_v58, %v3570_v2 }
 0x1a2   : > { %v607_v47 = vmul.f32 %v2473_v44, %v598_v43 }
 0x1a3   : > { %v2979_v45 = vpop.eup %2978 }
 0x1a4   : > { %v599_v46 = vmul.f32 %v2979_v45, %v3474_v12  ;;  %v616_v50 = vadd.f32 %v2474_v48, %v607_v47 }
 0x1a6   : > { %v608_v49 = vmul.f32 %v2473_v44, %v599_v46 }
 0x1a8   : > { %v617_v51 = vadd.f32 %v2474_v48, %v608_v49 }
 0x1aa   : > { %v618_v52 = vpack.c.bf16 %v617_v51, %v616_v50 }
 0x1ac   : > { %829 = vmatmul.mubr.bf16.vlgmr.msra.gmra.mxu0 %v618_v52  ;;  %2682 = vmatmul.mubr.bf16.vlgmr.msra.gmra.mxu1 %v618_v52 }
 0x1ad   : > { %2687 = vmatprep.mubr.msk.bf16.mxu1 %vm3251_vm0, %v3249_v4  ;;  %2711 = vmatprep.mubr.msk.bf16.mxu0 %vm3251_vm0, %v3249_v4 }
 0x26c   : > { %v830_v56 = vpop.f32.mrf.mxu0  ;;  %v873_v57 = vpop.f32.mrf.mxu1 }
 0x26d   : > { %v831_v13 = vadd.f32 %v830_v56, %v656_v8  ;;  %v874_v14 = vadd.f32 %v873_v57, %v664_v10 }
 0x26e   : > { %v832_v59 = vpop.f32.mrf.mxu0  ;;  %v2683_v60 = vpop.f32.mrf.mxu1 }
 0x26f   : > { %v833_v3 = vadd.f32 %v832_v59, %v660_v61 }
 0x270   : > { %v834_v62 = vpop.f32.mrf.mxu0  ;;  %v876_v63 = vpop.f32.mrf.mxu1 }
 0x271   : > { %v835_v11 = vadd.f32 %v834_v62, %v656_v8  ;;  %v877_v12 = vadd.f32 %v876_v63, %v664_v10 }
 0x272   : > { %v836_v0 = vpop.f32.mrf.mxu0  ;;  %v2684_v1 = vpop.f32.mrf.mxu1 }
 0x273   : > { %v837_v5 = vadd.f32 %v836_v0, %v660_v61  ;;  %v899_v15 = vpack.c.bf16 %v835_v11, %v831_v13  ;;  %v3581_v16 = vpack.c.bf16 %v877_v12, %v874_v14 }
 0x275   : > { %v3573_v7 = vpack.c.bf16 %v837_v5, %v833_v3 }
 0x277   : > { %v907_v9 = vsel %vm902_vm1, %v3573_v7, 0 }
 0x278   : > { %2686 = vmatpush3.bf16.xpose.msra.mxu1 %v907_v9 }
 0x279   : > { %2691 = vmatprep.subr.bf16.mxu1 %v3249_v4 }
 0x27f   : > { %2688 = vmatmul.mubr.msk.bf16.vlgmr.msra.gmra.mxu1 %vm902_vm1, %v899_v15 }
 0x280   : > { %2692 = vmatpush3.bf16.msra.mxu1 %v3581_v16  ;;  %2693 = vmatprep.mubr.msk.bf16.mxu1 %vm3251_vm0, %v3249_v4 }
 0x281   : > { %2697 = vmatprep.subr.bf16.mxu1 %v3249_v4 }
 0x33f   : > { %v943_v22 = vpop.f32.mrf.mxu1 }
 0x340   : > { %v950_v25 = vmul.f32 0.17677669, %v943_v22 }
 0x341   : > { %v2689_v26 = vpop.f32.mrf.mxu1 }
 0x342   : > { %v952_v28 = vadd.f32 %v950_v25, %v3596_v24 }
 0x343   : > { %v946_v29 = vpop.f32.mrf.mxu1 }
 0x344   : > { %v951_v31 = vmul.f32 0.17677669, %v946_v29  ;;  %v955_v32 = vsel %vm954_vm8, %v952_v28, -inf }
 0x345   : > { %956 = vmax.xlane.f32.xlu0 %v955_v32  ;;  %v2690_v33 = vpop.f32.mrf.mxu1 }
 0x346   : > { %v953_v34 = vadd.f32 %v951_v31, %v3599_v30 }
 0x348   : > { %v958_v35 = vsel %vm954_vm8, %v953_v34, -inf }
 0x349   : > { %959 = vmax.xlane.f32.xlu1 %v958_v35 }
 0x3ce   : > { %v957_v36 = vpop.xlane.xlu0 %956 }
 0x3cf   : > { %v961_v37 = vsub.f32 %v952_v28, %v957_v36 }
 0x3d1   : > { %v963_v38 = vmul.f32 1.442695, %v961_v37 }
 0x3d2   : > { %v960_v39 = vpop.xlane.xlu1 %959 }
 0x3d3   : > { %2980 = vpow2.f32 %v963_v38  ;;  %v962_v40 = vsub.f32 %v953_v34, %v960_v39 }
 0x3d5   : > { %v965_v41 = vmul.f32 1.442695, %v962_v40 }
 0x3d7   : > { %2982 = vpow2.f32 %v965_v41 }
 0x3e0   : > { %v2981_v42 = vpop.eup %2980 }
 0x3e1   : > { %v967_v43 = vsel %vm954_vm8, %v2981_v42, 0.0 }
 0x3e2   : > { %968 = vadd.xlane.f32.xlu0 %v967_v43 }
 0x3e4   : > { %v2983_v44 = vpop.eup %2982 }
 0x3e5   : > { %v970_v45 = vsel %vm954_vm8, %v2983_v44, 0.0 }
 0x3e6   : > { %971 = vadd.xlane.f32.xlu1 %v970_v45 }
 0x3f7   : > { %1023 = vrot.lane.b32.xlu1 %v899_v15, %s3253_s21 }
 0x3f8   : > { %1026 = vrot.lane.b32.xlu0 %v3573_v7, %s3253_s21 }
 0x3fb   : > { %1152 = vrot.lane.b32.xlu1 %v3573_v7, %s3254_s23 }
 0x3fc   : > { %1277 = vrot.lane.b32.xlu0 %v3573_v7, %s3255_s22 }
 0x3ff   : > { %1150 = vrot.lane.b32.xlu1 %v899_v15, %s3254_s23 }
 0x403   : > { %1275 = vrot.lane.b32.xlu1 %v899_v15, %s3255_s22 }
 0x46b   : > { %v969_v46 = vpop.xlane.xlu0 %968 }
 0x46c   : > { %2984 = vrcp.f32 %v969_v46 }
 0x46f   : > { %v972_v47 = vpop.xlane.xlu1 %971  ;;  %v1027_v49 = vpop.permute.xlu0 %1026 }
 0x470   : > { %2986 = vrcp.f32 %v972_v47  ;;  %v1032_v62 = vsel %vm902_vm1, %v1027_v49, 0 }
 0x473   : > { %v1024_v48 = vpop.permute.xlu1 %1023  ;;  %v1278_v56 = vpop.permute.xlu0 %1277 }
 0x474   : > { %v1283_v60 = vsel %vm902_vm1, %v1278_v56, 0 }
 0x477   : > { %v1153_v50 = vpop.permute.xlu1 %1152 }
 0x478   : > { %v1158_v51 = vsel %vm902_vm1, %v1153_v50, 0 }
 0x479   : > { %2710 = vmatpush3.bf16.xpose.msra.mxu0 %v1158_v51  ;;  %v2985_v52 = vpop.eup %2984 }
 0x47a   : > { %2721 = vmatprep.subr.bf16.mxu0 %v3249_v4  ;;  %v975_v57 = vmul.f32 %v2985_v52, %v2981_v42 }
 0x47b   : > { %v1151_v59 = vpop.permute.xlu1 %1150 }
 0x47d   : > { %v2987_v53 = vpop.eup %2986 }
 0x47e   : > { %v976_v58 = vmul.f32 %v2987_v53, %v2983_v44 }
 0x47f   : > { %v1276_v63 = vpop.permute.xlu1 %1275 }
 0x480   : > { %2712 = vmatmul.mubr.msk.bf16.vlgmr.msra.gmra.mxu0 %vm902_vm1, %v1151_v59  ;;  %v977_v61 = vpack.c.bf16 %v976_v58, %v975_v57 }
 0x481   : > { %2722 = vmatpush3.bf16.xpose.msra.mxu0 %v1283_v60  ;;  %2723 = vmatprep.mubr.msk.bf16.mxu0 %vm3251_vm0, %v3249_v4 }
 0x482   : > { %2694 = vmatmul.mubr.msk.bf16.vlgmr.msra.gmra.mxu1 %vm954_vm8, %v977_v61  ;;  %2733 = vmatprep.subr.bf16.mxu0 %v3249_v4 }
 0x483   : > { %2698 = vmatpush3.bf16.xpose.msra.mxu1 %v1032_v62  ;;  %2699 = vmatprep.mubr.msk.bf16.mxu1 %vm3251_vm0, %v3249_v4 }
 0x484   : > { %2703 = vmatprep.subr.bf16.mxu1 %v3249_v4 }
 0x488   : > { %2724 = vmatmul.mubr.msk.bf16.vlgmr.msra.gmra.mxu0 %vm902_vm1, %v1276_v63 }
 0x489   : > { %2749 = vmatprep.mubr.msk.bf16.mxu0 %vm3251_vm0, %v3249_v4 }
 0x48a   : > { %2700 = vmatmul.mubr.msk.bf16.vlgmr.msra.gmra.mxu1 %vm902_vm1, %v1024_v48 }
 0x48b   : > { %2705 = vmatprep.mubr.msk.bf16.mxu1 %vm3251_vm0, %v3249_v4 }
 0x540   : > { %v1194_v0 = vpop.f32.mrf.mxu0 }
 0x541   : > { %v1201_v12 = vmul.f32 0.17677669, %v1194_v0 }
 0x542   : > { %v3633_v1 = vpop.f32.mrf.mxu1  ;;  %v2713_v3 = vpop.f32.mrf.mxu0 }
 0x543   : > { %v1203_v23 = vadd.f32 %v1201_v12, %v3596_v24 }
 0x544   : > { %v2695_v5 = vpop.f32.mrf.mxu1  ;;  %v1197_v7 = vpop.f32.mrf.mxu0 }
 0x545   : > { %v1202_v20 = vmul.f32 0.17677669, %v1197_v7  ;;  %v1205_v32 = vsel %vm954_vm8, %v1203_v23, -inf }
 0x546   : > { %v3635_v8 = vpop.f32.mrf.mxu1  ;;  %v2714_v9 = vpop.f32.mrf.mxu0 }
 0x547   : > { %v1204_v35 = vadd.f32 %v1202_v20, %v3599_v30 }
 0x548   : > { %v2696_v10 = vpop.f32.mrf.mxu1  ;;  %v1319_v11 = vpop.f32.mrf.mxu0 }
 0x549   : > { %v1326_v33 = vmul.f32 0.17677669, %v1319_v11  ;;  %v1208_v37 = vsel %vm954_vm8, %v1204_v35, -inf }
 0x54a   : > { %v1068_v13 = vpop.f32.mrf.mxu1  ;;  %v2725_v14 = vpop.f32.mrf.mxu0 }
 0x54b   : > { %v1075_v15 = vmul.f32 0.17677669, %v1068_v13  ;;  %v1328_v39 = vadd.f32 %v1326_v33, %v3596_v24 }
 0x54c   : > { %v2701_v17 = vpop.f32.mrf.mxu1  ;;  %v1322_v18 = vpop.f32.mrf.mxu0 }
 0x54d   : > { %v1077_v19 = vadd.f32 %v1075_v15, %v3596_v24  ;;  %v1327_v25 = vmul.f32 0.17677669, %v1322_v18  ;;  %v1330_v40 = vsel %vm954_vm8, %v1328_v39, -inf }
 0x54e   : > { %v1071_v21 = vpop.f32.mrf.mxu1  ;;  %v2726_v22 = vpop.f32.mrf.mxu0 }
 0x54f   : > { %v1076_v26 = vmul.f32 0.17677669, %v1071_v21  ;;  %v1079_v28 = vsel %vm954_vm8, %v1077_v19, -inf  ;;  %v1329_v36 = vadd.f32 %v1327_v25, %v3599_v30 }
 0x550   : > { %1080 = vmax.xlane.f32.xlu0 %v1079_v28  ;;  %v2702_v29 = vpop.f32.mrf.mxu1 }
 0x551   : > { %v1078_v31 = vadd.f32 %v1076_v26, %v3599_v30  ;;  %v1333_v38 = vsel %vm954_vm8, %v1329_v36, -inf }
 0x553   : > { %v1082_v34 = vsel %vm954_vm8, %v1078_v31, -inf }
 0x554   : > { %1206 = vmax.xlane.f32.xlu0 %v1205_v32  ;;  %1083 = vmax.xlane.f32.xlu1 %v1082_v34 }
 0x558   : > { %1209 = vmax.xlane.f32.xlu0 %v1208_v37  ;;  %1334 = vmax.xlane.f32.xlu1 %v1333_v38 }
 0x55c   : > { %1331 = vmax.xlane.f32.xlu0 %v1330_v40  ;;  %v2889_v40 = vld [vmem:[#allocation4 + $0x30] sm:$0xff]  }
 0x5d9   : > { %v1081_v41 = vpop.xlane.xlu0 %1080 }
 0x5da   : > { %v1085_v49 = vsub.f32 %v1077_v19, %v1081_v41  ;;  %v2890_v41 = vld [vmem:[#allocation4 + $0x28] sm:$0xff]  }
 0x5dc   : > { %v1087_v56 = vmul.f32 1.442695, %v1085_v49 }
 0x5dd   : > { %v1207_v42 = vpop.xlane.xlu0 %1206  ;;  %v1084_v43 = vpop.xlane.xlu1 %1083 }
 0x5de   : > { %v1211_v44 = vsub.f32 %v1203_v23, %v1207_v42  ;;  %v1086_v50 = vsub.f32 %v1078_v31, %v1084_v43  ;;  %v2891_v42 = vld [vmem:[#allocation4 + $0x20] sm:$0xff]   ;;  %v2892_v43 = vld [vmem:[#allocation4 + $0x18] sm:$0xff]  }
 0x5e0   : > { %v1213_v45 = vmul.f32 1.442695, %v1211_v44  ;;  %v1089_v57 = vmul.f32 1.442695, %v1086_v50 }
 0x5e1   : > { %v1210_v46 = vpop.xlane.xlu0 %1209  ;;  %v1335_v30 = vpop.xlane.xlu1 %1334 }
 0x5e2   : > { %2988 = vpow2.f32 %v1213_v45  ;;  %v1212_v47 = vsub.f32 %v1204_v35, %v1210_v46  ;;  %v1337_v48 = vsub.f32 %v1329_v36, %v1335_v30  ;;  %v2893_v46 = vld [vmem:[#allocation4 + $0x10] sm:$0xff]  }
 0x5e4   : > { %v1215_v51 = vmul.f32 1.442695, %v1212_v47  ;;  %v1340_v52 = vmul.f32 1.442695, %v1337_v48  ;;  %v2894_v48 = vld [vmem:[#allocation4 + $0x8] sm:$0xff]  }
 0x5e5   : > { %v1332_v24 = vpop.xlane.xlu0 %1331 }
 0x5e6   : > { %2990 = vpow2.f32 %v1215_v51  ;;  %v1336_v53 = vsub.f32 %v1328_v39, %v1332_v24  ;;  %v2888_v39 = vld [vmem:[#allocation4 + $0x38] sm:$0xff]  }
 0x5e7   : > { %2992 = vpow2.f32 %v1340_v52  ;;  %2734 = vmatpush3.bf16.msra.mxu0 %v2888_v39  ;;  %v2895_v52 = vld [vmem:[#allocation4] sm:$0xff]  }
 0x5e8   : > { %v1338_v58 = vmul.f32 1.442695, %v1336_v53  ;;  %2735 = vmatprep.subr.bf16.mxu0 %v3249_v4 }
 0x5ea   : > { %2994 = vpow2.f32 %v1338_v58 }
 0x5eb   : > { %2996 = vpow2.f32 %v1087_v56  ;;  %2736 = vmatpush3.bf16.msra.mxu0 %v2889_v40 }
 0x5ec   : > { %2998 = vpow2.f32 %v1089_v57  ;;  %2737 = vmatprep.subr.bf16.mxu0 %v3249_v4 }
 0x5ef   : > { %v2989_v59 = vpop.eup %2988  ;;  %2738 = vmatpush3.bf16.msra.mxu0 %v2890_v41  ;;  %v2904_v41 = vld [vmem:[%s3859_s10 + $0xc4] ss:$16 sps:$4 sm:$0xff]  }
 0x5f0   : > { %v1217_v60 = vsel %vm954_vm8, %v2989_v59, 0.0  ;;  %2739 = vmatprep.subr.bf16.mxu0 %v3249_v4 }
 0x5f1   : > { %1218 = vadd.xlane.f32.xlu0 %v1217_v60 }
 0x5f3   : > { %v2991_v61 = vpop.eup %2990  ;;  %2740 = vmatpush3.bf16.msra.mxu0 %v2891_v42  ;;  %v2907_v42 = vld [vmem:[%s3859_s10 + $0xcc] ss:$16 sps:$4 sm:$0xff]  }
 0x5f4   : > { %v1220_v62 = vsel %vm954_vm8, %v2991_v61, 0.0  ;;  %v2993_v63 = vpop.eup %2992  ;;  %2741 = vmatprep.subr.bf16.mxu0 %v3249_v4 }
 0x5f5   : > { %1221 = vadd.xlane.f32.xlu1 %v1220_v62  ;;  %v1345_v7 = vsel %vm954_vm8, %v2993_v63, 0.0 }
 0x5f7   : > { %v2995_v0 = vpop.eup %2994  ;;  %2742 = vmatpush3.bf16.msra.mxu0 %v2892_v43  ;;  %v2902_v43 = vld [vmem:[%s3859_s10 + $0xc0] ss:$16 sps:$4 sm:$0xff]  }
 0x5f8   : > { %v2997_v3 = vpop.eup %2996  ;;  %v1342_v5 = vsel %vm954_vm8, %v2995_v0, 0.0  ;;  %2743 = vmatprep.subr.bf16.mxu0 %v3249_v4 }
 0x5f9   : > { %v2999_v9 = vpop.eup %2998  ;;  %1343 = vadd.xlane.f32.xlu0 %v1342_v5  ;;  %1346 = vadd.xlane.f32.xlu1 %v1345_v7  ;;  %v1091_v10 = vsel %vm954_vm8, %v2997_v3, 0.0 }
 0x5fa   : > { %v1094_v11 = vsel %vm954_vm8, %v2999_v9, 0.0 }
 0x5fb   : > { %2744 = vmatpush3.bf16.msra.mxu0 %v2893_v46  ;;  %v2913_v46 = vld [vmem:[%s3859_s10 + $0xac] ss:$16 sps:$4 sm:$0xff]  }
 0x5fc   : > { %2745 = vmatprep.subr.bf16.mxu0 %v3249_v4 }
 0x5fd   : > { %1092 = vadd.xlane.f32.xlu0 %v1091_v10  ;;  %1095 = vadd.xlane.f32.xlu1 %v1094_v11 }
 0x5ff   : > { %2746 = vmatpush3.bf16.msra.mxu0 %v2894_v48  ;;  %v2914_v48 = vld [vmem:[%s3859_s10 + $0x80] ss:$16 sps:$4 sm:$0xff]  }
 0x600   : > { %2747 = vmatprep.subr.bf16.mxu0 %v3249_v4 }
 0x603   : > { %2748 = vmatpush3.bf16.msra.mxu0 %v2895_v52  ;;  %v2922_v52 = vld [vmem:[%s3859_s10 + $0x64] ss:$16 sps:$4 sm:$0xff]  }
 0x60e   : > { %1228 = vrot.lane.b32.xlu1 %v3581_v16, %s3254_s23 }
 0x612   : > { %1353 = vrot.lane.b32.xlu1 %v3581_v16, %s3255_s22 }
 0x613   : > { %1103 = vrot.lane.b32.xlu0 %v3581_v16, %s3253_s21 }
 0x67a   : > { %v1219_v12 = vpop.xlane.xlu0 %1218 }
 0x67e   : > { %v1222_v13 = vpop.xlane.xlu1 %1221 }
 0x682   : > { %v1344_v14 = vpop.xlane.xlu0 %1343  ;;  %v1347_v15 = vpop.xlane.xlu1 %1346 }
 0x686   : > { %v1093_v17 = vpop.xlane.xlu0 %1092  ;;  %v1096_v18 = vpop.xlane.xlu1 %1095 }
 0x687   : > { %3000 = vrcp.f32 %v1093_v17 }
 0x688   : > { %3002 = vrcp.f32 %v1096_v18 }
 0x689   : > { %3004 = vrcp.f32 %v1222_v13 }
 0x68a   : > { %v1104_v19 = vpop.permute.xlu0 %1103  ;;  %3006 = vrcp.f32 %v1219_v12  ;;  %v1229_v26 = vpop.permute.xlu1 %1228 }
 0x68b   : > { %2704 = vmatpush3.bf16.msra.mxu1 %v1104_v19  ;;  %3008 = vrcp.f32 %v1344_v14 }
 0x68c   : > { %2715 = vmatprep.subr.bf16.mxu1 %v3249_v4  ;;  %3010 = vrcp.f32 %v1347_v15 }
 0x68e   : > { %v1354_v35 = vpop.permute.xlu1 %1353 }
 0x694   : > { %v3001_v20 = vpop.eup %3000 }
 0x695   : > { %v3003_v21 = vpop.eup %3002  ;;  %v1099_v22 = vmul.f32 %v3001_v20, %v2997_v3  ;;  %v2515_v20 = vld [vmem:[#allocation6] ss:$0 sm:$0xff] }
 0x696   : > { %v1100_v16 = vmul.f32 %v3003_v21, %v2999_v9  ;;  %v3005_v25 = vpop.eup %3004  ;;  %v3032_v21 = vld [vmem:[%s3455_s26] sm:$0xff] }
 0x697   : > { %v3007_v28 = vpop.eup %3006  ;;  %v1226_v29 = vmul.f32 %v3005_v25, %v2991_v61 }
 0x698   : > { %v1101_v23 = vpack.c.bf16 %v1100_v16, %v1099_v22  ;;  %v1225_v31 = vmul.f32 %v3007_v28, %v2989_v59  ;;  %v3009_v32 = vpop.eup %3008 }
 0x699   : > { %v3011_v34 = vpop.eup %3010  ;;  %v1350_v36 = vmul.f32 %v3009_v32, %v2995_v0  ;;  %v2901_v32 = vld [vmem:[%s3859_s10 + $0xec] ss:$16 sps:$4 sm:$0xff]  }
 0x69a   : > { %2706 = vmatmul.mubr.msk.bf16.vlgmr.msra.gmra.mxu1 %vm954_vm8, %v1101_v23  ;;  %v1227_v33 = vpack.c.bf16 %v1226_v29, %v1225_v31  ;;  %v1351_v37 = vmul.f32 %v3011_v34, %v2993_v63  ;;  %v2898_v29 = vld [vmem:[%s3859_s10 + $0xe4] ss:$16 sps:$4 sm:$0xff]   ;;  %v2899_v31 = vld [vmem:[%s3859_s10 + $0xe8] ss:$16 sps:$4 sm:$0xff]   ;;  %1847 = vmatprep.subr.bf16.mxu0 %v2901_v32 }
 0x69b   : > { %2716 = vmatpush3.bf16.msra.mxu1 %v1229_v26  ;;  %2717 = vmatprep.mubr.msk.bf16.mxu1 %vm3251_vm0, %v3249_v4  ;;  %v2948_v32 = vld [vmem:[#allocation10 + $0x70] sm:$0xff]  }
 0x69c   : > { %2727 = vmatprep.subr.bf16.mxu1 %v3249_v4  ;;  %v1352_v38 = vpack.c.bf16 %v1351_v37, %v1350_v36 }
 0x6a2   : > { %2718 = vmatmul.mubr.msk.bf16.vlgmr.msra.gmra.mxu1 %vm954_vm8, %v1227_v33 }
 0x6a3   : > { %2728 = vmatpush3.bf16.msra.mxu1 %v1354_v35  ;;  %2729 = vmatprep.mubr.msk.bf16.mxu1 %vm3251_vm0, %v3249_v4 }
 0x6a4   : > { %1804 = vmatprep.subr.bf16.mxu1 %v2898_v29  ;;  %v2946_v29 = vld [vmem:[#allocation10 + $0x38] sm:$0xff]  }
 0x6aa   : > { %2730 = vmatmul.mubr.msk.bf16.vlgmr.msra.gmra.mxu1 %vm954_vm8, %v1352_v38 }
 0x6ab   : > { %1836 = vmatprep.mubr.bf16.mxu1 %v3250_v27 }
 0x75a   : > { %v1143_v44 = vpop.f32.mrf.mxu1 }
 0x75c   : > { %v2707_v45 = vpop.f32.mrf.mxu1 }
 0x75d   : > { %v2910_v45 = vld [vmem:[%s3859_s10 + $0xa4] ss:$16 sps:$4 sm:$0xff]  }
 0x75e   : > { %v1146_v30 = vpop.f32.mrf.mxu1 }
 0x75f   : > { %v2841_v47 = vpack.i.bf16 %v1146_v30, %v1143_v44  ;;  %v2905_v44 = vld [vmem:[%s3859_s10 + $0xc8] ss:$16 sps:$4 sm:$0xff]   ;;  %v2908_v30 = vld [vmem:[%s3859_s10 + $0xa0] ss:$16 sps:$4 sm:$0xff]  }
 0x760   : > { %v2708_v49 = vpop.f32.mrf.mxu1 }
 0x761   : > { %2842 = vrot.lane.b32.xlu1 %v2841_v47, %s3255_s22  ;;  %v2911_v47 = vld [vmem:[%s3859_s10 + $0xa8] ss:$16 sps:$4 sm:$0xff]   ;;  %v2916_v49 = vld [vmem:[%s3859_s10 + $0x84] ss:$16 sps:$4 sm:$0xff]  }
 0x762   : > { %v1268_v50 = vpop.f32.mrf.mxu1 }
 0x764   : > { %v2719_v51 = vpop.f32.mrf.mxu1 }
 0x765   : > { %v2919_v51 = vld [vmem:[%s3859_s10 + $0x8c] ss:$16 sps:$4 sm:$0xff]  }
 0x766   : > { %v1271_v24 = vpop.f32.mrf.mxu1 }
 0x767   : > { %v2846_v53 = vpack.i.bf16 %v1271_v24, %v1268_v50  ;;  %v2917_v50 = vld [vmem:[%s3859_s10 + $0x88] ss:$16 sps:$4 sm:$0xff]   ;;  %v2925_v24 = vld [vmem:[%s3859_s10 + $0x6c] ss:$16 sps:$4 sm:$0xff]  }
 0x768   : > { %v2720_v56 = vpop.f32.mrf.mxu1 }
 0x769   : > { %2847 = vrot.lane.b32.xlu0 %v2846_v53, %s3254_s23  ;;  %v2920_v53 = vld [vmem:[%s3859_s10 + $0x60] ss:$16 sps:$4 sm:$0xff]   ;;  %v2923_v56 = vld [vmem:[%s3859_s10 + $0x68] ss:$16 sps:$4 sm:$0xff]   ;;  %s573_s23 = scalar_lea.vmem %s3863_s14, %s2585_s17 }
 0x76a   : > { %v1393_v57 = vpop.f32.mrf.mxu1 }
 0x76c   : > { %v2731_v58 = vpop.f32.mrf.mxu1 }
 0x76d   : > { %v2931_v58 = vld [vmem:[%s3859_s10 + $0x4c] ss:$16 sps:$4 sm:$0xff]  }
 0x76e   : > { %v1396_v59 = vpop.f32.mrf.mxu1 }
 0x76f   : > { %v2851_v60 = vpack.i.bf16 %v1396_v59, %v1393_v57  ;;  %v2928_v57 = vld [vmem:[%s3859_s10 + $0x44] ss:$16 sps:$4 sm:$0xff]   ;;  %v2926_v59 = vld [vmem:[%s3859_s10 + $0x40] ss:$16 sps:$4 sm:$0xff]  }
 0x770   : > { %v2732_v61 = vpop.f32.mrf.mxu1 }
 0x771   : > { %2852 = vrot.lane.b32.xlu1 %v2851_v60, %s3253_s21  ;;  %v2929_v60 = vld [vmem:[%s3859_s10 + $0x48] ss:$16 sps:$4 sm:$0xff]   ;;  %v2934_v61 = vld [vmem:[%s3859_s10 + $0x24] ss:$16 sps:$4 sm:$0xff]  }
 0x7d3   : > { %v2843_v62 = vpop.permute.xlu1 %2842 }
 0x7d4   : > { %v2845_v0 = vunpack.i.h.bf16 %v2843_v62  ;;  %v2844_v3 = vunpack.i.l.bf16 %v2843_v62  ;;  %v2937_v62 = vld [vmem:[%s3859_s10 + $0x2c] ss:$16 sps:$4 sm:$0xff]  }
 0x7d6   : > { %v1425_v9 = vsel %vm902_vm1, %v3635_v8, %v2845_v0  ;;  %v1424_v10 = vsel %vm902_vm1, %v3633_v1, %v2844_v3  ;;  %v3033_v1 = vld [vmem:[%s3455_s26 + $0x8] sm:$0xff]  ;;  %v2940_v3 = vld [vmem:[%s3859_s10 + $0x4] ss:$16 sps:$4 sm:$0xff]  }
 0x7d7   : > { %v2935_v0 = vld [vmem:[%s3859_s10 + $0x28] ss:$16 sps:$4 sm:$0xff]  }
 0x7db   : > { %v2848_v63 = vpop.permute.xlu0 %2847 }
 0x7dc   : > { %v2850_v5 = vunpack.i.h.bf16 %v2848_v63  ;;  %v2849_v4 = vunpack.i.l.bf16 %v2848_v63  ;;  %v2932_v63 = vld [vmem:[%s3859_s10 + $0x20] ss:$16 sps:$4 sm:$0xff]  }
 0x7de   : > { %v1428_v13 = vsel %vm1426_vm9, %v1425_v9, %v2850_v5  ;;  %v1427_v14 = vsel %vm1426_vm9, %v1424_v10, %v2849_v4  ;;  %v2943_v5 = vld [vmem:[%s3859_s10 + $0xc] ss:$16 sps:$4 sm:$0xff]   ;;  %v2938_v4 = vld [vmem:[%s3859_s10] ss:$16 sps:$4 sm:$0xff]  }
 0x7e3   : > { %v2853_v7 = vpop.permute.xlu1 %2852 }
 0x7e4   : > { %v2855_v11 = vunpack.i.h.bf16 %v2853_v7  ;;  %v2854_v12 = vunpack.i.l.bf16 %v2853_v7  ;;  %v2941_v7 = vld [vmem:[%s3859_s10 + $0x8] ss:$16 sps:$4 sm:$0xff]  }
 0x7e6   : > { %v1431_v15 = vsel %vm1429_vm10, %v1428_v13, %v2855_v11  ;;  %v1430_v17 = vsel %vm1429_vm10, %v1427_v14, %v2854_v12 }
 0x7e7   : > { %v1432_v18 = vpack.c.bf16 %v1431_v15, %v1430_v17 }
 0x7e9   : > { %2750 = vmatmul.mubr.bf16.vlgmr.msra.gmra.mxu0 %v1432_v18  ;;  %v2516_v18 = vld [vmem:[#allocation7] ss:$0 sm:$0xff] }
 0x7ea   : > { %1879 = vmatprep.mubr.bf16.mxu0 %v3250_v27  ;;  %v2896_v27 = vld [vmem:[%s3859_s10 + $0xe0] ss:$16 sps:$4 sm:$0xff]   ;;  %1848 = vmatpush1.bf16.msra.mxu0 %v2899_v31 }
 0x7eb   : > { %1805 = vmatpush1.bf16.msra.mxu1 %v2896_v27  ;;  %1849 = vmatprep.subr.bf16.mxu0 %v2907_v42  ;;  %v2945_v27 = vld [vmem:[#allocation10 + $0xf8] sm:$0xff]   ;;  %v2958_v42 = vld [vmem:[#allocation10 + $0x20] sm:$0xff]  }
 0x7ec   : > { %1806 = vmatprep.subr.bf16.mxu1 %v2904_v41  ;;  %v2947_v31 = vld [vmem:[#allocation10 + $0xb8] sm:$0xff]   ;;  %v2957_v41 = vld [vmem:[#allocation10 + $0xe0] sm:$0xff]  }
 0x7ee   : > { %1850 = vmatpush1.bf16.msra.mxu0 %v2905_v44  ;;  %v2960_v44 = vld [vmem:[#allocation10 + $0x58] sm:$0xff]  }
 0x7ef   : > { %1807 = vmatpush1.bf16.msra.mxu1 %v2902_v43  ;;  %1851 = vmatprep.subr.bf16.mxu0 %v2913_v46  ;;  %v2959_v43 = vld [vmem:[#allocation10 + $0xa0] sm:$0xff]   ;;  %v2962_v46 = vld [vmem:[#allocation10 + $0x18] sm:$0xff]  }
 0x7f0   : > { %1808 = vmatprep.subr.bf16.mxu1 %v2910_v45  ;;  %v2961_v45 = vld [vmem:[#allocation10 + $0xd8] sm:$0xff]  }
 0x7f2   : > { %1852 = vmatpush1.bf16.msra.mxu0 %v2911_v47  ;;  %v2964_v47 = vld [vmem:[#allocation10 + $0x50] sm:$0xff]  }
 0x7f3   : > { %1809 = vmatpush1.bf16.msra.mxu1 %v2908_v30  ;;  %1853 = vmatprep.subr.bf16.mxu0 %v2919_v51  ;;  %v2963_v30 = vld [vmem:[#allocation10 + $0x98] sm:$0xff]   ;;  %v2968_v51 = vld [vmem:[#allocation10 + $0x48] sm:$0xff]  }
 0x7f4   : > { %1810 = vmatprep.subr.bf16.mxu1 %v2916_v49  ;;  %v2966_v49 = vld [vmem:[#allocation10 + $0x10] sm:$0xff]  }
 0x7f6   : > { %1854 = vmatpush1.bf16.msra.mxu0 %v2917_v50  ;;  %v2967_v50 = vld [vmem:[#allocation10 + $0x90] sm:$0xff]  }
 0x7f7   : > { %1811 = vmatpush1.bf16.msra.mxu1 %v2914_v48  ;;  %1855 = vmatprep.subr.bf16.mxu0 %v2925_v24  ;;  %v2965_v48 = vld [vmem:[#allocation10 + $0xd0] sm:$0xff]   ;;  %v2970_v24 = vld [vmem:[#allocation10 + $0x8] sm:$0xff]  }
 0x7f8   : > { %1812 = vmatprep.subr.bf16.mxu1 %v2922_v52  ;;  %v2969_v52 = vld [vmem:[#allocation10 + $0xc8] sm:$0xff]  }
 0x7fa   : > { %1856 = vmatpush1.bf16.msra.mxu0 %v2923_v56  ;;  %v2972_v56 = vld [vmem:[#allocation10 + $0x40] sm:$0xff]  }
 0x7fb   : > { %1813 = vmatpush1.bf16.msra.mxu1 %v2920_v53  ;;  %1857 = vmatprep.subr.bf16.mxu0 %v2931_v58  ;;  %v2971_v53 = vld [vmem:[#allocation10 + $0x88] sm:$0xff]   ;;  %v2974_v58 = vld [vmem:[#allocation10] sm:$0xff]  }
 0x7fc   : > { %1814 = vmatprep.subr.bf16.mxu1 %v2928_v57  ;;  %v2973_v57 = vld [vmem:[#allocation10 + $0xc0] sm:$0xff]  }
 0x7fe   : > { %1858 = vmatpush1.bf16.msra.mxu0 %v2929_v60  ;;  %v1622_v60 = vld [vmem:[%s3860_s11] sm:$0xf] }
 0x7ff   : > { %1815 = vmatpush1.bf16.msra.mxu1 %v2926_v59  ;;  %1859 = vmatprep.subr.bf16.mxu0 %v2937_v62  ;;  %v2975_v59 = vld [vmem:[#allocation10 + $0x80] sm:$0xff]   ;;  %v1627_v62 = vrot.slane %v1622_v60, %v3570_v2 }
 0x800   : > { %1816 = vmatprep.subr.bf16.mxu1 %v2934_v61  ;;  %v1638_v61 = vsub.s32 3, %v3561_v54 }
 0x802   : > { %1860 = vmatpush1.bf16.msra.mxu0 %v2935_v0  ;;  %v1631_v0 = vrot.slane %v1622_v60, %v659_v55 }
 0x803   : > { %1817 = vmatpush1.bf16.msra.mxu1 %v2932_v63  ;;  %1861 = vmatprep.subr.bf16.mxu0 %v2943_v5  ;;  %v1635_v63 = vrot.slane %v1622_v60, %v663_v6 }
 0x804   : > { %1818 = vmatprep.subr.bf16.mxu1 %v2940_v3  ;;  %v1639_v3 = vrot.slane %v1622_v60, %v1638_v61 }
 0x806   : > { %1862 = vmatpush1.bf16.msra.mxu0 %v2941_v7 }
 0x807   : > { %1819 = vmatpush1.bf16.msra.mxu1 %v2938_v4  ;;  %2643 = vmatprep.subr.bf16.mxu0 %v2945_v27 }
 0x8a9   : > { %v1531_v19 = vpop.f32.mrf.mxu0 }
 0x8aa   : > { %v1538_v22 = vadd.f32 %v3032_v21, %v1531_v19 }
 0x8ab   : > { %v2751_v16 = vpop.f32.mrf.mxu0 }
 0x8ac   : > { %v3687_v8 = vadd.f32 %v2515_v20, %v1538_v22  ;;  %v2517_v22 = vld [vmem:[#allocation9] ss:$0 sm:$0xff] }
 0x8ad   : > { %v1534_v23 = vpop.f32.mrf.mxu0 }
 0x8ae   : > { %v1539_v25 = vadd.f32 %v3033_v1, %v1534_v23  ;;  %1549 = vadd.xlane.f32.xlu0 %v3687_v8 }
 0x8af   : > { %v2752_v26 = vpop.f32.mrf.mxu0 }
 0x8b0   : > { %v3691_v28 = vadd.f32 %v2515_v20, %v1539_v25  ;;  %v2944_v26 = vld [vmem:[#allocation10 + $0x78] sm:$0xff]  }
 0x8b1   : > { %2621 = vmatprep.subr.bf16.mxu1 %v2944_v26 }
 0x8b2   : > { %1551 = vadd.xlane.f32.xlu1 %v3691_v28 }
 0x937   : > { %v1550_v33 = vpop.xlane.xlu0 %1549 }
 0x938   : > { %v1553_v34 = vmul.f32 0.0078125, %v1550_v33  ;;  %v2949_v33 = vld [vmem:[#allocation10 + $0xf0] sm:$0xff]  }
 0x93a   : > { %v3707_v35 = vsub.f32 %v3687_v8, %v1553_v34  ;;  %v2950_v34 = vld [vmem:[#allocation10 + $0x30] sm:$0xff]  }
 0x93b   : > { %v1552_v36 = vpop.xlane.xlu1 %1551 }
 0x93c   : > { %v1554_v37 = vmul.f32 0.0078125, %v1552_v36  ;;  %v1557_v38 = vmul.f32 %v3707_v35, %v3707_v35  ;;  %v2952_v36 = vld [vmem:[#allocation10 + $0x68] sm:$0xff]  }
 0x93e   : > { %v3712_v39 = vsub.f32 %v3691_v28, %v1554_v37  ;;  %1559 = vadd.xlane.f32.xlu0 %v1557_v38  ;;  %v2953_v37 = vld [vmem:[#allocation10 + $0xe8] sm:$0xff]  }
 0x93f   : > { %v2954_v38 = vld [vmem:[#allocation10 + $0x28] sm:$0xff]  }
 0x940   : > { %v1558_v40 = vmul.f32 %v3712_v39, %v3712_v39 }
 0x942   : > { %1561 = vadd.xlane.f32.xlu0 %v1558_v40  ;;  %v2956_v40 = vld [vmem:[#allocation10 + $0x60] sm:$0xff]  }
 0x9c7   : > { %v1560_v9 = vpop.xlane.xlu0 %1559 }
 0x9c8   : > { %v1563_v10 = vmul.f32 0.0078125, %v1560_v9 }
 0x9ca   : > { %v1565_v11 = vadd.f32 1e-05, %v1563_v10 }
 0x9cb   : > { %v1562_v12 = vpop.xlane.xlu0 %1561 }
 0x9cc   : > { %3012 = vrsqrt.f32 %v1565_v11  ;;  %v1564_v13 = vmul.f32 0.0078125, %v1562_v12 }
 0x9ce   : > { %v1566_v14 = vadd.f32 1e-05, %v1564_v13 }
 0x9d0   : > { %3014 = vrsqrt.f32 %v1566_v14 }
 0x9d9   : > { %v3013_v15 = vpop.eup %3012 }
 0x9da   : > { %v1569_v17 = vmul.f32 %v3013_v15, %v3707_v35  ;;  %v2951_v35 = vld [vmem:[#allocation10 + $0xb0] sm:$0xff]  }
 0x9dc   : > { %v1578_v21 = vmul.f32 %v2516_v18, %v1569_v17 }
 0x9dd   : > { %v3015_v19 = vpop.eup %3014 }
 0x9de   : > { %v1570_v20 = vmul.f32 %v3015_v19, %v3712_v39  ;;  %v1587_v23 = vadd.f32 %v2517_v22, %v1578_v21  ;;  %v2955_v39 = vld [vmem:[#allocation10 + $0xa8] sm:$0xff]  }
 0x9e0   : > { %v1579_v16 = vmul.f32 %v2516_v18, %v1570_v20 }
 0x9e2   : > { %v1588_v1 = vadd.f32 %v2517_v22, %v1579_v16 }
 0x9e4   : > { %v1589_v25 = vpack.c.bf16 %v1588_v1, %v1587_v23 }
 0x9e6   : > { %1837 = vmatmul.mubr.bf16.vlgmr.msra.gmra.mxu1 %v1589_v25  ;;  %1880 = vmatmul.mubr.bf16.vlgmr.msra.gmra.mxu0 %v1589_v25 }
 0x9e7   : > { %2622 = vmatpush3.bf16.msra.mxu1 %v2946_v29  ;;  %2644 = vmatpush3.bf16.msra.mxu0 %v2947_v31 }
 0x9e8   : > { %2623 = vmatprep.subr.bf16.mxu1 %v2948_v32  ;;  %2645 = vmatprep.subr.bf16.mxu0 %v2949_v33 }
 0x9eb   : > { %2624 = vmatpush3.bf16.msra.mxu1 %v2950_v34  ;;  %2646 = vmatpush3.bf16.msra.mxu0 %v2951_v35 }
 0x9ec   : > { %2625 = vmatprep.subr.bf16.mxu1 %v2952_v36  ;;  %2647 = vmatprep.subr.bf16.mxu0 %v2953_v37 }
 0x9ef   : > { %2626 = vmatpush3.bf16.msra.mxu1 %v2954_v38  ;;  %2648 = vmatpush3.bf16.msra.mxu0 %v2955_v39 }
 0x9f0   : > { %2627 = vmatprep.subr.bf16.mxu1 %v2956_v40  ;;  %2649 = vmatprep.subr.bf16.mxu0 %v2957_v41 }
 0x9f3   : > { %2628 = vmatpush3.bf16.msra.mxu1 %v2958_v42  ;;  %2650 = vmatpush3.bf16.msra.mxu0 %v2959_v43 }
 0x9f4   : > { %2629 = vmatprep.subr.bf16.mxu1 %v2960_v44  ;;  %2651 = vmatprep.subr.bf16.mxu0 %v2961_v45 }
 0x9f7   : > { %2630 = vmatpush3.bf16.msra.mxu1 %v2962_v46  ;;  %2652 = vmatpush3.bf16.msra.mxu0 %v2963_v30 }
 0x9f8   : > { %2631 = vmatprep.subr.bf16.mxu1 %v2964_v47  ;;  %2653 = vmatprep.subr.bf16.mxu0 %v2965_v48 }
 0x9fb   : > { %2632 = vmatpush3.bf16.msra.mxu1 %v2966_v49  ;;  %2654 = vmatpush3.bf16.msra.mxu0 %v2967_v50 }
 0x9fc   : > { %2633 = vmatprep.subr.bf16.mxu1 %v2968_v51  ;;  %2655 = vmatprep.subr.bf16.mxu0 %v2969_v52 }
 0x9ff   : > { %2634 = vmatpush3.bf16.msra.mxu1 %v2970_v24  ;;  %2656 = vmatpush3.bf16.msra.mxu0 %v2971_v53 }
 0xa00   : > { %2635 = vmatprep.subr.bf16.mxu1 %v2972_v56  ;;  %2657 = vmatprep.subr.bf16.mxu0 %v2973_v57 }
 0xa03   : > { %2636 = vmatpush3.bf16.msra.mxu1 %v2974_v58  ;;  %2658 = vmatpush3.bf16.msra.mxu0 %v2975_v59 }
 0xaa6   : > { %v1838_v5 = vpop.f32.mrf.mxu1  ;;  %v1881_v4 = vpop.f32.mrf.mxu0 }
 0xaa7   : > { %v3811_v7 = vadd.f32 %v1838_v5, %v1627_v62  ;;  %v3813_v9 = vadd.f32 %v1881_v4, %v1635_v63 }
 0xaa8   : > { %v1840_v10 = vpop.f32.mrf.mxu1  ;;  %v1883_v11 = vpop.f32.mrf.mxu0 }
 0xaa9   : > { %v1898_v12 = vmul.f32 0.044715, %v3811_v7  ;;  %v1900_v13 = vmul.f32 0.044715, %v3813_v9  ;;  %v1841_v2 = vadd.f32 %v1840_v10, %v1631_v0  ;;  %v3817_v14 = vadd.f32 %v1883_v11, %v1639_v3 }
 0xaaa   : > { %v1842_v6 = vpop.f32.mrf.mxu1  ;;  %v1885_v15 = vpop.f32.mrf.mxu0  ;;  %v1890_v10 = vmul.f32 0.5, %v3811_v7 }
 0xaab   : > { %v1906_v54 = vmul.f32 %v1898_v12, %v3811_v7  ;;  %v1908_v55 = vmul.f32 %v1900_v13, %v3813_v9  ;;  %v1899_v17 = vmul.f32 0.044715, %v1841_v2  ;;  %v1901_v18 = vmul.f32 0.044715, %v3817_v14 }
 0xaac   : > { %v1843_v19 = vadd.f32 %v1842_v6, %v1627_v62  ;;  %v3822_v20 = vadd.f32 %v1885_v15, %v1635_v63  ;;  %v1844_v21 = vpop.f32.mrf.mxu1  ;;  %v1887_v22 = vpop.f32.mrf.mxu0  ;;  %v1891_v5 = vmul.f32 0.5, %v1841_v2 }
 0xaad   : > { %v1914_v16 = vmul.f32 %v1906_v54, %v3811_v7  ;;  %v1916_v23 = vmul.f32 %v1908_v55, %v3813_v9  ;;  %v1907_v1 = vmul.f32 %v1899_v17, %v1841_v2  ;;  %v1909_v25 = vmul.f32 %v1901_v18, %v3817_v14 }
 0xaae   : > { %v1902_v26 = vmul.f32 0.044715, %v1843_v19  ;;  %v1904_v27 = vmul.f32 0.044715, %v3822_v20  ;;  %v1845_v29 = vadd.f32 %v1844_v21, %v1631_v0  ;;  %v1888_v31 = vadd.f32 %v1887_v22, %v1639_v3 }
 0xaaf   : > { %v1922_v32 = vadd.f32 %v1914_v16, %v3811_v7  ;;  %v1924_v33 = vadd.f32 %v1916_v23, %v3813_v9  ;;  %v1915_v34 = vmul.f32 %v1907_v1, %v1841_v2  ;;  %v1917_v35 = vmul.f32 %v1909_v25, %v3817_v14 }
 0xab0   : > { %v1910_v36 = vmul.f32 %v1902_v26, %v1843_v19  ;;  %v1912_v37 = vmul.f32 %v1904_v27, %v3822_v20  ;;  %v1903_v38 = vmul.f32 0.044715, %v1845_v29  ;;  %v1905_v39 = vmul.f32 0.044715, %v1888_v31 }
 0xab1   : > { %v1930_v40 = vmul.f32 0.7978846, %v1922_v32  ;;  %v1932_v41 = vmul.f32 0.7978846, %v1924_v33  ;;  %v1923_v42 = vadd.f32 %v1915_v34, %v1841_v2  ;;  %v1925_v47 = vadd.f32 %v1917_v35, %v3817_v14 }
 0xab2   : > { %v1918_v43 = vmul.f32 %v1910_v36, %v1843_v19  ;;  %v1920_v44 = vmul.f32 %v1912_v37, %v3822_v20  ;;  %v1911_v45 = vmul.f32 %v1903_v38, %v1845_v29  ;;  %v1913_v46 = vmul.f32 %v1905_v39, %v1888_v31 }
 0xab3   : > { %v1931_v30 = vmul.f32 0.7978846, %v1923_v42  ;;  %3016 = vtanh.f32 %v1930_v40  ;;  %v1933_v52 = vmul.f32 0.7978846, %v1925_v47  ;;  %v1894_v6 = vmul.f32 0.5, %v1843_v19 }
 0xab4   : > { %v1926_v48 = vadd.f32 %v1918_v43, %v1843_v19  ;;  %v1928_v49 = vadd.f32 %v1920_v44, %v3822_v20  ;;  %v1919_v50 = vmul.f32 %v1911_v45, %v1845_v29  ;;  %3018 = vtanh.f32 %v1932_v41  ;;  %v2582_v44 = vld [vmem:[#allocation12] ss:$0 sm:$0xff] }
 0xab5   : > { %v1921_v51 = vmul.f32 %v1913_v46, %v1888_v31  ;;  %3020 = vtanh.f32 %v1931_v30  ;;  %v1895_v17 = vmul.f32 0.5, %v1845_v29  ;;  %v1896_v21 = vmul.f32 0.5, %v3822_v20 }
 0xab6   : > { %v1934_v24 = vmul.f32 0.7978846, %v1926_v48  ;;  %v1936_v53 = vmul.f32 0.7978846, %v1928_v49  ;;  %v1927_v56 = vadd.f32 %v1919_v50, %v1845_v29  ;;  %3022 = vtanh.f32 %v1933_v52 }
 0xab7   : > { %v1929_v57 = vadd.f32 %v1921_v51, %v1888_v31  ;;  %v1893_v16 = vmul.f32 0.5, %v3817_v14  ;;  %v1897_v23 = vmul.f32 0.5, %v1888_v31  ;;  %v1892_v7 = vmul.f32 0.5, %v3813_v9 }
 0xab8   : > { %3024 = vtanh.f32 %v1934_v24  ;;  %v1935_v58 = vmul.f32 0.7978846, %v1927_v56 }
 0xab9   : > { %3026 = vtanh.f32 %v1936_v53  ;;  %v1937_v59 = vmul.f32 0.7978846, %v1929_v57 }
 0xaba   : > { %3028 = vtanh.f32 %v1935_v58 }
 0xabb   : > { %3030 = vtanh.f32 %v1937_v59 }
 0xac0   : > { %v3017_v60 = vpop.eup %3016 }
 0xac1   : > { %v3019_v61 = vpop.eup %3018  ;;  %v1946_v15 = vadd.f32 1.0, %v3017_v60 }
 0xac2   : > { %v3021_v62 = vpop.eup %3020  ;;  %v1948_v22 = vadd.f32 1.0, %v3019_v61 }
 0xac3   : > { %v3023_v63 = vpop.eup %3022  ;;  %v1947_v4 = vadd.f32 1.0, %v3021_v62  ;;  %v1954_v33 = vmul.f32 %v1946_v15, %v1890_v10 }
 0xac4   : > { %v1949_v13 = vadd.f32 1.0, %v3023_v63  ;;  %v1956_v35 = vmul.f32 %v1948_v22, %v1892_v7 }
 0xac5   : > { %v3025_v0 = vpop.eup %3024  ;;  %v1955_v25 = vmul.f32 %v1947_v4, %v1891_v5 }
 0xac6   : > { %v3027_v3 = vpop.eup %3026  ;;  %v1950_v11 = vadd.f32 1.0, %v3025_v0  ;;  %v1957_v32 = vmul.f32 %v1949_v13, %v1893_v16 }
 0xac7   : > { %v3029_v12 = vpop.eup %3028  ;;  %v1952_v54 = vadd.f32 1.0, %v3027_v3 }
 0xac8   : > { %v3031_v55 = vpop.eup %3030  ;;  %v1951_v18 = vadd.f32 1.0, %v3029_v12  ;;  %v1958_v2 = vmul.f32 %v1950_v11, %v1894_v6 }
 0xac9   : > { %v1953_v1 = vadd.f32 1.0, %v3031_v55  ;;  %v1960_v27 = vmul.f32 %v1952_v54, %v1896_v21 }
 0xaca   : > { %v1959_v26 = vmul.f32 %v1951_v18, %v1895_v17  ;;  %v1962_v36 = vpack.c.bf16 %v1958_v2, %v1954_v33 }
 0xacb   : > { %v1961_v19 = vmul.f32 %v1953_v1, %v1897_v23  ;;  %v1964_v20 = vpack.c.bf16 %v1960_v27, %v1956_v35 }
 0xacc   : > { %v1963_v34 = vpack.c.bf16 %v1959_v26, %v1955_v25 }
 0xacd   : > { %v1965_v29 = vpack.c.bf16 %v1961_v19, %v1957_v32 }
 0xace   : > { %2254 = vmatprep.mubr.bf16.mxu1 %v1963_v34 }
 0xacf   : > { %2295 = vmatprep.mubr.bf16.mxu0 %v1965_v29  ;;  %2255 = vmatmul.mubr.bf16.vlgmr.msra.gmra.mxu1 %v1962_v36 }
 0xad0   : > { %2296 = vmatmul.mubr.bf16.vlgmr.msra.gmra.mxu0 %v1964_v20 }
 0xb8f   : > { %v2637_v14 = vpop.f32.mrf.mxu1 }
 0xb90   : > { %v2659_v31 = vpop.f32.mrf.mxu0 }
 0xb91   : > { %v2638_v37 = vpop.f32.mrf.mxu1 }
 0xb92   : > { %v2639_v38 = vadd.f32 %v2638_v37, %v2637_v14  ;;  %v2660_v39 = vpop.f32.mrf.mxu0 }
 0xb93   : > { %v2661_v9 = vadd.f32 %v2660_v39, %v2659_v31  ;;  %v2640_v40 = vpop.f32.mrf.mxu1 }
 0xb94   : > { %v2662_v41 = vpop.f32.mrf.mxu0 }
 0xb95   : > { %v2298_v42 = vadd.f32 %v2661_v9, %v2639_v38  ;;  %v2641_v43 = vpop.f32.mrf.mxu1 }
 0xb96   : > { %v2642_v45 = vadd.f32 %v2641_v43, %v2640_v40  ;;  %v2663_v46 = vpop.f32.mrf.mxu0 }
 0xb97   : > { %v2304_v30 = vadd.f32 %v2298_v42, %v3687_v8  ;;  %v2664_v47 = vadd.f32 %v2663_v46, %v2662_v41 }
 0xb99   : > { %v2313_v48 = vadd.f32 %v2582_v44, %v2304_v30  ;;  %v2301_v49 = vadd.f32 %v2664_v47, %v2642_v45 }
 0xb9b   : > { %2315 = vst [vmem:[%s573_s23] sm:$0xff] %v2313_v48  ;;  %v2305_v50 = vadd.f32 %v2301_v49, %v3691_v28 }
 0xb9d   : > { %v2314_v51 = vadd.f32 %v2582_v44, %v2305_v50 }
 0xb9f   : > { %2316 = vst [vmem:[%s573_s23 + $0x8] sm:$0xff] %v2314_v51 }
 0xba0 PF: > { %s3878_s22 = sld [smem:[#allocation17_spill]] }
 0xba6   : > { %s28_s29 = sadd.s32 1, %s3878_s22  }
 0xba7   : > { %p25_p10 = scmp.ge.s32.totalorder %s28_s29, 4  }
 0xba9   :  { %27 = sbr.rel (!%p25_p10) target bundleno = 4 (0x4), region = 138 }
 0xbae   :  { %2338 = vsyncpa [#allocation3], 1 }
 0xbaf   :  { %2340 = vsyncpa [#allocation3 + $0x1], 1 }
 0xbb0   :  { %2341 = vsyncpa [#allocation5], 1 }
 0xbb1   :  { %2342 = vsyncpa [#allocation8], 1 }
 0xbb2   :  { %2343 = vsyncpa [#allocation11], 1 }

// kernel: caption_decoder_forward.4
= control target key start
LH: loop header
LB: loop body
LE: loop exit
PB: predicated region body
PF: predicated region fallthrough
CT: control target
= control target key end

     0   :  { %s2876_s29 = smov 0   ;;  %s3421_s0 = inlined_call_operand.vmem [shape: f32[2,16,128], index: 0, kind: input, shape index: {}, may-alias: {0,14}]   ;;  %s3422_s1 = inlined_call_operand.vmem [shape: f32[2,1,16], index: 1, kind: input, shape index: {}]   ;;  %s3423_s2 = inlined_call_operand.vmem [shape: f32[1,128], index: 2, kind: input, shape index: {}]   ;;  %s3424_s3 = inlined_call_operand.vmem [shape: f32[1,128], index: 3, kind: input, shape index: {}]   ;;  %s3425_s4 = inlined_call_operand.vmem [shape: bf16[128,384], index: 4, kind: input, shape index: {}]   ;;  %s3426_s5 = inlined_call_operand.vmem [shape: f32[1,384], index: 5, kind: input, shape index: {}]   ;;  %s3427_s6 = inlined_call_operand.vmem [shape: bf16[128,128], index: 6, kind: input, shape index: {}]   ;;  %s3428_s7 = inlined_call_operand.vmem [shape: f32[1,128], index: 7, kind: input, shape index: {}]   ;;  %s3429_s8 = inlined_call_operand.vmem [shape: f32[1,128], index: 8, kind: input, shape index: {}]   ;;  %s3430_s9 = inlined_call_operand.vmem [shape: f32[1,128], index: 9, kind: input, shape index: {}]   ;;  %s3431_s10 = inlined_call_operand.vmem [shape: bf16[128,512], index: 10, kind: input, shape index: {}]   ;;  %s3432_s11 = inlined_call_operand.vmem [shape: f32[1,512], index: 11, kind: input, shape index: {}]   ;;  %s3433_s12 = inlined_call_operand.vmem [shape: bf16[512,128], index: 12, kind: input, shape index: {}]   ;;  %s3434_s13 = inlined_call_operand.vmem [shape: f32[1,128], index: 13, kind: input, shape index: {}]   ;;  %s3435_s14 = inlined_call_operand.vmem [shape: f32[2,16,128], index: 14, kind: output, shape index: {}, may-alias: {0,14}]  }
   0x1 LB: > { %s2289_s30 = sadd.s32 4294967295, %s2792_s29   ;;  %p2293_p0 = scmp.ge.s32.totalorder %s2792_s29, 1  ;;  %s2792_s29 = sphi %s2876_s29, %s24_s29  }
   0x2   : > { %p420_p1 = scmp.lt.s32.totalorder %s2792_s29, 3 }
   0x4   : > { %p421_p2 = pnand %p2293_p0, %p420_p1 }
   0x5   : > { %p469_p3 = scmp.lt.s32.totalorder (!%p421_p2), %s2289_s30, 1  ;;  %s2798_s28 = smov (!%p421_p2), 96  }
   0x6   : > { %424 = sbr.rel (%p421_p2) target bundleno = 2875 (0xb3b), region = 76  ;;  %s2799_s16 = smov (!%p421_p2), 64  }
   0x7   : > { %s2800_s17 = smov (!%p421_p2), 32  }
   0xb   : > { %s3437_s30 = smov (!%p469_p3, %s2289_s30), 1  ;;  %v2608_v2 = vld [vmem:[%s3425_s4 + $0xac] ss:$12 sps:$4 sm:$0xff]   ;;  %v2610_v3 = vld [vmem:[%s3425_s4 + $0xa8] ss:$12 sps:$4 sm:$0xff]   ;;  %v2794_v4 = vmov 0.0   ;;  %v561_v53 = vlaneseq }
   0xc   : > { %s2410_s15 = sshll.u32 %s3437_s30, 4  ;;  %2490 = vmatprep.subr.bf16.mxu1 %v2794_v4  ;;  %v2611_v5 = vld [vmem:[%s3425_s4 + $0xb0] ss:$12 sps:$4 sm:$0xff]   ;;  %704 = vmatprep.subr.bf16.mxu0 %v2608_v2  ;;  %v2612_v14 = vld [vmem:[%s3425_s4 + $0x94] ss:$12 sps:$4 sm:$0xff]   ;;  %v2795_v27 = vmov 0   ;;  %s476_s27 = scalar_lea.vmem %s3422_s1, %s3437_s30 }
   0xd   : > { %s2892_s18 = scalar_lea.vmem %s3421_s0, %s2410_s15  ;;  %705 = vmatpush1.bf16.msra.mxu0 %v2610_v3  ;;  %2491 = vmatpush3.bf16.msra.mxu1 %v2611_v5  ;;  %v2614_v15 = vld [vmem:[%s3425_s4 + $0x90] ss:$12 sps:$4 sm:$0xff]   ;;  %v2615_v16 = vld [vmem:[%s3425_s4 + $0x98] ss:$12 sps:$4 sm:$0xff]   ;;  %v2619_v19 = vld [vmem:[%s3425_s4 + $0x80] ss:$12 sps:$4 sm:$0xff]   ;;  %s481_s23 = scalar_lea.vmem %s3435_s14, %s2410_s15 }
   0xe   : > { %v483_v0 = vld [vmem:[%s2892_s18] sm:$0xff]  ;;  %v484_v1 = vld [vmem:[%s2892_s18 + $0x8] sm:$0xff]  ;;  %2492 = vmatprep.subr.bf16.mxu1 %v2794_v4  ;;  %706 = vmatprep.subr.bf16.mxu0 %v2612_v14  ;;  %v2627_v25 = vld [vmem:[%s3425_s4 + $0x50] ss:$12 sps:$4 sm:$0xff]   ;;  %vm2796_vm0 = vmmov 0   ;;  %v3001_v54 = vshrl.u32 %v561_v53, 7 }
   0xf   : > { %485 = vadd.xlane.f32.xlu0 %v483_v0  ;;  %v2616_v17 = vld [vmem:[%s3425_s4 + $0x7c] ss:$12 sps:$4 sm:$0xff]   ;;  %v2618_v18 = vld [vmem:[%s3425_s4 + $0x78] ss:$12 sps:$4 sm:$0xff]   ;;  %v2622_v21 = vld [vmem:[%s3425_s4 + $0x60] ss:$12 sps:$4 sm:$0xff]   ;;  %736 = vmatprep.mubr.bf16.mxu0 %v2795_v27 }
  0x10   : > { %v2620_v20 = vld [vmem:[%s3425_s4 + $0x64] ss:$12 sps:$4 sm:$0xff]   ;;  %v2623_v22 = vld [vmem:[%s3425_s4 + $0x68] ss:$12 sps:$4 sm:$0xff]   ;;  %v2624_v23 = vld [vmem:[%s3425_s4 + $0x4c] ss:$12 sps:$4 sm:$0xff]   ;;  %2506 = vmatprep.mubr.msk.bf16.mxu1 %vm2796_vm0, %v2794_v4 }
  0x11   : > { %707 = vmatpush1.bf16.msra.mxu0 %v2614_v15  ;;  %2493 = vmatpush3.bf16.msra.mxu1 %v2615_v16  ;;  %v2626_v24 = vld [vmem:[%s3425_s4 + $0x48] ss:$12 sps:$4 sm:$0xff]   ;;  %v2630_v28 = vld [vmem:[%s3425_s4 + $0x30] ss:$12 sps:$4 sm:$0xff]   ;;  %v2631_v29 = vld [vmem:[%s3425_s4 + $0x38] ss:$12 sps:$4 sm:$0xff]  }
  0x12   : > { %2494 = vmatprep.subr.bf16.mxu1 %v2794_v4  ;;  %708 = vmatprep.subr.bf16.mxu0 %v2616_v17  ;;  %v2628_v26 = vld [vmem:[%s3425_s4 + $0x34] ss:$12 sps:$4 sm:$0xff]   ;;  %v2632_v30 = vld [vmem:[%s3425_s4 + $0x1c] ss:$12 sps:$4 sm:$0xff]   ;;  %v2634_v31 = vld [vmem:[%s3425_s4 + $0x18] ss:$12 sps:$4 sm:$0xff]  }
  0x13   : > { %487 = vadd.xlane.f32.xlu0 %v484_v1  ;;  %v2635_v32 = vld [vmem:[%s3425_s4 + $0x20] ss:$12 sps:$4 sm:$0xff]   ;;  %v2636_v33 = vld [vmem:[%s3425_s4 + $0x4] ss:$12 sps:$4 sm:$0xff]   ;;  %v2639_v35 = vld [vmem:[%s3425_s4 + $0x8] ss:$12 sps:$4 sm:$0xff]  }
  0x14   : > { %v2638_v34 = vld [vmem:[%s3425_s4] ss:$12 sps:$4 sm:$0xff]   ;;  %v567_v55 = vsub.s32 1, %v3001_v54  ;;  %v3010_v2 = vsub.s32 0, %v3001_v54  ;;  %vm810_vm1 = vcmask 261120   ;;  %vm862_vm8 = vcmask 130048  }
  0x15   : > { %709 = vmatpush1.bf16.msra.mxu0 %v2618_v18  ;;  %2495 = vmatpush3.bf16.msra.mxu1 %v2619_v19  ;;  %v2298_v44 = vld [vmem:[%s3423_s2] ss:$0 sm:$0xff]  ;;  %v792_v19 = vand.u32 127, %v561_v53  ;;  %vm1334_vm9 = vcmask 523264   ;;  %vm1337_vm10 = vcmask 785408  }
  0x16   : > { %2496 = vmatprep.subr.bf16.mxu1 %v2794_v4  ;;  %710 = vmatprep.subr.bf16.mxu0 %v2620_v20  ;;  %v2299_v48 = vld [vmem:[%s3424_s3] ss:$0 sm:$0xff] }
  0x17   : > { %v559_v58 = vld [vmem:[%s3426_s5] sm:$0x7]  ;;  %vm793_vm3 = vcmp.le.s32.totalorder %v792_v19, %v3001_v54 }
  0x18   : > { %v568_v61 = vrot.slane %v559_v58, %v567_v55  ;;  %v795_v17 = vld [vmem:[%s476_s27] sm:$0x1] }
  0x19   : > { %711 = vmatpush1.bf16.msra.mxu0 %v2622_v21  ;;  %2497 = vmatpush3.bf16.msra.mxu1 %v2623_v22  ;;  %vm796_vm2 = vcmp.gt.f32.partialorder %v795_v17, 0.5  ;;  %v790_v21 = vadd.s32 8, %v3001_v54 }
  0x1a   : > { %712 = vmatprep.subr.bf16.mxu0 %v2624_v23  ;;  %2498 = vmatprep.subr.bf16.mxu1 %v2794_v4  ;;  %v797_v18 = vsel %vm796_vm2, 1, %v2795_v27  ;;  %v2797_v23 = vmov -1e+09  }
  0x1b   : > { %v801_v20 = vrot.slane %v797_v18, %v3010_v2  ;;  %vm794_vm6 = vcmp.le.s32.totalorder %v792_v19, %v790_v21 }
  0x1d   : > { %713 = vmatpush1.bf16.msra.mxu0 %v2626_v24  ;;  %2499 = vmatpush3.bf16.msra.mxu1 %v2627_v25  ;;  %vm802_vm4 = vcmp.eq.s32.totalorder %v801_v20, 1 }
  0x1e   : > { %714 = vmatprep.subr.bf16.mxu0 %v2628_v26  ;;  %2500 = vmatprep.subr.bf16.mxu1 %v2794_v4  ;;  %vm803_vm5 = vmand %vm793_vm3, %vm802_vm4 }
  0x1f   : > { %v3036_v24 = vsel %vm803_vm5, 0.0, %v2797_v23  ;;  %vm804_vm7 = vmand %vm794_vm6, %vm802_vm4 }
  0x21   : > { %715 = vmatpush1.bf16.msra.mxu0 %v2630_v28  ;;  %2501 = vmatpush3.bf16.msra.mxu1 %v2631_v29 }
  0x22   : > { %716 = vmatprep.subr.bf16.mxu0 %v2632_v30  ;;  %2502 = vmatprep.subr.bf16.mxu1 %v2794_v4  ;;  %v3039_v30 = vsel %vm804_vm7, 0.0, %v2797_v23 }
  0x25   : > { %717 = vmatpush1.bf16.msra.mxu0 %v2634_v31  ;;  %2503 = vmatpush3.bf16.msra.mxu1 %v2635_v32 }
  0x26   : > { %718 = vmatprep.subr.bf16.mxu0 %v2636_v33  ;;  %2504 = vmatprep.subr.bf16.mxu1 %v2794_v4 }
  0x29   : > { %719 = vmatpush1.bf16.msra.mxu0 %v2638_v34  ;;  %2505 = vmatpush3.bf16.msra.mxu1 %v2639_v35 }
  0x2a   : > { %2510 = vmatprep.subr.bf16.mxu1 %v2794_v4  ;;  %2534 = vmatprep.subr.bf16.mxu0 %v2794_v4 }
  0x98   : > { %v486_v6 = vpop.xlane.xlu0 %485 }
  0x99   : > { %v490_v7 = vmul.f32 0.0078125, %v486_v6  ;;  %v571_v6 = vsub.s32 2, %v3001_v54 }
  0x9b   : > { %v2907_v8 = vsub.f32 %v483_v0, %v490_v7 }
  0x9c   : > { %v488_v9 = vpop.xlane.xlu0 %487 }
  0x9d   : > { %v491_v10 = vmul.f32 0.0078125, %v488_v9  ;;  %v494_v11 = vmul.f32 %v2907_v8, %v2907_v8 }
  0x9f   : > { %v2911_v12 = vsub.f32 %v484_v1, %v491_v10  ;;  %496 = vadd.xlane.f32.xlu1 %v494_v11  ;;  %v572_v10 = vrot.slane %v559_v58, %v571_v6 }
  0xa1   : > { %v495_v13 = vmul.f32 %v2911_v12, %v2911_v12 }
  0xa3   : > { %498 = vadd.xlane.f32.xlu1 %v495_v13 }
 0x128   : > { %v497_v36 = vpop.xlane.xlu1 %496 }
 0x129   : > { %v500_v37 = vmul.f32 0.0078125, %v497_v36 }
 0x12b   : > { %v502_v38 = vadd.f32 1e-05, %v500_v37 }
 0x12c   : > { %v499_v39 = vpop.xlane.xlu1 %498 }
 0x12d   : > { %2728 = vrsqrt.f32 %v502_v38  ;;  %v501_v40 = vmul.f32 0.0078125, %v499_v39 }
 0x12f   : > { %v503_v41 = vadd.f32 1e-05, %v501_v40 }
 0x131   : > { %2730 = vrsqrt.f32 %v503_v41 }
 0x13a   : > { %v2729_v42 = vpop.eup %2728 }
 0x13b   : > { %v506_v43 = vmul.f32 %v2729_v42, %v2907_v8  ;;  %v564_v8 = vrot.slane %v559_v58, %v3010_v2 }
 0x13d   : > { %v515_v47 = vmul.f32 %v2298_v44, %v506_v43 }
 0x13e   : > { %v2731_v45 = vpop.eup %2730 }
 0x13f   : > { %v507_v46 = vmul.f32 %v2731_v45, %v2911_v12  ;;  %v524_v50 = vadd.f32 %v2299_v48, %v515_v47 }
 0x141   : > { %v516_v49 = vmul.f32 %v2298_v44, %v507_v46 }
 0x143   : > { %v525_v51 = vadd.f32 %v2299_v48, %v516_v49 }
 0x145   : > { %v526_v52 = vpack.c.bf16 %v525_v51, %v524_v50 }
 0x147   : > { %737 = vmatmul.mubr.bf16.vlgmr.msra.gmra.mxu0 %v526_v52  ;;  %2507 = vmatmul.mubr.bf16.vlgmr.msra.gmra.mxu1 %v526_v52 }
 0x148   : > { %2512 = vmatprep.mubr.msk.bf16.mxu1 %vm2796_vm0, %v2794_v4  ;;  %2536 = vmatprep.mubr.msk.bf16.mxu0 %vm2796_vm0, %v2794_v4 }
 0x207   : > { %v738_v56 = vpop.f32.mrf.mxu0  ;;  %v781_v57 = vpop.f32.mrf.mxu1 }
 0x208   : > { %v739_v13 = vadd.f32 %v738_v56, %v564_v8  ;;  %v782_v14 = vadd.f32 %v781_v57, %v572_v10 }
 0x209   : > { %v740_v59 = vpop.f32.mrf.mxu0  ;;  %v2508_v60 = vpop.f32.mrf.mxu1 }
 0x20a   : > { %v741_v3 = vadd.f32 %v740_v59, %v568_v61 }
 0x20b   : > { %v742_v62 = vpop.f32.mrf.mxu0  ;;  %v784_v63 = vpop.f32.mrf.mxu1 }
 0x20c   : > { %v743_v11 = vadd.f32 %v742_v62, %v564_v8  ;;  %v785_v12 = vadd.f32 %v784_v63, %v572_v10 }
 0x20d   : > { %v744_v0 = vpop.f32.mrf.mxu0  ;;  %v2509_v1 = vpop.f32.mrf.mxu1 }
 0x20e   : > { %v745_v5 = vadd.f32 %v744_v0, %v568_v61  ;;  %v807_v15 = vpack.c.bf16 %v743_v11, %v739_v13  ;;  %v3021_v16 = vpack.c.bf16 %v785_v12, %v782_v14 }
 0x210   : > { %v3013_v7 = vpack.c.bf16 %v745_v5, %v741_v3 }
 0x212   : > { %v815_v9 = vsel %vm810_vm1, %v3013_v7, 0 }
 0x213   : > { %2511 = vmatpush3.bf16.xpose.msra.mxu1 %v815_v9 }
 0x214   : > { %2516 = vmatprep.subr.bf16.mxu1 %v2794_v4 }
 0x21a   : > { %2513 = vmatmul.mubr.msk.bf16.vlgmr.msra.gmra.mxu1 %vm810_vm1, %v807_v15 }
 0x21b   : > { %2517 = vmatpush3.bf16.msra.mxu1 %v3021_v16  ;;  %2518 = vmatprep.mubr.msk.bf16.mxu1 %vm2796_vm0, %v2794_v4 }
 0x21c   : > { %2522 = vmatprep.subr.bf16.mxu1 %v2794_v4 }
 0x2da   : > { %v851_v22 = vpop.f32.mrf.mxu1 }
 0x2db   : > { %v858_v25 = vmul.f32 0.17677669, %v851_v22 }
 0x2dc   : > { %v2514_v26 = vpop.f32.mrf.mxu1 }
 0x2dd   : > { %v860_v28 = vadd.f32 %v858_v25, %v3036_v24 }
 0x2de   : > { %v854_v29 = vpop.f32.mrf.mxu1 }
 0x2df   : > { %v859_v31 = vmul.f32 0.17677669, %v854_v29  ;;  %v863_v32 = vsel %vm862_vm8, %v860_v28, -inf }
 0x2e0   : > { %864 = vmax.xlane.f32.xlu0 %v863_v32  ;;  %v2515_v33 = vpop.f32.mrf.mxu1 }
 0x2e1   : > { %v861_v34 = vadd.f32 %v859_v31, %v3039_v30 }
 0x2e3   : > { %v866_v35 = vsel %vm862_vm8, %v861_v34, -inf }
 0x2e4   : > { %867 = vmax.xlane.f32.xlu1 %v866_v35 }
 0x369   : > { %v865_v36 = vpop.xlane.xlu0 %864 }
 0x36a   : > { %v869_v37 = vsub.f32 %v860_v28, %v865_v36 }
 0x36c   : > { %v871_v38 = vmul.f32 1.442695, %v869_v37 }
 0x36d   : > { %v868_v39 = vpop.xlane.xlu1 %867 }
 0x36e   : > { %2732 = vpow2.f32 %v871_v38  ;;  %v870_v40 = vsub.f32 %v861_v34, %v868_v39 }
 0x370   : > { %v873_v41 = vmul.f32 1.442695, %v870_v40 }
 0x372   : > { %2734 = vpow2.f32 %v873_v41 }
 0x37b   : > { %v2733_v42 = vpop.eup %2732 }
 0x37c   : > { %v875_v43 = vsel %vm862_vm8, %v2733_v42, 0.0 }
 0x37d   : > { %876 = vadd.xlane.f32.xlu0 %v875_v43 }
 0x37f   : > { %v2735_v44 = vpop.eup %2734 }
 0x380   : > { %v878_v45 = vsel %vm862_vm8, %v2735_v44, 0.0 }
 0x381   : > { %879 = vadd.xlane.f32.xlu1 %v878_v45 }
 0x392   : > { %931 = vrot.lane.b32.xlu1 %v807_v15, %s2798_s28 }
 0x393   : > { %934 = vrot.lane.b32.xlu0 %v3013_v7, %s2798_s28 }
 0x396   : > { %1060 = vrot.lane.b32.xlu1 %v3013_v7, %s2799_s16 }
 0x397   : > { %1185 = vrot.lane.b32.xlu0 %v3013_v7, %s2800_s17 }
 0x39a   : > { %1058 = vrot.lane.b32.xlu1 %v807_v15, %s2799_s16 }
 0x39e   : > { %1183 = vrot.lane.b32.xlu1 %v807_v15, %s2800_s17 }
 0x406   : > { %v877_v46 = vpop.xlane.xlu0 %876 }
 0x407   : > { %2736 = vrcp.f32 %v877_v46 }
 0x40a   : > { %v880_v47 = vpop.xlane.xlu1 %879  ;;  %v935_v49 = vpop.permute.xlu0 %934 }
 0x40b   : > { %2738 = vrcp.f32 %v880_v47  ;;  %v940_v62 = vsel %vm810_vm1, %v935_v49, 0 }
 0x40e   : > { %v932_v48 = vpop.permute.xlu1 %931  ;;  %v1186_v56 = vpop.permute.xlu0 %1185 }
 0x40f   : > { %v1191_v60 = vsel %vm810_vm1, %v1186_v56, 0 }
 0x412   : > { %v1061_v50 = vpop.permute.xlu1 %1060 }
 0x413   : > { %v1066_v51 = vsel %vm810_vm1, %v1061_v50, 0 }
 0x414   : > { %2535 = vmatpush3.bf16.xpose.msra.mxu0 %v1066_v51  ;;  %v2737_v52 = vpop.eup %2736 }
 0x415   : > { %2546 = vmatprep.subr.bf16.mxu0 %v2794_v4  ;;  %v883_v57 = vmul.f32 %v2737_v52, %v2733_v42 }
 0x416   : > { %v1059_v59 = vpop.permute.xlu1 %1058 }
 0x418   : > { %v2739_v53 = vpop.eup %2738 }
 0x419   : > { %v884_v58 = vmul.f32 %v2739_v53, %v2735_v44 }
 0x41a   : > { %v1184_v63 = vpop.permute.xlu1 %1183 }
 0x41b   : > { %2537 = vmatmul.mubr.msk.bf16.vlgmr.msra.gmra.mxu0 %vm810_vm1, %v1059_v59  ;;  %v885_v61 = vpack.c.bf16 %v884_v58, %v883_v57 }
 0x41c   : > { %2547 = vmatpush3.bf16.xpose.msra.mxu0 %v1191_v60  ;;  %2548 = vmatprep.mubr.msk.bf16.mxu0 %vm2796_vm0, %v2794_v4 }
 0x41d   : > { %2519 = vmatmul.mubr.msk.bf16.vlgmr.msra.gmra.mxu1 %vm862_vm8, %v885_v61  ;;  %2558 = vmatprep.subr.bf16.mxu0 %v2794_v4 }
 0x41e   : > { %2523 = vmatpush3.bf16.xpose.msra.mxu1 %v940_v62  ;;  %2524 = vmatprep.mubr.msk.bf16.mxu1 %vm2796_vm0, %v2794_v4 }
 0x41f   : > { %2528 = vmatprep.subr.bf16.mxu1 %v2794_v4 }
 0x423   : > { %2549 = vmatmul.mubr.msk.bf16.vlgmr.msra.gmra.mxu0 %vm810_vm1, %v1184_v63 }
 0x424   : > { %2574 = vmatprep.mubr.msk.bf16.mxu0 %vm2796_vm0, %v2794_v4 }
 0x425   : > { %2525 = vmatmul.mubr.msk.bf16.vlgmr.msra.gmra.mxu1 %vm810_vm1, %v932_v48 }
 0x426   : > { %2530 = vmatprep.mubr.msk.bf16.mxu1 %vm2796_vm0, %v2794_v4 }
 0x4db   : > { %v1102_v0 = vpop.f32.mrf.mxu0 }
 0x4dc   : > { %v1109_v12 = vmul.f32 0.17677669, %v1102_v0 }
 0x4dd   : > { %v3073_v1 = vpop.f32.mrf.mxu1  ;;  %v2538_v3 = vpop.f32.mrf.mxu0 }
 0x4de   : > { %v1111_v23 = vadd.f32 %v1109_v12, %v3036_v24 }
 0x4df   : > { %v2520_v5 = vpop.f32.mrf.mxu1  ;;  %v1105_v7 = vpop.f32.mrf.mxu0 }
 0x4e0   : > { %v1110_v20 = vmul.f32 0.17677669, %v1105_v7  ;;  %v1113_v32 = vsel %vm862_vm8, %v1111_v23, -inf }
 0x4e1   : > { %v3075_v8 = vpop.f32.mrf.mxu1  ;;  %v2539_v9 = vpop.f32.mrf.mxu0 }
 0x4e2   : > { %v1112_v35 = vadd.f32 %v1110_v20, %v3039_v30 }
 0x4e3   : > { %v2521_v10 = vpop.f32.mrf.mxu1  ;;  %v1227_v11 = vpop.f32.mrf.mxu0 }
 0x4e4   : > { %v1234_v33 = vmul.f32 0.17677669, %v1227_v11  ;;  %v1116_v37 = vsel %vm862_vm8, %v1112_v35, -inf }
 0x4e5   : > { %v976_v13 = vpop.f32.mrf.mxu1  ;;  %v2550_v14 = vpop.f32.mrf.mxu0 }
 0x4e6   : > { %v983_v15 = vmul.f32 0.17677669, %v976_v13  ;;  %v1236_v39 = vadd.f32 %v1234_v33, %v3036_v24 }
 0x4e7   : > { %v2526_v17 = vpop.f32.mrf.mxu1  ;;  %v1230_v18 = vpop.f32.mrf.mxu0 }
 0x4e8   : > { %v985_v19 = vadd.f32 %v983_v15, %v3036_v24  ;;  %v1235_v25 = vmul.f32 0.17677669, %v1230_v18  ;;  %v1238_v40 = vsel %vm862_vm8, %v1236_v39, -inf }
 0x4e9   : > { %v979_v21 = vpop.f32.mrf.mxu1  ;;  %v2551_v22 = vpop.f32.mrf.mxu0 }
 0x4ea   : > { %v984_v26 = vmul.f32 0.17677669, %v979_v21  ;;  %v987_v28 = vsel %vm862_vm8, %v985_v19, -inf  ;;  %v1237_v36 = vadd.f32 %v1235_v25, %v3039_v30 }
 0x4eb   : > { %988 = vmax.xlane.f32.xlu0 %v987_v28  ;;  %v2527_v29 = vpop.f32.mrf.mxu1 }
 0x4ec   : > { %v986_v31 = vadd.f32 %v984_v26, %v3039_v30  ;;  %v1241_v38 = vsel %vm862_vm8, %v1237_v36, -inf }
 0x4ee   : > { %v990_v34 = vsel %vm862_vm8, %v986_v31, -inf }
 0x4ef   : > { %1114 = vmax.xlane.f32.xlu0 %v1113_v32  ;;  %991 = vmax.xlane.f32.xlu1 %v990_v34 }
 0x4f3   : > { %1117 = vmax.xlane.f32.xlu0 %v1116_v37  ;;  %1242 = vmax.xlane.f32.xlu1 %v1241_v38 }
 0x4f7   : > { %1239 = vmax.xlane.f32.xlu0 %v1238_v40  ;;  %v2641_v40 = vld [vmem:[%s3427_s6 + $0x30] sm:$0xff]  }
 0x574   : > { %v989_v41 = vpop.xlane.xlu0 %988 }
 0x575   : > { %v993_v49 = vsub.f32 %v985_v19, %v989_v41  ;;  %v2642_v41 = vld [vmem:[%s3427_s6 + $0x28] sm:$0xff]  }
 0x577   : > { %v995_v56 = vmul.f32 1.442695, %v993_v49 }
 0x578   : > { %v1115_v42 = vpop.xlane.xlu0 %1114  ;;  %v992_v43 = vpop.xlane.xlu1 %991 }
 0x579   : > { %v1119_v44 = vsub.f32 %v1111_v23, %v1115_v42  ;;  %v994_v50 = vsub.f32 %v986_v31, %v992_v43  ;;  %v2643_v42 = vld [vmem:[%s3427_s6 + $0x20] sm:$0xff]   ;;  %v2644_v43 = vld [vmem:[%s3427_s6 + $0x18] sm:$0xff]  }
 0x57b   : > { %v1121_v45 = vmul.f32 1.442695, %v1119_v44  ;;  %v997_v57 = vmul.f32 1.442695, %v994_v50 }
 0x57c   : > { %v1118_v46 = vpop.xlane.xlu0 %1117  ;;  %v1243_v30 = vpop.xlane.xlu1 %1242 }
 0x57d   : > { %2740 = vpow2.f32 %v1121_v45  ;;  %v1120_v47 = vsub.f32 %v1112_v35, %v1118_v46  ;;  %v1245_v48 = vsub.f32 %v1237_v36, %v1243_v30  ;;  %v2645_v46 = vld [vmem:[%s3427_s6 + $0x10] sm:$0xff]  }
 0x57f   : > { %v1123_v51 = vmul.f32 1.442695, %v1120_v47  ;;  %v1248_v52 = vmul.f32 1.442695, %v1245_v48  ;;  %v2646_v48 = vld [vmem:[%s3427_s6 + $0x8] sm:$0xff]  }
 0x580   : > { %v1240_v24 = vpop.xlane.xlu0 %1239 }
 0x581   : > { %2742 = vpow2.f32 %v1123_v51  ;;  %v1244_v53 = vsub.f32 %v1236_v39, %v1240_v24  ;;  %v2640_v39 = vld [vmem:[%s3427_s6 + $0x38] sm:$0xff]  }
 0x582   : > { %2744 = vpow2.f32 %v1248_v52  ;;  %2559 = vmatpush3.bf16.msra.mxu0 %v2640_v39  ;;  %v2647_v52 = vld [vmem:[%s3427_s6] sm:$0xff]  }
 0x583   : > { %v1246_v58 = vmul.f32 1.442695, %v1244_v53  ;;  %2560 = vmatprep.subr.bf16.mxu0 %v2794_v4 }
 0x585   : > { %2746 = vpow2.f32 %v1246_v58 }
 0x586   : > { %2748 = vpow2.f32 %v995_v56  ;;  %2561 = vmatpush3.bf16.msra.mxu0 %v2641_v40 }
 0x587   : > { %2750 = vpow2.f32 %v997_v57  ;;  %2562 = vmatprep.subr.bf16.mxu0 %v2794_v4 }
 0x58a   : > { %v2741_v59 = vpop.eup %2740  ;;  %2563 = vmatpush3.bf16.msra.mxu0 %v2642_v41  ;;  %v2656_v41 = vld [vmem:[%s3431_s10 + $0xc4] ss:$16 sps:$4 sm:$0xff]  }
 0x58b   : > { %v1125_v60 = vsel %vm862_vm8, %v2741_v59, 0.0  ;;  %2564 = vmatprep.subr.bf16.mxu0 %v2794_v4 }
 0x58c   : > { %1126 = vadd.xlane.f32.xlu0 %v1125_v60 }
 0x58e   : > { %v2743_v61 = vpop.eup %2742  ;;  %2565 = vmatpush3.bf16.msra.mxu0 %v2643_v42  ;;  %v2659_v42 = vld [vmem:[%s3431_s10 + $0xcc] ss:$16 sps:$4 sm:$0xff]  }
 0x58f   : > { %v1128_v62 = vsel %vm862_vm8, %v2743_v61, 0.0  ;;  %v2745_v63 = vpop.eup %2744  ;;  %2566 = vmatprep.subr.bf16.mxu0 %v2794_v4 }
 0x590   : > { %1129 = vadd.xlane.f32.xlu1 %v1128_v62  ;;  %v1253_v7 = vsel %vm862_vm8, %v2745_v63, 0.0 }
 0x592   : > { %v2747_v0 = vpop.eup %2746  ;;  %2567 = vmatpush3.bf16.msra.mxu0 %v2644_v43  ;;  %v2654_v43 = vld [vmem:[%s3431_s10 + $0xc0] ss:$16 sps:$4 sm:$0xff]  }
 0x593   : > { %v2749_v3 = vpop.eup %2748  ;;  %v1250_v5 = vsel %vm862_vm8, %v2747_v0, 0.0  ;;  %2568 = vmatprep.subr.bf16.mxu0 %v2794_v4 }
 0x594   : > { %v2751_v9 = vpop.eup %2750  ;;  %1251 = vadd.xlane.f32.xlu0 %v1250_v5  ;;  %1254 = vadd.xlane.f32.xlu1 %v1253_v7  ;;  %v999_v10 = vsel %vm862_vm8, %v2749_v3, 0.0 }
 0x595   : > { %v1002_v11 = vsel %vm862_vm8, %v2751_v9, 0.0 }
 0x596   : > { %2569 = vmatpush3.bf16.msra.mxu0 %v2645_v46  ;;  %v2665_v46 = vld [vmem:[%s3431_s10 + $0xac] ss:$16 sps:$4 sm:$0xff]  }
 0x597   : > { %2570 = vmatprep.subr.bf16.mxu0 %v2794_v4 }
 0x598   : > { %1000 = vadd.xlane.f32.xlu0 %v999_v10  ;;  %1003 = vadd.xlane.f32.xlu1 %v1002_v11 }
 0x59a   : > { %2571 = vmatpush3.bf16.msra.mxu0 %v2646_v48  ;;  %v2666_v48 = vld [vmem:[%s3431_s10 + $0x80] ss:$16 sps:$4 sm:$0xff]  }
 0x59b   : > { %2572 = vmatprep.subr.bf16.mxu0 %v2794_v4 }
 0x59e   : > { %2573 = vmatpush3.bf16.msra.mxu0 %v2647_v52  ;;  %v2674_v52 = vld [vmem:[%s3431_s10 + $0x64] ss:$16 sps:$4 sm:$0xff]  }
 0x5a9   : > { %1136 = vrot.lane.b32.xlu1 %v3021_v16, %s2799_s16 }
 0x5ad   : > { %1261 = vrot.lane.b32.xlu1 %v3021_v16, %s2800_s17 }
 0x5ae   : > { %1011 = vrot.lane.b32.xlu0 %v3021_v16, %s2798_s28 }
 0x615   : > { %v1127_v12 = vpop.xlane.xlu0 %1126 }
 0x619   : > { %v1130_v13 = vpop.xlane.xlu1 %1129 }
 0x61d   : > { %v1252_v14 = vpop.xlane.xlu0 %1251  ;;  %v1255_v15 = vpop.xlane.xlu1 %1254 }
 0x621   : > { %v1001_v17 = vpop.xlane.xlu0 %1000  ;;  %v1004_v18 = vpop.xlane.xlu1 %1003 }
 0x622   : > { %2752 = vrcp.f32 %v1001_v17 }
 0x623   : > { %2754 = vrcp.f32 %v1004_v18 }
 0x624   : > { %2756 = vrcp.f32 %v1130_v13 }
 0x625   : > { %v1012_v19 = vpop.permute.xlu0 %1011  ;;  %2758 = vrcp.f32 %v1127_v12  ;;  %v1137_v26 = vpop.permute.xlu1 %1136 }
 0x626   : > { %2529 = vmatpush3.bf16.msra.mxu1 %v1012_v19  ;;  %2760 = vrcp.f32 %v1252_v14 }
 0x627   : > { %2540 = vmatprep.subr.bf16.mxu1 %v2794_v4  ;;  %2762 = vrcp.f32 %v1255_v15 }
 0x629   : > { %v1262_v35 = vpop.permute.xlu1 %1261 }
 0x62f   : > { %v2753_v20 = vpop.eup %2752 }
 0x630   : > { %v2755_v21 = vpop.eup %2754  ;;  %v1007_v22 = vmul.f32 %v2753_v20, %v2749_v3  ;;  %v2340_v20 = vld [vmem:[%s3428_s7] ss:$0 sm:$0xff] }
 0x631   : > { %v1008_v16 = vmul.f32 %v2755_v21, %v2751_v9  ;;  %v2757_v25 = vpop.eup %2756 }
 0x632   : > { %v2759_v28 = vpop.eup %2758  ;;  %v1134_v29 = vmul.f32 %v2757_v25, %v2743_v61 }
 0x633   : > { %v1009_v23 = vpack.c.bf16 %v1008_v16, %v1007_v22  ;;  %v1133_v31 = vmul.f32 %v2759_v28, %v2741_v59  ;;  %v2761_v32 = vpop.eup %2760 }
 0x634   : > { %v2763_v34 = vpop.eup %2762  ;;  %v1258_v36 = vmul.f32 %v2761_v32, %v2747_v0  ;;  %v2653_v32 = vld [vmem:[%s3431_s10 + $0xec] ss:$16 sps:$4 sm:$0xff]  }
 0x635   : > { %2531 = vmatmul.mubr.msk.bf16.vlgmr.msra.gmra.mxu1 %vm862_vm8, %v1009_v23  ;;  %v1135_v33 = vpack.c.bf16 %v1134_v29, %v1133_v31  ;;  %v1259_v37 = vmul.f32 %v2763_v34, %v2745_v63  ;;  %v2785_v23 = vld [vmem:[%s2892_s18 + $0x8] sm:$0xff]  ;;  %v2650_v29 = vld [vmem:[%s3431_s10 + $0xe4] ss:$16 sps:$4 sm:$0xff]   ;;  %1755 = vmatprep.subr.bf16.mxu0 %v2653_v32 }
 0x636   : > { %2541 = vmatpush3.bf16.msra.mxu1 %v1137_v26  ;;  %2542 = vmatprep.mubr.msk.bf16.mxu1 %vm2796_vm0, %v2794_v4  ;;  %v2651_v31 = vld [vmem:[%s3431_s10 + $0xe8] ss:$16 sps:$4 sm:$0xff]   ;;  %v2700_v32 = vld [vmem:[%s3433_s12 + $0x70] sm:$0xff]  }
 0x637   : > { %2552 = vmatprep.subr.bf16.mxu1 %v2794_v4  ;;  %v1260_v38 = vpack.c.bf16 %v1259_v37, %v1258_v36 }
 0x63d   : > { %2543 = vmatmul.mubr.msk.bf16.vlgmr.msra.gmra.mxu1 %vm862_vm8, %v1135_v33 }
 0x63e   : > { %2553 = vmatpush3.bf16.msra.mxu1 %v1262_v35  ;;  %2554 = vmatprep.mubr.msk.bf16.mxu1 %vm2796_vm0, %v2794_v4 }
 0x63f   : > { %1712 = vmatprep.subr.bf16.mxu1 %v2650_v29  ;;  %v2698_v29 = vld [vmem:[%s3433_s12 + $0x38] sm:$0xff]  }
 0x645   : > { %2555 = vmatmul.mubr.msk.bf16.vlgmr.msra.gmra.mxu1 %vm862_vm8, %v1260_v38 }
 0x646   : > { %1744 = vmatprep.mubr.bf16.mxu1 %v2795_v27 }
 0x6f5   : > { %v1051_v44 = vpop.f32.mrf.mxu1 }
 0x6f7   : > { %v2532_v45 = vpop.f32.mrf.mxu1 }
 0x6f8   : > { %v2662_v45 = vld [vmem:[%s3431_s10 + $0xa4] ss:$16 sps:$4 sm:$0xff]  }
 0x6f9   : > { %v1054_v30 = vpop.f32.mrf.mxu1 }
 0x6fa   : > { %v2593_v47 = vpack.i.bf16 %v1054_v30, %v1051_v44  ;;  %v2657_v44 = vld [vmem:[%s3431_s10 + $0xc8] ss:$16 sps:$4 sm:$0xff]   ;;  %v2660_v30 = vld [vmem:[%s3431_s10 + $0xa0] ss:$16 sps:$4 sm:$0xff]  }
 0x6fb   : > { %v2533_v49 = vpop.f32.mrf.mxu1 }
 0x6fc   : > { %2594 = vrot.lane.b32.xlu1 %v2593_v47, %s2800_s17  ;;  %v2663_v47 = vld [vmem:[%s3431_s10 + $0xa8] ss:$16 sps:$4 sm:$0xff]   ;;  %v2668_v49 = vld [vmem:[%s3431_s10 + $0x84] ss:$16 sps:$4 sm:$0xff]  }
 0x6fd   : > { %v1176_v50 = vpop.f32.mrf.mxu1 }
 0x6ff   : > { %v2544_v51 = vpop.f32.mrf.mxu1 }
 0x700   : > { %v2671_v51 = vld [vmem:[%s3431_s10 + $0x8c] ss:$16 sps:$4 sm:$0xff]  }
 0x701   : > { %v1179_v24 = vpop.f32.mrf.mxu1 }
 0x702   : > { %v2598_v53 = vpack.i.bf16 %v1179_v24, %v1176_v50  ;;  %v2669_v50 = vld [vmem:[%s3431_s10 + $0x88] ss:$16 sps:$4 sm:$0xff]   ;;  %v2677_v24 = vld [vmem:[%s3431_s10 + $0x6c] ss:$16 sps:$4 sm:$0xff]  }
 0x703   : > { %v2545_v56 = vpop.f32.mrf.mxu1 }
 0x704   : > { %2599 = vrot.lane.b32.xlu0 %v2598_v53, %s2799_s16  ;;  %v2672_v53 = vld [vmem:[%s3431_s10 + $0x60] ss:$16 sps:$4 sm:$0xff]   ;;  %v2675_v56 = vld [vmem:[%s3431_s10 + $0x68] ss:$16 sps:$4 sm:$0xff]  }
 0x705   : > { %v1301_v57 = vpop.f32.mrf.mxu1 }
 0x707   : > { %v2556_v58 = vpop.f32.mrf.mxu1 }
 0x708   : > { %v2683_v58 = vld [vmem:[%s3431_s10 + $0x4c] ss:$16 sps:$4 sm:$0xff]  }
 0x709   : > { %v1304_v59 = vpop.f32.mrf.mxu1 }
 0x70a   : > { %v2603_v60 = vpack.i.bf16 %v1304_v59, %v1301_v57  ;;  %v2680_v57 = vld [vmem:[%s3431_s10 + $0x44] ss:$16 sps:$4 sm:$0xff]   ;;  %v2678_v59 = vld [vmem:[%s3431_s10 + $0x40] ss:$16 sps:$4 sm:$0xff]  }
 0x70b   : > { %v2557_v61 = vpop.f32.mrf.mxu1 }
 0x70c   : > { %2604 = vrot.lane.b32.xlu1 %v2603_v60, %s2798_s28  ;;  %v2681_v60 = vld [vmem:[%s3431_s10 + $0x48] ss:$16 sps:$4 sm:$0xff]   ;;  %v2686_v61 = vld [vmem:[%s3431_s10 + $0x24] ss:$16 sps:$4 sm:$0xff]  }
 0x76e   : > { %v2595_v62 = vpop.permute.xlu1 %2594 }
 0x76f   : > { %v2597_v4 = vunpack.i.h.bf16 %v2595_v62  ;;  %v2596_v0 = vunpack.i.l.bf16 %v2595_v62  ;;  %v2689_v62 = vld [vmem:[%s3431_s10 + $0x2c] ss:$16 sps:$4 sm:$0xff]  }
 0x771   : > { %v1333_v9 = vsel %vm810_vm1, %v3075_v8, %v2597_v4  ;;  %v1332_v10 = vsel %vm810_vm1, %v3073_v1, %v2596_v0  ;;  %v2784_v8 = vld [vmem:[%s2892_s18] sm:$0xff]  ;;  %v2687_v4 = vld [vmem:[%s3431_s10 + $0x28] ss:$16 sps:$4 sm:$0xff]  }
 0x772   : > { %v2692_v0 = vld [vmem:[%s3431_s10 + $0x4] ss:$16 sps:$4 sm:$0xff]  }
 0x776   : > { %v2600_v63 = vpop.permute.xlu0 %2599 }
 0x777   : > { %v2602_v3 = vunpack.i.h.bf16 %v2600_v63  ;;  %v2601_v5 = vunpack.i.l.bf16 %v2600_v63  ;;  %v2684_v63 = vld [vmem:[%s3431_s10 + $0x20] ss:$16 sps:$4 sm:$0xff]  }
 0x779   : > { %v1336_v13 = vsel %vm1334_vm9, %v1333_v9, %v2602_v3  ;;  %v1335_v14 = vsel %vm1334_vm9, %v1332_v10, %v2601_v5  ;;  %v2695_v3 = vld [vmem:[%s3431_s10 + $0xc] ss:$16 sps:$4 sm:$0xff]   ;;  %v2690_v5 = vld [vmem:[%s3431_s10] ss:$16 sps:$4 sm:$0xff]  }
 0x77e   : > { %v2605_v7 = vpop.permute.xlu1 %2604 }
 0x77f   : > { %v2607_v11 = vunpack.i.h.bf16 %v2605_v7  ;;  %v2606_v12 = vunpack.i.l.bf16 %v2605_v7  ;;  %v2693_v7 = vld [vmem:[%s3431_s10 + $0x8] ss:$16 sps:$4 sm:$0xff]  }
 0x781   : > { %v1339_v15 = vsel %vm1337_vm10, %v1336_v13, %v2607_v11  ;;  %v1338_v17 = vsel %vm1337_vm10, %v1335_v14, %v2606_v12 }
 0x782   : > { %v1340_v18 = vpack.c.bf16 %v1339_v15, %v1338_v17 }
 0x784   : > { %2575 = vmatmul.mubr.bf16.vlgmr.msra.gmra.mxu0 %v1340_v18  ;;  %v2341_v18 = vld [vmem:[%s3429_s8] ss:$0 sm:$0xff] }
 0x785   : > { %1787 = vmatprep.mubr.bf16.mxu0 %v2795_v27  ;;  %v2648_v27 = vld [vmem:[%s3431_s10 + $0xe0] ss:$16 sps:$4 sm:$0xff]   ;;  %1756 = vmatpush1.bf16.msra.mxu0 %v2651_v31  ;;  %v2699_v31 = vld [vmem:[%s3433_s12 + $0xb8] sm:$0xff]  }
 0x786   : > { %1713 = vmatpush1.bf16.msra.mxu1 %v2648_v27  ;;  %1757 = vmatprep.subr.bf16.mxu0 %v2659_v42  ;;  %v2697_v27 = vld [vmem:[%s3433_s12 + $0xf8] sm:$0xff]   ;;  %v2710_v42 = vld [vmem:[%s3433_s12 + $0x20] sm:$0xff]  }
 0x787   : > { %1714 = vmatprep.subr.bf16.mxu1 %v2656_v41  ;;  %v2709_v41 = vld [vmem:[%s3433_s12 + $0xe0] sm:$0xff]  }
 0x789   : > { %1758 = vmatpush1.bf16.msra.mxu0 %v2657_v44  ;;  %v2712_v44 = vld [vmem:[%s3433_s12 + $0x58] sm:$0xff]  }
 0x78a   : > { %1715 = vmatpush1.bf16.msra.mxu1 %v2654_v43  ;;  %1759 = vmatprep.subr.bf16.mxu0 %v2665_v46  ;;  %v2711_v43 = vld [vmem:[%s3433_s12 + $0xa0] sm:$0xff]   ;;  %v2714_v46 = vld [vmem:[%s3433_s12 + $0x18] sm:$0xff]  }
 0x78b   : > { %1716 = vmatprep.subr.bf16.mxu1 %v2662_v45  ;;  %v2713_v45 = vld [vmem:[%s3433_s12 + $0xd8] sm:$0xff]  }
 0x78d   : > { %1760 = vmatpush1.bf16.msra.mxu0 %v2663_v47  ;;  %v2716_v47 = vld [vmem:[%s3433_s12 + $0x50] sm:$0xff]  }
 0x78e   : > { %1717 = vmatpush1.bf16.msra.mxu1 %v2660_v30  ;;  %1761 = vmatprep.subr.bf16.mxu0 %v2671_v51  ;;  %v2715_v30 = vld [vmem:[%s3433_s12 + $0x98] sm:$0xff]   ;;  %v2720_v51 = vld [vmem:[%s3433_s12 + $0x48] sm:$0xff]  }
 0x78f   : > { %1718 = vmatprep.subr.bf16.mxu1 %v2668_v49  ;;  %v2718_v49 = vld [vmem:[%s3433_s12 + $0x10] sm:$0xff]  }
 0x791   : > { %1762 = vmatpush1.bf16.msra.mxu0 %v2669_v50  ;;  %v2719_v50 = vld [vmem:[%s3433_s12 + $0x90] sm:$0xff]  }
 0x792   : > { %1719 = vmatpush1.bf16.msra.mxu1 %v2666_v48  ;;  %1763 = vmatprep.subr.bf16.mxu0 %v2677_v24  ;;  %v2717_v48 = vld [vmem:[%s3433_s12 + $0xd0] sm:$0xff]   ;;  %v2722_v24 = vld [vmem:[%s3433_s12 + $0x8] sm:$0xff]  }
 0x793   : > { %1720 = vmatprep.subr.bf16.mxu1 %v2674_v52  ;;  %v2721_v52 = vld [vmem:[%s3433_s12 + $0xc8] sm:$0xff]  }
 0x795   : > { %1764 = vmatpush1.bf16.msra.mxu0 %v2675_v56  ;;  %v2724_v56 = vld [vmem:[%s3433_s12 + $0x40] sm:$0xff]  }
 0x796   : > { %1721 = vmatpush1.bf16.msra.mxu1 %v2672_v53  ;;  %1765 = vmatprep.subr.bf16.mxu0 %v2683_v58  ;;  %v2723_v53 = vld [vmem:[%s3433_s12 + $0x88] sm:$0xff]   ;;  %v2726_v58 = vld [vmem:[%s3433_s12] sm:$0xff]  }
 0x797   : > { %1722 = vmatprep.subr.bf16.mxu1 %v2680_v57  ;;  %v2725_v57 = vld [vmem:[%s3433_s12 + $0xc0] sm:$0xff]  }
 0x799   : > { %1766 = vmatpush1.bf16.msra.mxu0 %v2681_v60  ;;  %v1530_v60 = vld [vmem:[%s3432_s11] sm:$0xf] }
 0x79a   : > { %1723 = vmatpush1.bf16.msra.mxu1 %v2678_v59  ;;  %1767 = vmatprep.subr.bf16.mxu0 %v2689_v62  ;;  %v2727_v59 = vld [vmem:[%s3433_s12 + $0x80] sm:$0xff]   ;;  %v1535_v62 = vrot.slane %v1530_v60, %v3010_v2 }
 0x79b   : > { %1724 = vmatprep.subr.bf16.mxu1 %v2686_v61  ;;  %v1546_v61 = vsub.s32 3, %v3001_v54 }
 0x79d   : > { %1768 = vmatpush1.bf16.msra.mxu0 %v2687_v4  ;;  %v1539_v4 = vrot.slane %v1530_v60, %v567_v55 }
 0x79e   : > { %1725 = vmatpush1.bf16.msra.mxu1 %v2684_v63  ;;  %1769 = vmatprep.subr.bf16.mxu0 %v2695_v3  ;;  %v1543_v63 = vrot.slane %v1530_v60, %v571_v6 }
 0x79f   : > { %1726 = vmatprep.subr.bf16.mxu1 %v2692_v0  ;;  %v1547_v0 = vrot.slane %v1530_v60, %v1546_v61 }
 0x7a1   : > { %1770 = vmatpush1.bf16.msra.mxu0 %v2693_v7 }
 0x7a2   : > { %1727 = vmatpush1.bf16.msra.mxu1 %v2690_v5  ;;  %2468 = vmatprep.subr.bf16.mxu0 %v2697_v27 }
 0x844   : > { %v1439_v19 = vpop.f32.mrf.mxu0 }
 0x845   : > { %v1446_v21 = vadd.f32 %v2784_v8, %v1439_v19 }
 0x846   : > { %v2576_v22 = vpop.f32.mrf.mxu0 }
 0x847   : > { %v3154_v1 = vadd.f32 %v2340_v20, %v1446_v21  ;;  %v2342_v21 = vld [vmem:[%s3430_s9] ss:$0 sm:$0xff] }
 0x848   : > { %v1442_v16 = vpop.f32.mrf.mxu0 }
 0x849   : > { %v1447_v25 = vadd.f32 %v2785_v23, %v1442_v16  ;;  %1457 = vadd.xlane.f32.xlu0 %v3154_v1 }
 0x84a   : > { %v2577_v26 = vpop.f32.mrf.mxu0 }
 0x84b   : > { %v3158_v28 = vadd.f32 %v2340_v20, %v1447_v25  ;;  %v2696_v26 = vld [vmem:[%s3433_s12 + $0x78] sm:$0xff]  }
 0x84c   : > { %2446 = vmatprep.subr.bf16.mxu1 %v2696_v26 }
 0x84d   : > { %1459 = vadd.xlane.f32.xlu1 %v3158_v28 }
 0x8d2   : > { %v1458_v33 = vpop.xlane.xlu0 %1457 }
 0x8d3   : > { %v1461_v34 = vmul.f32 0.0078125, %v1458_v33  ;;  %v2701_v33 = vld [vmem:[%s3433_s12 + $0xf0] sm:$0xff]  }
 0x8d5   : > { %v3174_v35 = vsub.f32 %v3154_v1, %v1461_v34  ;;  %v2702_v34 = vld [vmem:[%s3433_s12 + $0x30] sm:$0xff]  }
 0x8d6   : > { %v1460_v36 = vpop.xlane.xlu1 %1459 }
 0x8d7   : > { %v1462_v37 = vmul.f32 0.0078125, %v1460_v36  ;;  %v1465_v38 = vmul.f32 %v3174_v35, %v3174_v35  ;;  %v2704_v36 = vld [vmem:[%s3433_s12 + $0x68] sm:$0xff]  }
 0x8d9   : > { %v3179_v39 = vsub.f32 %v3158_v28, %v1462_v37  ;;  %1467 = vadd.xlane.f32.xlu0 %v1465_v38  ;;  %v2705_v37 = vld [vmem:[%s3433_s12 + $0xe8] sm:$0xff]  }
 0x8da   : > { %v2706_v38 = vld [vmem:[%s3433_s12 + $0x28] sm:$0xff]  }
 0x8db   : > { %v1466_v40 = vmul.f32 %v3179_v39, %v3179_v39 }
 0x8dd   : > { %1469 = vadd.xlane.f32.xlu0 %v1466_v40  ;;  %v2708_v40 = vld [vmem:[%s3433_s12 + $0x60] sm:$0xff]  }
 0x962   : > { %v1468_v9 = vpop.xlane.xlu0 %1467 }
 0x963   : > { %v1471_v10 = vmul.f32 0.0078125, %v1468_v9 }
 0x965   : > { %v1473_v11 = vadd.f32 1e-05, %v1471_v10 }
 0x966   : > { %v1470_v12 = vpop.xlane.xlu0 %1469 }
 0x967   : > { %2764 = vrsqrt.f32 %v1473_v11  ;;  %v1472_v13 = vmul.f32 0.0078125, %v1470_v12 }
 0x969   : > { %v1474_v14 = vadd.f32 1e-05, %v1472_v13 }
 0x96b   : > { %2766 = vrsqrt.f32 %v1474_v14 }
 0x974   : > { %v2765_v15 = vpop.eup %2764 }
 0x975   : > { %v1477_v17 = vmul.f32 %v2765_v15, %v3174_v35  ;;  %v2703_v35 = vld [vmem:[%s3433_s12 + $0xb0] sm:$0xff]  }
 0x977   : > { %v1486_v8 = vmul.f32 %v2341_v18, %v1477_v17 }
 0x978   : > { %v2767_v19 = vpop.eup %2766 }
 0x979   : > { %v1478_v20 = vmul.f32 %v2767_v19, %v3179_v39  ;;  %v1495_v16 = vadd.f32 %v2342_v21, %v1486_v8  ;;  %v2707_v39 = vld [vmem:[%s3433_s12 + $0xa8] sm:$0xff]  }
 0x97b   : > { %v1487_v22 = vmul.f32 %v2341_v18, %v1478_v20 }
 0x97d   : > { %v1496_v23 = vadd.f32 %v2342_v21, %v1487_v22 }
 0x97f   : > { %v1497_v25 = vpack.c.bf16 %v1496_v23, %v1495_v16 }
 0x981   : > { %1745 = vmatmul.mubr.bf16.vlgmr.msra.gmra.mxu1 %v1497_v25  ;;  %1788 = vmatmul.mubr.bf16.vlgmr.msra.gmra.mxu0 %v1497_v25 }
 0x982   : > { %2447 = vmatpush3.bf16.msra.mxu1 %v2698_v29  ;;  %2469 = vmatpush3.bf16.msra.mxu0 %v2699_v31 }
 0x983   : > { %2448 = vmatprep.subr.bf16.mxu1 %v2700_v32  ;;  %2470 = vmatprep.subr.bf16.mxu0 %v2701_v33 }
 0x986   : > { %2449 = vmatpush3.bf16.msra.mxu1 %v2702_v34  ;;  %2471 = vmatpush3.bf16.msra.mxu0 %v2703_v35 }
 0x987   : > { %2450 = vmatprep.subr.bf16.mxu1 %v2704_v36  ;;  %2472 = vmatprep.subr.bf16.mxu0 %v2705_v37 }
 0x98a   : > { %2451 = vmatpush3.bf16.msra.mxu1 %v2706_v38  ;;  %2473 = vmatpush3.bf16.msra.mxu0 %v2707_v39 }
 0x98b   : > { %2452 = vmatprep.subr.bf16.mxu1 %v2708_v40  ;;  %2474 = vmatprep.subr.bf16.mxu0 %v2709_v41 }
 0x98e   : > { %2453 = vmatpush3.bf16.msra.mxu1 %v2710_v42  ;;  %2475 = vmatpush3.bf16.msra.mxu0 %v2711_v43 }
 0x98f   : > { %2454 = vmatprep.subr.bf16.mxu1 %v2712_v44  ;;  %2476 = vmatprep.subr.bf16.mxu0 %v2713_v45 }
 0x992   : > { %2455 = vmatpush3.bf16.msra.mxu1 %v2714_v46  ;;  %2477 = vmatpush3.bf16.msra.mxu0 %v2715_v30 }
 0x993   : > { %2456 = vmatprep.subr.bf16.mxu1 %v2716_v47  ;;  %2478 = vmatprep.subr.bf16.mxu0 %v2717_v48 }
 0x996   : > { %2457 = vmatpush3.bf16.msra.mxu1 %v2718_v49  ;;  %2479 = vmatpush3.bf16.msra.mxu0 %v2719_v50 }
 0x997   : > { %2458 = vmatprep.subr.bf16.mxu1 %v2720_v51  ;;  %2480 = vmatprep.subr.bf16.mxu0 %v2721_v52 }
 0x99a   : > { %2459 = vmatpush3.bf16.msra.mxu1 %v2722_v24  ;;  %2481 = vmatpush3.bf16.msra.mxu0 %v2723_v53 }
 0x99b   : > { %2460 = vmatprep.subr.bf16.mxu1 %v2724_v56  ;;  %2482 = vmatprep.subr.bf16.mxu0 %v2725_v57 }
 0x99e   : > { %2461 = vmatpush3.bf16.msra.mxu1 %v2726_v58  ;;  %2483 = vmatpush3.bf16.msra.mxu0 %v2727_v59 }
 0xa41   : > { %v1746_v3 = vpop.f32.mrf.mxu1  ;;  %v1789_v5 = vpop.f32.mrf.mxu0 }
 0xa42   : > { %v3380_v7 = vadd.f32 %v1746_v3, %v1535_v62  ;;  %v3382_v9 = vadd.f32 %v1789_v5, %v1543_v63 }
 0xa43   : > { %v1748_v10 = vpop.f32.mrf.mxu1  ;;  %v1791_v11 = vpop.f32.mrf.mxu0 }
 0xa44   : > { %v1806_v12 = vmul.f32 0.044715, %v3380_v7  ;;  %v1808_v13 = vmul.f32 0.044715, %v3382_v9  ;;  %v1749_v2 = vadd.f32 %v1748_v10, %v1539_v4  ;;  %v3386_v14 = vadd.f32 %v1791_v11, %v1547_v0 }
 0xa45   : > { %v1750_v6 = vpop.f32.mrf.mxu1  ;;  %v1793_v15 = vpop.f32.mrf.mxu0  ;;  %v1798_v10 = vmul.f32 0.5, %v3380_v7 }
 0xa46   : > { %v1814_v54 = vmul.f32 %v1806_v12, %v3380_v7  ;;  %v1816_v55 = vmul.f32 %v1808_v13, %v3382_v9  ;;  %v1807_v17 = vmul.f32 0.044715, %v1749_v2  ;;  %v1809_v18 = vmul.f32 0.044715, %v3386_v14 }
 0xa47   : > { %v1751_v19 = vadd.f32 %v1750_v6, %v1535_v62  ;;  %v3391_v20 = vadd.f32 %v1793_v15, %v1543_v63  ;;  %v1752_v8 = vpop.f32.mrf.mxu1  ;;  %v1795_v21 = vpop.f32.mrf.mxu0  ;;  %v1799_v3 = vmul.f32 0.5, %v1749_v2 }
 0xa48   : > { %v1822_v22 = vmul.f32 %v1814_v54, %v3380_v7  ;;  %v1824_v16 = vmul.f32 %v1816_v55, %v3382_v9  ;;  %v1815_v23 = vmul.f32 %v1807_v17, %v1749_v2  ;;  %v1817_v25 = vmul.f32 %v1809_v18, %v3386_v14 }
 0xa49   : > { %v1810_v26 = vmul.f32 0.044715, %v1751_v19  ;;  %v1812_v27 = vmul.f32 0.044715, %v3391_v20  ;;  %v1753_v29 = vadd.f32 %v1752_v8, %v1539_v4  ;;  %v1796_v31 = vadd.f32 %v1795_v21, %v1547_v0 }
 0xa4a   : > { %v1830_v32 = vadd.f32 %v1822_v22, %v3380_v7  ;;  %v1832_v33 = vadd.f32 %v1824_v16, %v3382_v9  ;;  %v1823_v34 = vmul.f32 %v1815_v23, %v1749_v2  ;;  %v1825_v35 = vmul.f32 %v1817_v25, %v3386_v14 }
 0xa4b   : > { %v1818_v36 = vmul.f32 %v1810_v26, %v1751_v19  ;;  %v1820_v37 = vmul.f32 %v1812_v27, %v3391_v20  ;;  %v1811_v38 = vmul.f32 0.044715, %v1753_v29  ;;  %v1813_v39 = vmul.f32 0.044715, %v1796_v31 }
 0xa4c   : > { %v1838_v40 = vmul.f32 0.7978846, %v1830_v32  ;;  %v1840_v41 = vmul.f32 0.7978846, %v1832_v33  ;;  %v1831_v42 = vadd.f32 %v1823_v34, %v1749_v2  ;;  %v1833_v47 = vadd.f32 %v1825_v35, %v3386_v14 }
 0xa4d   : > { %v1826_v43 = vmul.f32 %v1818_v36, %v1751_v19  ;;  %v1828_v44 = vmul.f32 %v1820_v37, %v3391_v20  ;;  %v1819_v45 = vmul.f32 %v1811_v38, %v1753_v29  ;;  %v1821_v46 = vmul.f32 %v1813_v39, %v1796_v31 }
 0xa4e   : > { %v1839_v30 = vmul.f32 0.7978846, %v1831_v42  ;;  %2768 = vtanh.f32 %v1838_v40  ;;  %v1841_v52 = vmul.f32 0.7978846, %v1833_v47  ;;  %v1802_v6 = vmul.f32 0.5, %v1751_v19 }
 0xa4f   : > { %v1834_v48 = vadd.f32 %v1826_v43, %v1751_v19  ;;  %v1836_v49 = vadd.f32 %v1828_v44, %v3391_v20  ;;  %v1827_v50 = vmul.f32 %v1819_v45, %v1753_v29  ;;  %2770 = vtanh.f32 %v1840_v41  ;;  %v2407_v44 = vld [vmem:[%s3434_s13] ss:$0 sm:$0xff] }
 0xa50   : > { %v1829_v51 = vmul.f32 %v1821_v46, %v1796_v31  ;;  %2772 = vtanh.f32 %v1839_v30  ;;  %v1803_v17 = vmul.f32 0.5, %v1753_v29  ;;  %v1804_v8 = vmul.f32 0.5, %v3391_v20 }
 0xa51   : > { %v1842_v24 = vmul.f32 0.7978846, %v1834_v48  ;;  %v1844_v53 = vmul.f32 0.7978846, %v1836_v49  ;;  %v1835_v56 = vadd.f32 %v1827_v50, %v1753_v29  ;;  %2774 = vtanh.f32 %v1841_v52 }
 0xa52   : > { %v1837_v57 = vadd.f32 %v1829_v51, %v1796_v31  ;;  %v1801_v22 = vmul.f32 0.5, %v3386_v14  ;;  %v1805_v16 = vmul.f32 0.5, %v1796_v31  ;;  %v1800_v7 = vmul.f32 0.5, %v3382_v9 }
 0xa53   : > { %2776 = vtanh.f32 %v1842_v24  ;;  %v1843_v58 = vmul.f32 0.7978846, %v1835_v56 }
 0xa54   : > { %2778 = vtanh.f32 %v1844_v53  ;;  %v1845_v59 = vmul.f32 0.7978846, %v1837_v57 }
 0xa55   : > { %2780 = vtanh.f32 %v1843_v58 }
 0xa56   : > { %2782 = vtanh.f32 %v1845_v59 }
 0xa5b   : > { %v2769_v60 = vpop.eup %2768 }
 0xa5c   : > { %v2771_v61 = vpop.eup %2770  ;;  %v1854_v15 = vadd.f32 1.0, %v2769_v60 }
 0xa5d   : > { %v2773_v62 = vpop.eup %2772  ;;  %v1856_v21 = vadd.f32 1.0, %v2771_v61 }
 0xa5e   : > { %v2775_v63 = vpop.eup %2774  ;;  %v1855_v5 = vadd.f32 1.0, %v2773_v62  ;;  %v1862_v33 = vmul.f32 %v1854_v15, %v1798_v10 }
 0xa5f   : > { %v1857_v13 = vadd.f32 1.0, %v2775_v63  ;;  %v1864_v35 = vmul.f32 %v1856_v21, %v1800_v7 }
 0xa60   : > { %v2777_v4 = vpop.eup %2776  ;;  %v1863_v25 = vmul.f32 %v1855_v5, %v1799_v3 }
 0xa61   : > { %v2779_v0 = vpop.eup %2778  ;;  %v1858_v11 = vadd.f32 1.0, %v2777_v4  ;;  %v1865_v32 = vmul.f32 %v1857_v13, %v1801_v22 }
 0xa62   : > { %v2781_v12 = vpop.eup %2780  ;;  %v1860_v54 = vadd.f32 1.0, %v2779_v0 }
 0xa63   : > { %v2783_v55 = vpop.eup %2782  ;;  %v1859_v18 = vadd.f32 1.0, %v2781_v12  ;;  %v1866_v2 = vmul.f32 %v1858_v11, %v1802_v6 }
 0xa64   : > { %v1861_v23 = vadd.f32 1.0, %v2783_v55  ;;  %v1868_v27 = vmul.f32 %v1860_v54, %v1804_v8 }
 0xa65   : > { %v1867_v26 = vmul.f32 %v1859_v18, %v1803_v17  ;;  %v1870_v36 = vpack.c.bf16 %v1866_v2, %v1862_v33 }
 0xa66   : > { %v1869_v19 = vmul.f32 %v1861_v23, %v1805_v16  ;;  %v1872_v20 = vpack.c.bf16 %v1868_v27, %v1864_v35 }
 0xa67   : > { %v1871_v34 = vpack.c.bf16 %v1867_v26, %v1863_v25 }
 0xa68   : > { %v1873_v29 = vpack.c.bf16 %v1869_v19, %v1865_v32 }
 0xa69   : > { %2162 = vmatprep.mubr.bf16.mxu1 %v1871_v34 }
 0xa6a   : > { %2203 = vmatprep.mubr.bf16.mxu0 %v1873_v29  ;;  %2163 = vmatmul.mubr.bf16.vlgmr.msra.gmra.mxu1 %v1870_v36 }
 0xa6b   : > { %2204 = vmatmul.mubr.bf16.vlgmr.msra.gmra.mxu0 %v1872_v20 }
 0xb2a   : > { %v2462_v14 = vpop.f32.mrf.mxu1 }
 0xb2b   : > { %v2484_v31 = vpop.f32.mrf.mxu0 }
 0xb2c   : > { %v2463_v37 = vpop.f32.mrf.mxu1 }
 0xb2d   : > { %v2464_v38 = vadd.f32 %v2463_v37, %v2462_v14  ;;  %v2485_v39 = vpop.f32.mrf.mxu0 }
 0xb2e   : > { %v2486_v9 = vadd.f32 %v2485_v39, %v2484_v31  ;;  %v2465_v40 = vpop.f32.mrf.mxu1 }
 0xb2f   : > { %v2487_v41 = vpop.f32.mrf.mxu0 }
 0xb30   : > { %v2206_v42 = vadd.f32 %v2486_v9, %v2464_v38  ;;  %v2466_v43 = vpop.f32.mrf.mxu1 }
 0xb31   : > { %v2467_v45 = vadd.f32 %v2466_v43, %v2465_v40  ;;  %v2488_v46 = vpop.f32.mrf.mxu0 }
 0xb32   : > { %v2212_v30 = vadd.f32 %v2206_v42, %v3154_v1  ;;  %v2489_v47 = vadd.f32 %v2488_v46, %v2487_v41 }
 0xb34   : > { %v2221_v48 = vadd.f32 %v2407_v44, %v2212_v30  ;;  %v2209_v49 = vadd.f32 %v2489_v47, %v2467_v45 }
 0xb36   : > { %2223 = vst [vmem:[%s481_s23] sm:$0xff] %v2221_v48  ;;  %v2213_v50 = vadd.f32 %v2209_v49, %v3158_v28 }
 0xb38   : > { %v2222_v51 = vadd.f32 %v2407_v44, %v2213_v50 }
 0xb3a   : > { %2224 = vst [vmem:[%s481_s23 + $0x8] sm:$0xff] %v2222_v51 }
 0xb3b PF: > { %s24_s29 = sadd.s32 1, %s2792_s29  }
 0xb3c   : > { %p21_p4 = scmp.ge.s32.totalorder %s24_s29, 4  }
 0xb3e   :  { %23 = sbr.rel (!%p21_p4) target bundleno = 1 (0x1), region = 109 }

</bundles_post_ra>
